<compile_context>
chip_gen: v6e
topology: v6e:2x2x1
jax: 0.10.0
libtpu: 0.0.40
codegen_flags: <defaults>
</compile_context>

<pallas_src>
import jax
import jax.numpy as jnp
from jax import lax
from jax.experimental import pallas as pl
from jax.experimental.pallas import tpu as pltpu

BN_EPS = 1e-5


# ---------------------------------------------------------------------------
# Small helpers
# ---------------------------------------------------------------------------
def _round_up(x, m):
    return ((x + m - 1) // m) * m


def _shift_rows(v, s):
    """out[r] = v[r + s] for 0 <= r + s < rows, zero-filled past the edges."""
    if s == 0:
        return v
    n = v.shape[0]
    z = jnp.zeros((abs(s),) + v.shape[1:], v.dtype)
    if s > 0:
        return jnp.concatenate([v[s:], z], axis=0)
    return jnp.concatenate([z, v[: n + s]], axis=0)


def _pad_cols(a, n_cols):
    if a.shape[1] == n_cols:
        return a
    return jnp.pad(a, ((0, 0), (0, n_cols - a.shape[1])))


def _pad_rows(a, n_rows):
    if a.shape[0] == n_rows:
        return a
    return jnp.pad(a, ((0, n_rows - a.shape[0]), (0, 0)))


def _pad_vec(v, n):
    if v.shape[0] == n:
        return v
    return jnp.pad(v, (0, n - v.shape[0]))


# ---------------------------------------------------------------------------
# Fully fused bottleneck kernel: one grid step per image.
# ---------------------------------------------------------------------------
def _bottleneck_kernel_factory(h, w, stride, has_proj):
    hw = h * w

    def kernel(x_ref, w1_ref, s1_ref, t1_ref, w2_ref, s2_ref, t2_ref,
               w3_ref, s3_ref, t3_ref, *rest):
        if has_proj:
            wp_ref, o_ref = rest
        else:
            (o_ref,) = rest

        x_f32 = x_ref[0]                                     # (hw, cin) f32
        x_bf = x_f32.astype(jnp.bfloat16)

        # conv1 (1x1) + bn1 + relu, kept resident.
        mid = jnp.dot(x_bf, w1_ref[...], preferred_element_type=jnp.float32)
        mid = jnp.maximum(mid * s1_ref[...] + t1_ref[...], 0.0)
        mid = mid.astype(jnp.bfloat16)                       # (hw, cmid_p)

        # im2col for the 3x3 taps.  Only dw=+-1 is a sublane-unaligned shift
        # (needs a column-edge mask); the dh shifts move +-w rows (a sublane
        # block for w % 8 == 0) and their image edge is handled exactly by the
        # zero fill in _shift_rows.
        j_idx = lax.broadcasted_iota(jnp.int32, mid.shape, 0) % w
        zero = jnp.zeros_like(mid)
        mid_l = jnp.where(j_idx != 0, _shift_rows(mid, -1), zero)     # dw = -1
        mid_r = jnp.where(j_idx != w - 1, _shift_rows(mid, 1), zero)  # dw = +1
        taps = []
        for dh in (-1, 0, 1):
            for src in (mid_l, mid, mid_r):                  # dw = -1, 0, +1
                taps.append(_shift_rows(src, dh * w))
        patches = jnp.concatenate(taps, axis=-1)             # (hw, 9*cmid_p)

        # conv2 (3x3 grouped) as one K = 9*cmid_p matmul against the
        # block-diagonal weight, then bn2 + relu.
        mid2 = jnp.dot(patches, w2_ref[...], preferred_element_type=jnp.float32)
        mid2 = jnp.maximum(mid2 * s2_ref[...] + t2_ref[...], 0.0)

        x_res = x_bf if has_proj else x_f32
        if stride > 1:
            # TODO(synk): fold the stride into output-row indexing instead of
            #             computing conv2 at full resolution and subsampling.
            ho = (h - 1) // stride + 1
            wo = (w - 1) // stride + 1
            mid2 = mid2.reshape(h, w, mid2.shape[-1])[::stride, ::stride, :]
            mid2 = mid2.reshape(ho * wo, -1)
            x_res = x_res.reshape(h, w, x_res.shape[-1])[::stride, ::stride, :]
            x_res = x_res.reshape(x_res.shape[0] * x_res.shape[1], -1)

        # conv3 (1x1) + bn3 + residual (projection conv or identity) + relu.
        y = jnp.dot(mid2.astype(jnp.bfloat16), w3_ref[...],
                    preferred_element_type=jnp.float32)
        y = y * s3_ref[...] + t3_ref[...]        # projection bias folded in t3
        if has_proj:
            y = y + jnp.dot(x_res, wp_ref[...],
                            preferred_element_type=jnp.float32)
        else:
            y = y + x_res                        # identity residual, f32
        y = jnp.maximum(y, 0.0)
        o_ref[...] = y.reshape((1,) + y.shape).astype(o_ref.dtype)

    return kernel


def bottleneck_pallas(x2d, w1p, s1p, t1p, w2dp, s2p, t2p, w3p, s3, t3b, wp,
                      *, h, w, stride, has_proj):
    n, hw, cin = x2d.shape
    cmid_p = w1p.shape[1]
    cout = w3p.shape[1]
    ho = (h - 1) // stride + 1
    wo = (w - 1) // stride + 1

    in_specs = [
        pl.BlockSpec((1, hw, cin), lambda b: (b, 0, 0)),
        pl.BlockSpec((cin, cmid_p), lambda b: (0, 0)),
        pl.BlockSpec((1, cmid_p), lambda b: (0, 0)),
        pl.BlockSpec((1, cmid_p), lambda b: (0, 0)),
        pl.BlockSpec((9 * cmid_p, cmid_p), lambda b: (0, 0)),
        pl.BlockSpec((1, cmid_p), lambda b: (0, 0)),
        pl.BlockSpec((1, cmid_p), lambda b: (0, 0)),
        pl.BlockSpec((cmid_p, cout), lambda b: (0, 0)),
        pl.BlockSpec((1, cout), lambda b: (0, 0)),
        pl.BlockSpec((1, cout), lambda b: (0, 0)),
    ]
    args = [x2d, w1p,
            s1p.reshape(1, cmid_p), t1p.reshape(1, cmid_p), w2dp,
            s2p.reshape(1, cmid_p), t2p.reshape(1, cmid_p), w3p,
            s3.reshape(1, cout), t3b.reshape(1, cout)]
    if has_proj:
        in_specs.append(pl.BlockSpec((cin, cout), lambda b: (0, 0)))
        args.append(wp)

    return pl.pallas_call(
        _bottleneck_kernel_factory(h, w, stride, has_proj),
        out_shape=jax.ShapeDtypeStruct((n, ho * wo, cout), jnp.float32),
        grid_spec=pltpu.PrefetchScalarGridSpec(
            num_scalar_prefetch=0,
            grid=(n,),
            in_specs=in_specs,
            out_specs=pl.BlockSpec((1, ho * wo, cout), lambda b: (b, 0, 0)),
        ),
        compiler_params=pltpu.CompilerParams(
            dimension_semantics=("parallel",)),
    )(*args)


# ---------------------------------------------------------------------------
# Parameters, weight repacking, forward pass
# ---------------------------------------------------------------------------
def init_params(key, cin, cmid, cout, groups):
    ks = jax.random.split(key, 20)
    p = {
        "w1": 0.1 * jax.random.normal(ks[0], (cmid, cin, 1, 1), jnp.float32),
        "b1": 0.1 * jax.random.normal(ks[1], (cmid,), jnp.float32),
        "w2": 0.1 * jax.random.normal(ks[2], (cmid, cmid // groups, 3, 3),
                                      jnp.float32),
        "b2": 0.1 * jax.random.normal(ks[3], (cmid,), jnp.float32),
        "w3": 0.1 * jax.random.normal(ks[4], (cout, cmid, 1, 1), jnp.float32),
        "b3": 0.1 * jax.random.normal(ks[5], (cout,), jnp.float32),
        "wp": 0.1 * jax.random.normal(ks[6], (cout, cin, 1, 1), jnp.float32),
        "bp": 0.1 * jax.random.normal(ks[7], (cout,), jnp.float32),
    }
    for idx, (c, base) in enumerate([(cmid, 8), (cmid, 12), (cout, 16)], 1):
        p[f"bn{idx}_gamma"] = 1.0 + 0.1 * jax.random.normal(ks[base], (c,))
        p[f"bn{idx}_beta"] = 0.1 * jax.random.normal(ks[base + 1], (c,))
        p[f"bn{idx}_mean"] = 0.1 * jax.random.normal(ks[base + 2], (c,))
        p[f"bn{idx}_var"] = 0.5 + jnp.abs(jax.random.normal(ks[base + 3], (c,)))
    return p


def _bn_fold(gamma, beta, mean, var, conv_bias):
    scale = gamma / jnp.sqrt(var + BN_EPS)
    shift = beta + (conv_bias - mean) * scale
    return scale.astype(jnp.float32), shift.astype(jnp.float32)


def _grouped_to_dense(w_grouped, groups, cmid_p):
    """(C, C/g, 3, 3) grouped OIHW weight -> block-diag dense (9*C_p, C_p)."""
    cmid, cg, _, _ = w_grouped.shape
    dense = jnp.zeros((3, 3, cmid_p, cmid_p), jnp.float32)
    for g in range(groups):
        blk = w_grouped[g * cg:(g + 1) * cg]                 # (cg_out, cg_in, 3, 3)
        dense = dense.at[:, :, g * cg:(g + 1) * cg, g * cg:(g + 1) * cg].set(
            jnp.transpose(blk, (2, 3, 1, 0)))                # (3, 3, cg_in, cg_out)
    return dense.reshape(9 * cmid_p, cmid_p)                 # row = d*C_p + cin


def bottleneck_forward(x_nchw, p, *, stride=1, groups=32):
    n, cin, h, w = x_nchw.shape
    cmid = p["w1"].shape[0]
    cout = p["w3"].shape[0]
    cmid_p = _round_up(cmid, 128)
    has_proj = (cin != cout) or (stride != 1)

    x2d = jnp.transpose(x_nchw, (0, 2, 3, 1)).reshape(n, h * w, cin)  # NHWC, f32

    s1, t1 = _bn_fold(p["bn1_gamma"], p["bn1_beta"], p["bn1_mean"],
                      p["bn1_var"], p["b1"])
    s2, t2 = _bn_fold(p["bn2_gamma"], p["bn2_beta"], p["bn2_mean"],
                      p["bn2_var"], p["b2"])
    s3, t3 = _bn_fold(p["bn3_gamma"], p["bn3_beta"], p["bn3_mean"],
                      p["bn3_var"], p["b3"])

    # bf16 weights for single-pass MXU; channel dims padded to 128 lanes so
    # every conv2 tap is one vreg column block and all stores are lane dense.
    # Padded channels carry exact zeros (weights and bn affine), so they never
    # contribute to downstream matmuls.
    w1p = _pad_cols(p["w1"][:, :, 0, 0].T, cmid_p).astype(jnp.bfloat16)
    w2dp = _grouped_to_dense(p["w2"], groups, cmid_p).astype(jnp.bfloat16)
    w3p = _pad_rows(p["w3"][:, :, 0, 0].T, cmid_p).astype(jnp.bfloat16)
    s1p, t1p = _pad_vec(s1, cmid_p), _pad_vec(t1, cmid_p)
    s2p, t2p = _pad_vec(s2, cmid_p), _pad_vec(t2, cmid_p)

    if has_proj:
        wp = p["wp"][:, :, 0, 0].T.astype(jnp.bfloat16)       # (cin, cout)
        t3b = t3 + p["bp"]                                    # fold proj bias
    else:
        wp, t3b = None, t3

    out2d = bottleneck_pallas(x2d, w1p, s1p, t1p, w2dp, s2p, t2p, w3p, s3, t3b,
                              wp, h=h, w=w, stride=stride, has_proj=has_proj)
    ho = (h - 1) // stride + 1
    wo = (w - 1) // stride + 1
    out = out2d.reshape(n, ho, wo, cout)
    return jnp.transpose(out, (0, 3, 1, 2))                   # back to NCHW


# ---------------------------------------------------------------------------
# Pure-JAX reference (lax.conv). `cast_bf16=True` mirrors the kernel's
# bf16-input / f32-accumulate matmul precision for a tight comparison.
# ---------------------------------------------------------------------------
def bottleneck_reference(x, p, *, stride=1, groups=32, cast_bf16=False):
    cast = (lambda a: a.astype(jnp.bfloat16)) if cast_bf16 else (lambda a: a)
    prec = None if cast_bf16 else lax.Precision.HIGHEST

    def conv(xx, ww, bb, stride=1, padding="VALID", fg=1):
        y = lax.conv_general_dilated(
            cast(xx), cast(ww), (stride, stride), padding,
            dimension_numbers=("NCHW", "OIHW", "NCHW"),
            feature_group_count=fg, precision=prec,
            preferred_element_type=jnp.float32)
        return y + bb.reshape(1, -1, 1, 1)

    def bn(xx, g, b, m, v):
        r = lambda a: a.reshape(1, -1, 1, 1)
        return (xx - r(m)) / jnp.sqrt(r(v) + BN_EPS) * r(g) + r(b)

    out = jax.nn.relu(bn(conv(x, p["w1"], p["b1"]),
                         p["bn1_gamma"], p["bn1_beta"],
                         p["bn1_mean"], p["bn1_var"]))
    out = jax.nn.relu(bn(conv(out, p["w2"], p["b2"], stride=stride,
                              padding=((1, 1), (1, 1)), fg=groups),
                         p["bn2_gamma"], p["bn2_beta"],
                         p["bn2_mean"], p["bn2_var"]))
    out = bn(conv(out, p["w3"], p["b3"]),
             p["bn3_gamma"], p["bn3_beta"], p["bn3_mean"], p["bn3_var"])
    cin, cout = x.shape[1], p["w3"].shape[0]
    if cin != cout or stride != 1:
        residual = conv(x, p["wp"], p["bp"], stride=stride)
    else:
        residual = x
    return jax.nn.relu(out + residual)


if __name__ == "__main__":
    N, CIN, CMID, COUT, H, W = 2, 32, 64, 128, 16, 16
    GROUPS = 32     # Bottleneck.cardinality
    STRIDE = 1      # CIN != COUT -> projection path is exercised

    key = jax.random.PRNGKey(0)
    kx, kp = jax.random.split(key)
    x = jax.random.normal(kx, (N, CIN, H, W), jnp.float32)
    params = init_params(kp, CIN, CMID, COUT, GROUPS)

    fwd = jax.jit(lambda xx: bottleneck_forward(xx, params,
                                                stride=STRIDE, groups=GROUPS))
    out = jax.block_until_ready(fwd(x))

    # Tight check against a precision-matched (bf16 matmul inputs) reference.
    ref_match = jax.block_until_ready(
        bottleneck_reference(x, params, stride=STRIDE, groups=GROUPS,
                             cast_bf16=True))
    # Loose sanity check against the full-f32 semantic reference.
    ref_f32 = jax.block_until_ready(
        bottleneck_reference(x, params, stride=STRIDE, groups=GROUPS,
                             cast_bf16=False))

    assert out.shape == (N, COUT, H // STRIDE, W // STRIDE)
    err_m = float(jnp.max(jnp.abs(out - ref_match)))
    err_f = float(jnp.max(jnp.abs(out - ref_f32)))
    if not jnp.allclose(out, ref_match, rtol=5e-3, atol=5e-3):
        raise AssertionError(
            f"mismatch vs bf16-matched reference, max abs err = {err_m}")
    if not jnp.allclose(out, ref_f32, rtol=5e-2, atol=5e-2):
        raise AssertionError(
            f"mismatch vs f32 reference, max abs err = {err_f}")
    print("KERNEL_OK")
</pallas_src>

<mosaic_0001>
module attributes {stable_mosaic.version = 11 : i64} {
  func.func @kernel(%arg0: i32, %arg1: memref<1x256x32xf32, #tpu.memory_space<vmem>>, %arg2: memref<32x128xbf16, #tpu.memory_space<vmem>>, %arg3: memref<1x128xf32, #tpu.memory_space<vmem>>, %arg4: memref<1x128xf32, #tpu.memory_space<vmem>>, %arg5: memref<1152x128xbf16, #tpu.memory_space<vmem>>, %arg6: memref<1x128xf32, #tpu.memory_space<vmem>>, %arg7: memref<1x128xf32, #tpu.memory_space<vmem>>, %arg8: memref<128x128xbf16, #tpu.memory_space<vmem>>, %arg9: memref<1x128xf32, #tpu.memory_space<vmem>>, %arg10: memref<1x128xf32, #tpu.memory_space<vmem>>, %arg11: memref<32x128xbf16, #tpu.memory_space<vmem>>, %arg12: memref<1x256x128xf32, #tpu.memory_space<vmem>>) attributes {dimension_semantics = [#tpu.dimension_semantics<parallel>], iteration_bounds = array<i64: 2>, scalar_prefetch = 0 : i64, scratch_operands = 0 : i64, tpu.core_type = #tpu.core_type<tc>, window_params = [{transform_indices = @transform_0, window_bounds = array<i64: 1, 256, 32>}, {pipeline_mode = #tpu.pipeline_mode<synchronous>, transform_indices = @transform_1, window_bounds = array<i64: 32, 128>}, {pipeline_mode = #tpu.pipeline_mode<synchronous>, transform_indices = @transform_2, window_bounds = array<i64: 1, 128>}, {pipeline_mode = #tpu.pipeline_mode<synchronous>, transform_indices = @transform_3, window_bounds = array<i64: 1, 128>}, {pipeline_mode = #tpu.pipeline_mode<synchronous>, transform_indices = @transform_4, window_bounds = array<i64: 1152, 128>}, {pipeline_mode = #tpu.pipeline_mode<synchronous>, transform_indices = @transform_5, window_bounds = array<i64: 1, 128>}, {pipeline_mode = #tpu.pipeline_mode<synchronous>, transform_indices = @transform_6, window_bounds = array<i64: 1, 128>}, {pipeline_mode = #tpu.pipeline_mode<synchronous>, transform_indices = @transform_7, window_bounds = array<i64: 128, 128>}, {pipeline_mode = #tpu.pipeline_mode<synchronous>, transform_indices = @transform_8, window_bounds = array<i64: 1, 128>}, {pipeline_mode = #tpu.pipeline_mode<synchronous>, transform_indices = @transform_9, window_bounds = array<i64: 1, 128>}, {pipeline_mode = #tpu.pipeline_mode<synchronous>, transform_indices = @transform_10, window_bounds = array<i64: 32, 128>}, {transform_indices = @transform_11, window_bounds = array<i64: 1, 256, 128>}]} {
    %c0 = arith.constant 0 : index
    %c0_0 = arith.constant 0 : index
    %c0_1 = arith.constant 0 : index
    %0 = vector.load %arg1[%c0, %c0_0, %c0_1] : memref<1x256x32xf32, #tpu.memory_space<vmem>>, vector<1x256x32xf32>
    %1 = vector.shape_cast %0 : vector<1x256x32xf32> to vector<256x32xf32>
    %2 = arith.truncf %1 : vector<256x32xf32> to vector<256x32xbf16>
    %c0_2 = arith.constant 0 : index
    %c0_3 = arith.constant 0 : index
    %3 = vector.load %arg2[%c0_2, %c0_3] : memref<32x128xbf16, #tpu.memory_space<vmem>>, vector<32x128xbf16>
    %cst = arith.constant dense<0.000000e+00> : vector<256x128xf32>
    %4 = tpu.matmul %2, %3, %cst {dimension_numbers = #tpu.dot_dimension_numbers<[1], [0], [0], [1], [0, 0, 1, 1], [], []>} : vector<256x32xbf16>, vector<32x128xbf16>, vector<256x128xf32> -> vector<256x128xf32>
    %c0_4 = arith.constant 0 : index
    %c0_5 = arith.constant 0 : index
    %5 = vector.load %arg3[%c0_4, %c0_5] : memref<1x128xf32, #tpu.memory_space<vmem>>, vector<1x128xf32>
    %6 = vector.broadcast %5 : vector<1x128xf32> to vector<256x128xf32>
    %7 = arith.mulf %4, %6 : vector<256x128xf32>
    %c0_6 = arith.constant 0 : index
    %c0_7 = arith.constant 0 : index
    %8 = vector.load %arg4[%c0_6, %c0_7] : memref<1x128xf32, #tpu.memory_space<vmem>>, vector<1x128xf32>
    %9 = vector.broadcast %8 : vector<1x128xf32> to vector<256x128xf32>
    %10 = arith.addf %7, %9 : vector<256x128xf32>
    %cst_8 = arith.constant 0.000000e+00 : f32
    %11 = vector.broadcast %cst_8 : f32 to vector<256x128xf32>
    %12 = arith.maximumf %10, %11 : vector<256x128xf32>
    %13 = arith.truncf %12 : vector<256x128xf32> to vector<256x128xbf16>
    %14 = tpu.iota {dimensions = array<i32: 0>} : vector<256x128xi32>
    %c16_i32 = arith.constant 16 : i32
    %c0_i32 = arith.constant 0 : i32
    %15 = arith.cmpi eq, %c16_i32, %c0_i32 : i32
    %c1_i32 = arith.constant 1 : i32
    %16 = arith.select %15, %c1_i32, %c16_i32 : i32
    %17 = vector.broadcast %16 : i32 to vector<256x128xi32>
    %18 = arith.remsi %14, %17 : vector<256x128xi32>
    %c0_i32_9 = arith.constant 0 : i32
    %19 = vector.broadcast %c0_i32_9 : i32 to vector<256x128xi32>
    %20 = arith.cmpi ne, %18, %19 : vector<256x128xi32>
    %c0_i32_10 = arith.constant 0 : i32
    %21 = vector.broadcast %c0_i32_10 : i32 to vector<256x128xi32>
    %22 = arith.cmpi slt, %18, %21 : vector<256x128xi32>
    %c0_i32_11 = arith.constant 0 : i32
    %23 = arith.cmpi slt, %16, %c0_i32_11 : i32
    %24 = vector.broadcast %23 : i1 to vector<256x128xi1>
    %25 = vector.broadcast %24 : vector<256x128xi1> to vector<256x128xi1>
    %26 = arith.xori %22, %25 : vector<256x128xi1>
    %27 = arith.andi %26, %20 : vector<256x128xi1>
    %28 = vector.broadcast %16 : i32 to vector<256x128xi32>
    %29 = arith.addi %18, %28 : vector<256x128xi32>
    %30 = arith.select %27, %29, %18 : vector<256x128xi1>, vector<256x128xi32>
    %cst_12 = arith.constant 0.000000e+00 : bf16
    %31 = vector.broadcast %cst_12 : bf16 to vector<256x128xbf16>
    %c0_i32_13 = arith.constant 0 : i32
    %32 = vector.broadcast %c0_i32_13 : i32 to vector<256x128xi32>
    %33 = arith.cmpi ne, %30, %32 : vector<256x128xi32>
    %cst_14 = arith.constant 0.000000e+00 : bf16
    %34 = vector.broadcast %cst_14 : bf16 to vector<1x128xbf16>
    %35 = vector.extract_strided_slice %13 {offsets = [0, 0], sizes = [255, 128], strides = [1, 1]} : vector<256x128xbf16> to vector<255x128xbf16>
    %36 = tpu.concatenate %34, %35 in 0 : vector<1x128xbf16>, vector<255x128xbf16> -> vector<256x128xbf16>
    %37 = arith.select %33, %36, %31 : vector<256x128xi1>, vector<256x128xbf16>
    %c15_i32 = arith.constant 15 : i32
    %38 = vector.broadcast %c15_i32 : i32 to vector<256x128xi32>
    %39 = arith.cmpi ne, %30, %38 : vector<256x128xi32>
    %cst_15 = arith.constant 0.000000e+00 : bf16
    %40 = vector.broadcast %cst_15 : bf16 to vector<1x128xbf16>
    %41 = vector.extract_strided_slice %13 {offsets = [1, 0], sizes = [255, 128], strides = [1, 1]} : vector<256x128xbf16> to vector<255x128xbf16>
    %42 = tpu.concatenate %41, %40 in 0 : vector<255x128xbf16>, vector<1x128xbf16> -> vector<256x128xbf16>
    %43 = arith.select %39, %42, %31 : vector<256x128xi1>, vector<256x128xbf16>
    %cst_16 = arith.constant 0.000000e+00 : bf16
    %44 = vector.broadcast %cst_16 : bf16 to vector<16x128xbf16>
    %45 = vector.extract_strided_slice %37 {offsets = [0, 0], sizes = [240, 128], strides = [1, 1]} : vector<256x128xbf16> to vector<240x128xbf16>
    %46 = tpu.concatenate %44, %45 in 0 : vector<16x128xbf16>, vector<240x128xbf16> -> vector<256x128xbf16>
    %cst_17 = arith.constant 0.000000e+00 : bf16
    %47 = vector.broadcast %cst_17 : bf16 to vector<16x128xbf16>
    %48 = vector.extract_strided_slice %13 {offsets = [0, 0], sizes = [240, 128], strides = [1, 1]} : vector<256x128xbf16> to vector<240x128xbf16>
    %49 = tpu.concatenate %47, %48 in 0 : vector<16x128xbf16>, vector<240x128xbf16> -> vector<256x128xbf16>
    %cst_18 = arith.constant 0.000000e+00 : bf16
    %50 = vector.broadcast %cst_18 : bf16 to vector<16x128xbf16>
    %51 = vector.extract_strided_slice %43 {offsets = [0, 0], sizes = [240, 128], strides = [1, 1]} : vector<256x128xbf16> to vector<240x128xbf16>
    %52 = tpu.concatenate %50, %51 in 0 : vector<16x128xbf16>, vector<240x128xbf16> -> vector<256x128xbf16>
    %cst_19 = arith.constant 0.000000e+00 : bf16
    %53 = vector.broadcast %cst_19 : bf16 to vector<16x128xbf16>
    %54 = vector.extract_strided_slice %37 {offsets = [16, 0], sizes = [240, 128], strides = [1, 1]} : vector<256x128xbf16> to vector<240x128xbf16>
    %55 = tpu.concatenate %54, %53 in 0 : vector<240x128xbf16>, vector<16x128xbf16> -> vector<256x128xbf16>
    %cst_20 = arith.constant 0.000000e+00 : bf16
    %56 = vector.broadcast %cst_20 : bf16 to vector<16x128xbf16>
    %57 = vector.extract_strided_slice %13 {offsets = [16, 0], sizes = [240, 128], strides = [1, 1]} : vector<256x128xbf16> to vector<240x128xbf16>
    %58 = tpu.concatenate %57, %56 in 0 : vector<240x128xbf16>, vector<16x128xbf16> -> vector<256x128xbf16>
    %cst_21 = arith.constant 0.000000e+00 : bf16
    %59 = vector.broadcast %cst_21 : bf16 to vector<16x128xbf16>
    %60 = vector.extract_strided_slice %43 {offsets = [16, 0], sizes = [240, 128], strides = [1, 1]} : vector<256x128xbf16> to vector<240x128xbf16>
    %61 = tpu.concatenate %60, %59 in 0 : vector<240x128xbf16>, vector<16x128xbf16> -> vector<256x128xbf16>
    %62 = tpu.concatenate %46, %49, %52, %37, %13, %43, %55, %58, %61 in 1 : vector<256x128xbf16>, vector<256x128xbf16>, vector<256x128xbf16>, vector<256x128xbf16>, vector<256x128xbf16>, vector<256x128xbf16>, vector<256x128xbf16>, vector<256x128xbf16>, vector<256x128xbf16> -> vector<256x1152xbf16>
    %c0_22 = arith.constant 0 : index
    %c0_23 = arith.constant 0 : index
    %63 = vector.load %arg5[%c0_22, %c0_23] : memref<1152x128xbf16, #tpu.memory_space<vmem>>, vector<1152x128xbf16>
    %cst_24 = arith.constant dense<0.000000e+00> : vector<256x128xf32>
    %64 = tpu.matmul %62, %63, %cst_24 {dimension_numbers = #tpu.dot_dimension_numbers<[1], [0], [0], [1], [0, 0, 1, 1], [], []>} : vector<256x1152xbf16>, vector<1152x128xbf16>, vector<256x128xf32> -> vector<256x128xf32>
    %c0_25 = arith.constant 0 : index
    %c0_26 = arith.constant 0 : index
    %65 = vector.load %arg6[%c0_25, %c0_26] : memref<1x128xf32, #tpu.memory_space<vmem>>, vector<1x128xf32>
    %66 = vector.broadcast %65 : vector<1x128xf32> to vector<256x128xf32>
    %67 = arith.mulf %64, %66 : vector<256x128xf32>
    %c0_27 = arith.constant 0 : index
    %c0_28 = arith.constant 0 : index
    %68 = vector.load %arg7[%c0_27, %c0_28] : memref<1x128xf32, #tpu.memory_space<vmem>>, vector<1x128xf32>
    %69 = vector.broadcast %68 : vector<1x128xf32> to vector<256x128xf32>
    %70 = arith.addf %67, %69 : vector<256x128xf32>
    %cst_29 = arith.constant 0.000000e+00 : f32
    %71 = vector.broadcast %cst_29 : f32 to vector<256x128xf32>
    %72 = arith.maximumf %70, %71 : vector<256x128xf32>
    %73 = arith.truncf %72 : vector<256x128xf32> to vector<256x128xbf16>
    %c0_30 = arith.constant 0 : index
    %c0_31 = arith.constant 0 : index
    %74 = vector.load %arg8[%c0_30, %c0_31] : memref<128x128xbf16, #tpu.memory_space<vmem>>, vector<128x128xbf16>
    %cst_32 = arith.constant dense<0.000000e+00> : vector<256x128xf32>
    %75 = tpu.matmul %73, %74, %cst_32 {dimension_numbers = #tpu.dot_dimension_numbers<[1], [0], [0], [1], [0, 0, 1, 1], [], []>} : vector<256x128xbf16>, vector<128x128xbf16>, vector<256x128xf32> -> vector<256x128xf32>
    %c0_33 = arith.constant 0 : index
    %c0_34 = arith.constant 0 : index
    %76 = vector.load %arg9[%c0_33, %c0_34] : memref<1x128xf32, #tpu.memory_space<vmem>>, vector<1x128xf32>
    %77 = vector.broadcast %76 : vector<1x128xf32> to vector<256x128xf32>
    %78 = arith.mulf %75, %77 : vector<256x128xf32>
    %c0_35 = arith.constant 0 : index
    %c0_36 = arith.constant 0 : index
    %79 = vector.load %arg10[%c0_35, %c0_36] : memref<1x128xf32, #tpu.memory_space<vmem>>, vector<1x128xf32>
    %80 = vector.broadcast %79 : vector<1x128xf32> to vector<256x128xf32>
    %81 = arith.addf %78, %80 : vector<256x128xf32>
    %c0_37 = arith.constant 0 : index
    %c0_38 = arith.constant 0 : index
    %82 = vector.load %arg11[%c0_37, %c0_38] : memref<32x128xbf16, #tpu.memory_space<vmem>>, vector<32x128xbf16>
    %cst_39 = arith.constant dense<0.000000e+00> : vector<256x128xf32>
    %83 = tpu.matmul %2, %82, %cst_39 {dimension_numbers = #tpu.dot_dimension_numbers<[1], [0], [0], [1], [0, 0, 1, 1], [], []>} : vector<256x32xbf16>, vector<32x128xbf16>, vector<256x128xf32> -> vector<256x128xf32>
    %84 = arith.addf %81, %83 : vector<256x128xf32>
    %cst_40 = arith.constant 0.000000e+00 : f32
    %85 = vector.broadcast %cst_40 : f32 to vector<256x128xf32>
    %86 = arith.maximumf %84, %85 : vector<256x128xf32>
    %87 = vector.shape_cast %86 : vector<256x128xf32> to vector<1x256x128xf32>
    %c0_41 = arith.constant 0 : index
    %c0_42 = arith.constant 0 : index
    %c0_43 = arith.constant 0 : index
    %88 = vector.load %arg12[%c0_41, %c0_42, %c0_43] : memref<1x256x128xf32, #tpu.memory_space<vmem>>, vector<1x256x128xf32>
    tpu.vector_store %arg12[%c0_41, %c0_42, %c0_43], %87 {strides = array<i32>} : memref<1x256x128xf32, #tpu.memory_space<vmem>>, vector<1x256x128xf32>,
    return
  }
  func.func @transform_0(%arg0: i32) -> (i32, i32, i32) {
    %c0_i32 = arith.constant 0 : i32
    %c0_i32_0 = arith.constant 0 : i32
    %c0_i32_1 = arith.constant 0 : i32
    return %arg0, %c0_i32, %c0_i32_0 : i32, i32, i32
  }
  func.func @transform_1(%arg0: i32) -> (i32, i32) {
    %c0_i32 = arith.constant 0 : i32
    %c0_i32_0 = arith.constant 0 : i32
    %c0_i32_1 = arith.constant 0 : i32
    return %c0_i32, %c0_i32_0 : i32, i32
  }
  func.func @transform_2(%arg0: i32) -> (i32, i32) {
    %c0_i32 = arith.constant 0 : i32
    %c0_i32_0 = arith.constant 0 : i32
    %c0_i32_1 = arith.constant 0 : i32
    return %c0_i32, %c0_i32_0 : i32, i32
  }
  func.func @transform_3(%arg0: i32) -> (i32, i32) {
    %c0_i32 = arith.constant 0 : i32
    %c0_i32_0 = arith.constant 0 : i32
    %c0_i32_1 = arith.constant 0 : i32
    return %c0_i32, %c0_i32_0 : i32, i32
  }
  func.func @transform_4(%arg0: i32) -> (i32, i32) {
    %c0_i32 = arith.constant 0 : i32
    %c0_i32_0 = arith.constant 0 : i32
    %c0_i32_1 = arith.constant 0 : i32
    return %c0_i32, %c0_i32_0 : i32, i32
  }
  func.func @transform_5(%arg0: i32) -> (i32, i32) {
    %c0_i32 = arith.constant 0 : i32
    %c0_i32_0 = arith.constant 0 : i32
    %c0_i32_1 = arith.constant 0 : i32
    return %c0_i32, %c0_i32_0 : i32, i32
  }
  func.func @transform_6(%arg0: i32) -> (i32, i32) {
    %c0_i32 = arith.constant 0 : i32
    %c0_i32_0 = arith.constant 0 : i32
    %c0_i32_1 = arith.constant 0 : i32
    return %c0_i32, %c0_i32_0 : i32, i32
  }
  func.func @transform_7(%arg0: i32) -> (i32, i32) {
    %c0_i32 = arith.constant 0 : i32
    %c0_i32_0 = arith.constant 0 : i32
    %c0_i32_1 = arith.constant 0 : i32
    return %c0_i32, %c0_i32_0 : i32, i32
  }
  func.func @transform_8(%arg0: i32) -> (i32, i32) {
    %c0_i32 = arith.constant 0 : i32
    %c0_i32_0 = arith.constant 0 : i32
    %c0_i32_1 = arith.constant 0 : i32
    return %c0_i32, %c0_i32_0 : i32, i32
  }
  func.func @transform_9(%arg0: i32) -> (i32, i32) {
    %c0_i32 = arith.constant 0 : i32
    %c0_i32_0 = arith.constant 0 : i32
    %c0_i32_1 = arith.constant 0 : i32
    return %c0_i32, %c0_i32_0 : i32, i32
  }
  func.func @transform_10(%arg0: i32) -> (i32, i32) {
    %c0_i32 = arith.constant 0 : i32
    %c0_i32_0 = arith.constant 0 : i32
    %c0_i32_1 = arith.constant 0 : i32
    return %c0_i32, %c0_i32_0 : i32, i32
  }
  func.func @transform_11(%arg0: i32) -> (i32, i32, i32) {
    %c0_i32 = arith.constant 0 : i32
    %c0_i32_0 = arith.constant 0 : i32
    %c0_i32_1 = arith.constant 0 : i32
    return %arg0, %c0_i32, %c0_i32_0 : i32, i32, i32
  }
}

</mosaic_0001>

<bundles_post_ra>
// kernel: _lambda_.1
= control target key start
LH: loop header
LB: loop body
LE: loop exit
PB: predicated region body
PF: predicated region fallthrough
CT: control target
= control target key end

     0   :  { %s7739_s0 = inlined_call_operand.hbm [shape: f32[2,256,32], index: 0, kind: input, shape index: {}]   ;;  %s7740_s1 = inlined_call_operand.hbm [shape: bf16[32,128], index: 1, kind: input, shape index: {}]   ;;  %s7741_s2 = inlined_call_operand.vmem [shape: f32[1,128], index: 2, kind: input, shape index: {}]   ;;  %s7742_s3 = inlined_call_operand.vmem [shape: f32[1,128], index: 3, kind: input, shape index: {}]   ;;  %s7743_s4 = inlined_call_operand.hbm [shape: bf16[1152,128], index: 4, kind: input, shape index: {}]   ;;  %s7744_s5 = inlined_call_operand.vmem [shape: f32[1,128], index: 5, kind: input, shape index: {}]   ;;  %s7745_s6 = inlined_call_operand.vmem [shape: f32[1,128], index: 6, kind: input, shape index: {}]   ;;  %s7746_s7 = inlined_call_operand.hbm [shape: bf16[128,128], index: 7, kind: input, shape index: {}]   ;;  %s7747_s8 = inlined_call_operand.vmem [shape: f32[1,128], index: 8, kind: input, shape index: {}]   ;;  %s7748_s9 = inlined_call_operand.hbm [shape: f32[1,128], index: 9, kind: input, shape index: {}]   ;;  %s7749_s10 = inlined_call_operand.hbm [shape: bf16[32,128], index: 10, kind: input, shape index: {}]   ;;  %s7750_s11 = inlined_call_operand.hbm [shape: f32[2,256,128], index: 11, kind: output, shape index: {}]  }
   0x1   :  { %7855 = sst [smem:[#allocation64_spill]] %s7740_s1 }
   0x2   :  { %7856 = sst [smem:[#allocation65_spill]] %s7743_s4 }
   0x3   :  { %7857 = sst [smem:[#allocation66_spill]] %s7746_s7 }
   0x4   :  { %7858 = sst [smem:[#allocation67_spill]] %s7748_s9 }
   0x5   :  { %7859 = sst [smem:[#allocation68_spill]] %s7749_s10 }
   0x6   :  { %16 = vsyncpa [#allocation3], 0 }
   0x7   :  { %18 = vsyncpa [#allocation3 + $0x1], 0 }
   0x8   :  { %19 = vsyncpa [#allocation6], 0 }
   0x9   :  { %20 = vsyncpa [#allocation9], 0 }
   0xa   :  { %21 = vsyncpa [#allocation12], 0 }
   0xb   :  { %22 = vsyncpa [#allocation4], 0 }
   0xc   :  { %24 = vsyncpa [#allocation4 + $0x1], 0  ;;  %s5557_s17 = smov 0   ;;  %s5559_s18 = smov 0  }
   0xd   :  { %s5561_s19 = smov 0   ;;  %s5563_s20 = smov 0  }
   0xe LB: > { %s5482_s21 = smov [#allocation5]   ;;  %s5578_s23 = sadd.s32 4294967295, %s5480_s20   ;;  %s5480_s20 = sphi %s5563_s20, %s8236_s20   ;;  %s5476_s19 = sphi %s5561_s19, %s8235_s19   ;;  %s5472_s18 = sphi %s5559_s18, %s8234_s18   ;;  %s5468_s17 = sphi %s5557_s17, %s8233_s17  }
   0xf   : > { %s309_s22 = sshll.u32 %s5482_s21, 4  ;;  %p4081_p0 = scmp.ge.s32.totalorder %s5480_s20, 1  ;;  %s310_s22 = int_to_ptr.vmem [resolvable:$true] %s309_s22 }
  0x10   : > { %p7751_p1 = scmp.eq.s32.totalorder %s5578_s23, 0  ;;  %p297_p2 = scmp.lt.s32.totalorder %s5480_s20, 3 }
  0x11   : > { %s5483_s25 = smov [#allocation8]   ;;  %s5484_s28 = smov [#allocation7]  }
  0x12   : > { %p5583_p3 = pnand %p4081_p0, %p297_p2  ;;  %s347_s26 = sshll.u32 %s5483_s25, 4  ;;  %s5596_s26 = int_to_ptr.vmem [resolvable:$true] %s347_s26 }
  0x13   : > { %s328_s29 = sshll.u32 %s5484_s28, 4  ;;  %s5257_s12 = scalar_lea.vmem %s310_s22, 256  ;;  %s5598_s29 = int_to_ptr.vmem [resolvable:$true] %s328_s29 }
  0x14   : > { %s7860_s24 = scalar_select %p5583_p3, 1, 0 }
  0x15   : > { %p5080_p5 = pneg %p5583_p3  ;;  %p5258_p8 = scmp.ne.s32.totalorder %s310_s22, %s5257_s12 }
  0x16   : > { %p5265_p11 = scmp.lt.s32.totalorder %s310_s22, %s310_s22  ;;  %p5266_p12 = scmp.lt.s32.totalorder %s5257_s12, %s5257_s12 }
  0x17   : > { %p5592_p6 = pnand %p5080_p5, %p7751_p1 }
  0x18   : > { %p5267_p13 = por %p5266_p12, %p5265_p11 }
  0x19   : > { %p5602_p7 = pneg %p5592_p6 }
  0x1b   : > { %p5260_p9 = pnand %p5258_p8, %p5602_p7 }
  0x1d   : > { %p5261_p10 = pneg %p5260_p9 }
  0x1f   : > { %p5268_p0 = pnand %p5267_p13, %p5261_p10 }
  0x21   : > { %5271 = shalt.err (!%p5268_p0)
}
  0x22   : > { %s5485_s13 = smov 64   ;;  %s5486_s14 = smov 4  }
  0x23   : > { %s7863_s1 = sld [smem:[#allocation64_spill]]  ;;  %s5283_s21 = scalar_lea.vmem %s5596_s26, 1024 }
  0x24   : > { %p5284_p2 = scmp.ne.s32.totalorder %s5596_s26, %s5283_s21  ;;  %p5291_p9 = scmp.lt.s32.totalorder %s5596_s26, %s5596_s26 }
  0x25   : > { %p5292_p10 = scmp.lt.s32.totalorder %s5283_s21, %s5283_s21 }
  0x26   : > { %p5286_p5 = pnand %p5284_p2, %p5602_p7 }
  0x27   : > { %p5293_p11 = por %p5292_p10, %p5291_p9 }
  0x28   : > { %p5287_p8 = pneg %p5286_p5 }
  0x29   : > { %5083 = dma.hbm_to_vmem [thread:$0]  (!%p5592_p6), %s7863_s1, 256, %s310_s22, [#allocation6], %s5485_s13, %s5485_s13, %s5486_s14  }
  0x2a   : > { %p5294_p12 = pnand %p5293_p11, %p5287_p8 }
  0x2c   : > { %5297 = shalt.err (!%p5294_p12)
}
  0x2d   : > { %s7864_s7 = sld [smem:[#allocation66_spill]]  ;;  %s5309_s22 = scalar_lea.vmem %s5598_s29, 9216 }
  0x2e   : > { %p5310_p13 = scmp.ne.s32.totalorder %s5598_s29, %s5309_s22  ;;  %p5317_p5 = scmp.lt.s32.totalorder %s5598_s29, %s5598_s29 }
  0x2f   : > { %p5318_p8 = scmp.lt.s32.totalorder %s5309_s22, %s5309_s22 }
  0x30   : > { %p5312_p0 = pnand %p5310_p13, %p5602_p7 }
  0x31   : > { %p5319_p9 = por %p5318_p8, %p5317_p5 }
  0x32   : > { %p5313_p2 = pneg %p5312_p0 }
  0x33   : > { %5089 = dma.hbm_to_vmem [thread:$0]  (!%p5592_p6), %s7864_s7, 1024, %s5596_s26, [#allocation9], %s5485_s13, %s5485_s13, %s5486_s14  }
  0x34   : > { %p5320_p10 = pnand %p5319_p9, %p5313_p2 }
  0x36   : > { %5323 = shalt.err (!%p5320_p10)
}
  0x37   : > { %s7865_s4 = sld [smem:[#allocation65_spill]]  ;;  %s5487_s26 = smov [#allocation10]  }
  0x38   : > { %s364_s16 = sshll.u32 %s5487_s26, 4  ;;  %s5488_s21 = smov [#allocation11]   ;;  %s365_s16 = int_to_ptr.vmem [resolvable:$true] %s364_s16 }
  0x39   : > { %s374_s25 = sshll.u32 %s5488_s21, 4  ;;  %s5335_s28 = scalar_lea.vmem %s365_s16, 16  ;;  %s375_s25 = int_to_ptr.vmem [resolvable:$true] %s374_s25 }
  0x3a   : > { %p5336_p11 = scmp.ne.s32.totalorder %s365_s16, %s5335_s28  ;;  %s5342_s22 = scalar_lea.vmem %s365_s16, 32 }
  0x3b   : > { %p5343_p0 = scmp.lt.s32.totalorder %s365_s16, %s365_s16  ;;  %p5344_p2 = scmp.lt.s32.totalorder %s5342_s22, %s5335_s28 }
  0x3c   : > { %p5338_p12 = pnand %p5336_p11, %p5602_p7 }
  0x3d   : > { %5086 = dma.hbm_to_vmem [thread:$0]  (!%p5592_p6), %s7865_s4, 9216, %s5598_s29, [#allocation6], %s5485_s13, %s5485_s13, %s5486_s14  }
  0x3e   : > { %p5339_p13 = pneg %p5338_p12  ;;  %p5345_p5 = por %p5344_p2, %p5343_p0 }
  0x40   : > { %p5346_p8 = pnand %p5345_p5, %p5339_p13 }
  0x42   : > { %5349 = shalt.err (!%p5346_p8)
}
  0x43   : > { %s7866_s9 = sld [smem:[#allocation67_spill]]  ;;  %s5361_s15 = scalar_lea.vmem %s375_s25, 256 }
  0x44   : > { %p5362_p9 = scmp.ne.s32.totalorder %s375_s25, %s5361_s15  ;;  %p5369_p12 = scmp.lt.s32.totalorder %s375_s25, %s375_s25 }
  0x45   : > { %p5370_p4 = scmp.lt.s32.totalorder %s5361_s15, %s5361_s15 }
  0x46   : > { %p5364_p10 = pnand %p5362_p9, %p5602_p7 }
  0x47   : > { %p5371_p1 = por %p5370_p4, %p5369_p12 }
  0x48   : > { %p5365_p11 = pneg %p5364_p10 }
  0x49   : > { %5092 = dma.hbm_to_vmem [thread:$0]  (!%p5592_p6), %s7866_s9, 16, %s365_s16, [#allocation9]  }
  0x4a   : > { %p5372_p3 = pnand %p5371_p1, %p5365_p11 }
  0x4c   : > { %5375 = shalt.err (!%p5372_p3)
}
  0x4d   : > { %s7867_s10 = sld [smem:[#allocation68_spill]]  ;;  %s4080_s27 = sadd.s32 4294967294, %s5480_s20  }
  0x4e   : > { %s5665_s30 = sadd.s32 1, %s5480_s20   ;;  %s37_s16 = sadd.s32 1, %s5476_s19 }
  0x4f   : > { %s34_s28 = ssub.s32 %s5480_s20, %s5665_s30  ;;  %p44_p1 = scmp.ne.s32.totalorder %s5476_s19, %s5472_s18 }
  0x50   : > { %p35_p3 = scmp.eq.s32.totalorder %s34_s28, 0  ;;  %p45_p4 = scmp.eq.s32.totalorder %s5480_s20, 0 }
  0x51   : > { %p50_p7 = scmp.ne.s32.totalorder %s5472_s18, %s5468_s17  ;;  %p284_p13 = scmp.eq.s32.totalorder %s5578_s23, 1 }
  0x52   : > { %s5677_s22 = scalar_select %p35_p3, %s5476_s19, %s37_s16  }
  0x53   : > { %5095 = dma.hbm_to_vmem [thread:$0]  (!%p5592_p6), %s7867_s10, 256, %s375_s25, [#allocation12], %s5485_s13, %s5485_s13, %s5486_s14  }
  0x54   : > { %p46_p0 = por %p45_p4, %p44_p1  ;;  %p7868_p2 = scmp.eq.s32.totalorder %s5578_s23, 0 }
  0x55   : > { %p5685_p6 = por %p284_p13, %p44_p1  ;;  %p290_p8 = scmp.eq.s32.totalorder %s4080_s27, 1 }
  0x56   : > { %p5681_p5 = por %p7868_p2, %p50_p7  ;;  %p5109_p9 = scmp.lt.s32.totalorder %s5480_s20, 2 }
  0x57   : > { %s7870_s13 = scalar_select %p5685_p6, 1, 0 }
  0x58   : > { %s7869_s12 = scalar_select %p5681_p5, 1, 0 }
  0x59   : > { %s388_s14 = sand.u32 1, %s5476_s19   ;;  %p5691_p10 = por %p290_p8, %p50_p7 }
  0x5a   : > { %s4088_s29 = sshll.u32 %s388_s14, 8  ;;  %s4350_s15 = sshll.u32 %s5480_s20, 12 }
  0x5b   : > { %s7871_s25 = scalar_select %p5691_p10, 1, 0 }
  0x5c   : > { %s5699_s16 = scalar_lea.hbm %s7739_s0, %s4350_s15  ;;  %s392_s28 = scalar_lea.vmem [#allocation2], %s4088_s29 }
  0x5d   : > { %s399_s1 = sshll.u32 %s392_s28, 4  ;;  %p5701_p11 = pnand %p5109_p9, %p46_p0  ;;  %s5705_s1 = int_to_ptr.vmem [resolvable:$true] %s399_s1 }
  0x5e   : > { %s5707_s4 = scalar_lea.sflag [#allocation3], %s388_s14  ;;  %s5376_s7 = scalar_lea.hbm %s5699_s16, 4096 }
  0x5f   : > { %p5377_p12 = scmp.ne.s32.totalorder %s5699_s16, %s5376_s7  ;;  %p5378_p1 = pneg %p5701_p11 }
  0x60   : > { %s5381_s29 = scalar_lea.hbm %s7739_s0, 8192  ;;  %p5382_p7 = scmp.lt.s32.totalorder %s5699_s16, %s7739_s0 }
  0x61   : > { %p5379_p3 = pnand %p5378_p1, %p5377_p12  ;;  %p5383_p13 = scmp.lt.s32.totalorder %s5381_s29, %s5376_s7 }
  0x63   : > { %p5380_p4 = pneg %p5379_p3  ;;  %p5384_p0 = por %p5383_p13, %p5382_p7 }
  0x65   : > { %p5385_p2 = pnand %p5384_p0, %p5380_p4 }
  0x67   : > { %5388 = shalt.err (!%p5385_p2)
}
  0x68   : > { %s5389_s14 = scalar_lea.vmem %s5705_s1, 4096  ;;  %s5489_s9 = smov [#allocation2]  }
  0x69   : > { %p5390_p8 = scmp.ne.s32.totalorder %s5705_s1, %s5389_s14  ;;  %s5394_s10 = sshll.u32 %s5489_s9, 4  ;;  %s5395_s10 = int_to_ptr.vmem [resolvable:$false] %s5394_s10 }
  0x6a   : > { %s5396_s15 = scalar_lea.vmem %s5395_s10, 8192  ;;  %p5397_p3 = scmp.lt.s32.totalorder %s5705_s1, %s5395_s10 }
  0x6b   : > { %p5392_p9 = pnand %p5390_p8, %p5378_p1  ;;  %p5398_p10 = scmp.lt.s32.totalorder %s5396_s15, %s5389_s14 }
  0x6d   : > { %p5393_p12 = pneg %p5392_p9  ;;  %p5399_p6 = por %p5398_p10, %p5397_p3 }
  0x6f   : > { %p5400_p5 = pnand %p5399_p6, %p5393_p12 }
  0x71   : > { %5403 = shalt.err (!%p5400_p5)
}
  0x72   : > { %s5490_s7 = smov 128   ;;  %s5491_s26 = smov 8  }
  0x73   : > { %5099 = dma.hbm_to_vmem [thread:$0]  (!%p5701_p11), %s5699_s16, 4096, %s5705_s1, %s5707_s4, %s5490_s7, %s5490_s7, %s5491_s26  }
  0x74   : > { %p7873_p1 = scmp.ne.s32.totalorder %s7860_s24, 0 }
  0x76   : > { %411 = sbr.rel (%p7873_p1) target bundleno = 1099 (0x44b), region = 64 }
  0x7b   : > { %s5731_s9 = sand.u32 1, %s5472_s18   ;;  %p7874_p5 = scmp.ne.s32.totalorder %s7869_s12, 0 }
  0x7c   : > { %s4092_s10 = sshll.u32 %s5731_s9, 8  ;;  %s414_s29 = scalar_lea.sflag [#allocation3], %s5731_s9 }
  0x7d   : > { %s5737_s21 = scalar_lea.vmem [#allocation2], %s4092_s10 }
  0x7e   : > { %5447 = dma.done.wait (%p7874_p5), %s414_s29, 4096  }
  0x7f   : > { %5449 = vsyncadd (%p7874_p5), %s414_s29, 4294963200  ;;  %p7875_p6 = scmp.eq.s32.totalorder %s5578_s23, 0 }
  0x81   : > { %5451 = dma.done.wait (%p7875_p6), [#allocation6], 9472   ;;  %p7876_p10 = pmov %p7875_p6 }
  0x82   : > { %p7877_p11 = pmov %p7875_p6 }
  0x83   : > { %5453 = vsyncadd (%p7876_p10), [#allocation6], 4294957824 }
  0x84   : > { %5455 = dma.done.wait (%p7877_p11), [#allocation9], 1040   ;;  %p7878_p4 = pmov %p7875_p6 }
  0x86   : > { %5457 = vsyncadd (%p7878_p4), [#allocation9], 4294966256  ;;  %p7879_p7 = pmov %p7878_p4 }
  0x87   : > { %p7880_p13 = pmov %p7878_p4 }
  0x88   : > { %5459 = dma.done.wait (%p7879_p7), [#allocation12], 256  }
  0x89   : > { %5461 = vsyncadd (%p7880_p13), [#allocation12], 4294967040  ;;  %v5161_v0 = vld [vmem:[#allocation5 + $0x8] sm:$0xff]   ;;  %v5162_v1 = vld [vmem:[#allocation5] sm:$0xff]   ;;  %vm7773_vm0 = vcmask 261120   ;;  %vm5493_vm4 = vmmov 1  }
  0x8a   : > { %4884 = vmatprep.subr.bf16.mxu0 %v5161_v0  ;;  %v479_v2 = vld [vmem:[%s5737_s21] sm:$0xff]  ;;  %v480_v3 = vld [vmem:[%s5737_s21 + $0x8] sm:$0xff]  ;;  %v481_v5 = vld [vmem:[%s5737_s21 + $0x10] sm:$0xff]  ;;  %vm7776_vm10 = vsmask.f32 256  ;;  %vm1472_vm11 = vcmask 1040384  }
  0x8b   : > { %4885 = vmatpush3.bf16.msra.mxu0 %v5161_v0  ;;  %v5757_v4 = vpack.c.bf16 %v480_v3, %v479_v2  ;;  %v482_v6 = vld [vmem:[%s5737_s21 + $0x18] sm:$0xff]  ;;  %v483_v7 = vld [vmem:[%s5737_s21 + $0x20] sm:$0xff]  ;;  %v484_v8 = vld [vmem:[%s5737_s21 + $0x28] sm:$0xff]  ;;  %s7577_s26 = scalar_lea.vmem [#allocation13], %s4092_s10  ;;  %s4351_s10 = sshll.u32 %s5578_s23, 12 }
  0x8c   : > { %4886 = vmatprep.subr.bf16.mxu0 %v5162_v1  ;;  %v5765_v9 = vpack.c.bf16 %v482_v6, %v481_v5  ;;  %v5767_v10 = vpack.c.bf16 %v484_v8, %v483_v7  ;;  %v485_v11 = vld [vmem:[%s5737_s21 + $0x30] sm:$0xff]  ;;  %v486_v12 = vld [vmem:[%s5737_s21 + $0x38] sm:$0xff]  ;;  %v487_v13 = vld [vmem:[%s5737_s21 + $0x40] sm:$0xff]  ;;  %s3959_s29 = sshll.u32 %s7577_s26, 4  ;;  %s7692_s4 = scalar_lea.hbm %s7750_s11, %s4351_s10  ;;  %s7694_s29 = int_to_ptr.vmem [resolvable:$true] %s3959_s29 }
  0x8d   : > { %7881 = vst [vmem:[#allocation19_spill] sm:$0xff] %v5757_v4  ;;  %4888 = vmatprep.mubr.msk.bf16.mxu0 %vm7773_vm0, %v5757_v4  ;;  %v488_v14 = vld [vmem:[%s5737_s21 + $0x48] sm:$0xff]  ;;  %v5777_v16 = vpack.c.bf16 %v486_v12, %v485_v11  ;;  %v5165_v19 = vld [vmem:[#allocation7 + $0x70] sm:$0xff]   ;;  %v489_v21 = vld [vmem:[%s5737_s21 + $0x50] sm:$0xff]  ;;  %s3946_s23 = scalar_lea.sflag [#allocation4], %s5731_s9  ;;  %s5404_s24 = scalar_lea.vmem %s7694_s29, 4096 }
  0x8e   : > { %7882 = vst [vmem:[#allocation20_spill] sm:$0xff] %v5765_v9  ;;  %7883 = vst [vmem:[#allocation21_spill] sm:$0xff] %v5767_v10  ;;  %v5163_v15 = vld [vmem:[#allocation7 + $0x78] sm:$0xff]   ;;  %v5779_v18 = vpack.c.bf16 %v488_v14, %v487_v13  ;;  %v5166_v20 = vld [vmem:[#allocation7 + $0x30] sm:$0xff]   ;;  %p5405_p0 = scmp.ne.s32.totalorder %s7694_s29, %s5404_s24  ;;  %p8230_p2 = scmp.ne.s32.totalorder %s7870_s13, 0 }
  0x8f   : > { %4887 = vmatpush3.bf16.msra.mxu0 %v5162_v1  ;;  %7884 = vst [vmem:[#allocation22_spill] sm:$0xff] %v5777_v16  ;;  %v5164_v17 = vld [vmem:[#allocation7 + $0x38] sm:$0xff]   ;;  %4370 = vmatprep.subr.bf16.mxu1 %v5163_v15  ;;  %v490_v22 = vld [vmem:[%s5737_s21 + $0x58] sm:$0xff]  ;;  %v491_v24 = vld [vmem:[%s5737_s21 + $0x60] sm:$0xff]  ;;  %v7757_v15 = vmov 0   ;;  %s5494_s12 = smov [#allocation13]  }
  0x90   : > { %7885 = vst [vmem:[#allocation23_spill] sm:$0xff] %v5779_v18  ;;  %4371 = vmatpush3.bf16.msra.mxu1 %v5164_v17  ;;  %v5167_v23 = vld [vmem:[#allocation7 + $0x68] sm:$0xff]   ;;  %v492_v25 = vld [vmem:[%s5737_s21 + $0x68] sm:$0xff]  ;;  %v5169_v27 = vld [vmem:[#allocation7 + $0x60] sm:$0xff]   ;;  %v5789_v29 = vpack.c.bf16 %v490_v22, %v489_v21  ;;  %2470 = vmatprep.mubr.bf16.mxu1 %v7757_v15  ;;  %p5406_p8 = pnand %p5405_p0, %p8230_p2  ;;  %s5408_s16 = sshll.u32 %s5494_s12, 4  ;;  %s5409_s16 = int_to_ptr.vmem [resolvable:$false] %s5408_s16 }
  0x91   : > { %4372 = vmatprep.subr.bf16.mxu1 %v5165_v19  ;;  %v5168_v26 = vld [vmem:[#allocation7 + $0x28] sm:$0xff]   ;;  %v5171_v28 = vld [vmem:[#allocation7 + $0xf8] sm:$0xff]   ;;  %v5170_v30 = vld [vmem:[#allocation7 + $0x20] sm:$0xff]   ;;  %v5791_v31 = vpack.c.bf16 %v492_v25, %v491_v24  ;;  %s5410_s27 = scalar_lea.vmem %s5409_s16, 8192  ;;  %p5411_p12 = scmp.lt.s32.totalorder %s7694_s29, %s5409_s16 }
  0x92   : > { %4889 = vmatmul.mubr.msk.bf16.vlgmr.msra.gmra.mxu0 %vm7773_vm0, %v5765_v9  ;;  %7886 = vst [vmem:[#allocation24_spill] sm:$0xff] %v5789_v29  ;;  %4482 = vmatprep.subr.bf16.mxu0 %v5171_v28  ;;  %v5173_v32 = vld [vmem:[#allocation7 + $0xb8] sm:$0xff]   ;;  %v493_v34 = vld [vmem:[%s5737_s21 + $0x70] sm:$0xff]  ;;  %v494_v35 = vld [vmem:[%s5737_s21 + $0x78] sm:$0xff]  ;;  %p5407_p9 = pneg %p5406_p8  ;;  %p5412_p3 = scmp.lt.s32.totalorder %s5410_s27, %s5404_s24 }
  0x93   : > { %4892 = vmatprep.mubr.msk.bf16.mxu0 %vm7773_vm0, %v5767_v10  ;;  %7887 = vst [vmem:[#allocation25_spill] sm:$0xff] %v5791_v31  ;;  %v5172_v33 = vld [vmem:[#allocation7 + $0x58] sm:$0xff]   ;;  %4483 = vmatpush3.bf16.msra.mxu0 %v5173_v32  ;;  %v5175_v36 = vld [vmem:[#allocation7 + $0xf0] sm:$0xff]   ;;  %v5179_v42 = vld [vmem:[#allocation7 + $0xe8] sm:$0xff]   ;;  %v5801_v43 = vpack.c.bf16 %v494_v35, %v493_v34 }
  0x94   : > { %4373 = vmatpush3.bf16.msra.mxu1 %v5166_v20  ;;  %v495_v37 = vld [vmem:[%s5737_s21 + $0x80] sm:$0xff]  ;;  %v496_v38 = vld [vmem:[%s5737_s21 + $0x88] sm:$0xff]  ;;  %4484 = vmatprep.subr.bf16.mxu0 %v5175_v36  ;;  %v497_v46 = vld [vmem:[%s5737_s21 + $0x90] sm:$0xff]  ;;  %p5413_p1 = por %p5412_p3, %p5411_p12 }
  0x95   : > { %4374 = vmatprep.subr.bf16.mxu1 %v5167_v23  ;;  %v5174_v39 = vld [vmem:[#allocation7 + $0x18] sm:$0xff]   ;;  %v5177_v40 = vld [vmem:[#allocation7 + $0xb0] sm:$0xff]   ;;  %7888 = vst [vmem:[#allocation26_spill] sm:$0xff] %v5801_v43  ;;  %v5803_v45 = vpack.c.bf16 %v496_v38, %v495_v37  ;;  %v498_v47 = vld [vmem:[%s5737_s21 + $0x98] sm:$0xff] }
  0x96   : > { %v5176_v41 = vld [vmem:[#allocation7 + $0x50] sm:$0xff]   ;;  %v500_v49 = vld [vmem:[%s5737_s21 + $0xa8] sm:$0xff]  ;;  %v5813_v50 = vpack.c.bf16 %v498_v47, %v497_v46  ;;  %v501_v52 = vld [vmem:[%s5737_s21 + $0xb0] sm:$0xff]  ;;  %p5414_p5 = pnand %p5413_p1, %p5407_p9 }
  0x97   : > { %4485 = vmatpush3.bf16.msra.mxu0 %v5177_v40  ;;  %v5178_v44 = vld [vmem:[#allocation7 + $0x10] sm:$0xff]   ;;  %7889 = vst [vmem:[#allocation27_spill] sm:$0xff] %v5803_v45  ;;  %v502_v53 = vld [vmem:[%s5737_s21 + $0xb8] sm:$0xff]  ;;  %v504_v55 = vld [vmem:[%s5737_s21 + $0xc8] sm:$0xff] }
  0x98   : > { %4375 = vmatpush3.bf16.msra.mxu1 %v5168_v26  ;;  %4486 = vmatprep.subr.bf16.mxu0 %v5179_v42  ;;  %v499_v48 = vld [vmem:[%s5737_s21 + $0xa0] sm:$0xff]  ;;  %7890 = vst [vmem:[#allocation28_spill] sm:$0xff] %v5813_v50  ;;  %v5825_v56 = vpack.c.bf16 %v502_v53, %v501_v52  ;;  %v505_v58 = vld [vmem:[%s5737_s21 + $0xd0] sm:$0xff]  ;;  %v506_v59 = vld [vmem:[%s5737_s21 + $0xd8] sm:$0xff] }
  0x99   : > { %4376 = vmatprep.subr.bf16.mxu1 %v5169_v27  ;;  %v5815_v51 = vpack.c.bf16 %v500_v49, %v499_v48  ;;  %v503_v54 = vld [vmem:[%s5737_s21 + $0xc0] sm:$0xff]  ;;  %v508_v61 = vld [vmem:[%s5737_s21 + $0xe8] sm:$0xff]  ;;  %v5837_v62 = vpack.c.bf16 %v506_v59, %v505_v58  ;;  %v509_v0 = vld [vmem:[%s5737_s21 + $0xf0] sm:$0xff] }
  0x9a   : > { %4893 = vmatmul.mubr.msk.bf16.gmra.mxu0 %vm7773_vm0, %v5777_v16  ;;  %7892 = vst [vmem:[#allocation30_spill] sm:$0xff] %v5825_v56  ;;  %v5827_v57 = vpack.c.bf16 %v504_v55, %v503_v54  ;;  %v507_v60 = vld [vmem:[%s5737_s21 + $0xe0] sm:$0xff]  ;;  %v510_v1 = vld [vmem:[%s5737_s21 + $0xf8] sm:$0xff]  ;;  %v5183_v7 = vld [vmem:[#allocation7 + $0xe0] sm:$0xff]  }
  0x9b   : > { %4896 = vmatprep.mubr.msk.bf16.mxu0 %vm7773_vm0, %v5779_v18  ;;  %7891 = vst [vmem:[#allocation29_spill] sm:$0xff] %v5815_v51  ;;  %7894 = vst [vmem:[#allocation32_spill] sm:$0xff] %v5837_v62  ;;  %v5839_v63 = vpack.c.bf16 %v508_v61, %v507_v60  ;;  %v5847_v2 = vpack.c.bf16 %v510_v1, %v509_v0  ;;  %v5180_v3 = vld [vmem:[#allocation7 + $0x48] sm:$0xff]   ;;  %v5184_v8 = vld [vmem:[#allocation7 + $0x40] sm:$0xff]  }
  0x9c   : > { %4377 = vmatpush3.bf16.msra.mxu1 %v5170_v30  ;;  %7893 = vst [vmem:[#allocation31_spill] sm:$0xff] %v5827_v57  ;;  %v5181_v5 = vld [vmem:[#allocation7 + $0xa8] sm:$0xff]   ;;  %v5185_v11 = vld [vmem:[#allocation7 + $0xa0] sm:$0xff]   ;;  %v5187_v13 = vld [vmem:[#allocation7 + $0xd8] sm:$0xff]  }
  0x9d   : > { %4378 = vmatprep.subr.bf16.mxu1 %v5172_v33  ;;  %7895 = vst [vmem:[#allocation33_spill] sm:$0xff] %v5839_v63  ;;  %7896 = vst [vmem:[#allocation34_spill] sm:$0xff] %v5847_v2  ;;  %v5182_v6 = vld [vmem:[#allocation7 + $0x8] sm:$0xff]   ;;  %4487 = vmatpush3.bf16.msra.mxu0 %v5181_v5  ;;  %v5186_v12 = vld [vmem:[#allocation7] sm:$0xff]  }
  0x9e   : > { %4488 = vmatprep.subr.bf16.mxu0 %v5183_v7  ;;  %v5188_v14 = vld [vmem:[#allocation7 + $0x98] sm:$0xff]   ;;  %v5189_v17 = vld [vmem:[#allocation7 + $0xd0] sm:$0xff]   ;;  %v5193_v20 = vld [vmem:[#allocation7 + $0xc8] sm:$0xff]  }
  0x9f   : > { %v5190_v19 = vld [vmem:[#allocation7 + $0x90] sm:$0xff]   ;;  %v5194_v21 = vld [vmem:[#allocation7 + $0x88] sm:$0xff]   ;;  %v5195_v22 = vld [vmem:[#allocation7 + $0xc0] sm:$0xff]  }
  0xa0   : > { %4379 = vmatpush3.bf16.msra.mxu1 %v5174_v39  ;;  %v5196_v23 = vld [vmem:[#allocation7 + $0x80] sm:$0xff]   ;;  %v5191_v24 = vld [vmem:[#allocation7 + $0x178] sm:$0xff]   ;;  %v5197_v26 = vld [vmem:[#allocation7 + $0x170] sm:$0xff]  }
  0xa1   : > { %4380 = vmatprep.subr.bf16.mxu1 %v5176_v41  ;;  %4489 = vmatpush3.bf16.msra.mxu0 %v5185_v11  ;;  %v5192_v25 = vld [vmem:[#allocation7 + $0x138] sm:$0xff]   ;;  %v5198_v27 = vld [vmem:[#allocation7 + $0x130] sm:$0xff]   ;;  %v5199_v28 = vld [vmem:[#allocation7 + $0x168] sm:$0xff]   ;;  %v879_v41 = vlaneseq }
  0xa2   : > { %4897 = vmatmul.mubr.msk.bf16.gmra.mxu0 %vm7773_vm0, %v5789_v29  ;;  %4490 = vmatprep.subr.bf16.mxu0 %v5187_v13  ;;  %v5200_v30 = vld [vmem:[#allocation7 + $0x128] sm:$0xff]   ;;  %v5201_v32 = vld [vmem:[#allocation7 + $0x160] sm:$0xff]   ;;  %v5203_v34 = vld [vmem:[#allocation7 + $0x1f8] sm:$0xff]  }
  0xa3   : > { %4900 = vmatprep.mubr.msk.bf16.mxu0 %vm7773_vm0, %v5791_v31  ;;  %v5202_v33 = vld [vmem:[#allocation7 + $0x120] sm:$0xff]   ;;  %v5205_v35 = vld [vmem:[#allocation7 + $0x158] sm:$0xff]   ;;  %v5209_v37 = vld [vmem:[#allocation7 + $0x150] sm:$0xff]   ;;  %v5853_v42 = vshrl.u32 %v879_v41, 7 }
  0xa4   : > { %4381 = vmatpush3.bf16.msra.mxu1 %v5178_v44  ;;  %v5206_v36 = vld [vmem:[#allocation7 + $0x118] sm:$0xff]   ;;  %v5210_v38 = vld [vmem:[#allocation7 + $0x110] sm:$0xff]   ;;  %v5213_v39 = vld [vmem:[#allocation7 + $0x148] sm:$0xff]  }
  0xa5   : > { %4382 = vmatprep.subr.bf16.mxu1 %v5180_v3  ;;  %4491 = vmatpush3.bf16.msra.mxu0 %v5188_v14  ;;  %v5214_v40 = vld [vmem:[#allocation7 + $0x108] sm:$0xff]   ;;  %7897 = vst [vmem:[#allocation35_spill] sm:$0xff] %v5853_v42  ;;  %v882_v44 = vadd.s32 16, %v5853_v42  ;;  %v5217_v46 = vld [vmem:[#allocation7 + $0x140] sm:$0xff]   ;;  %v916_v47 = vand.u32 15, %v5853_v42  ;;  %v881_v55 = vadd.s32 8, %v5853_v42  ;;  %vm1476_vm5 = vmpackc.low %vm5493_vm4, %vm5493_vm4 }
  0xa6   : > { %4492 = vmatprep.subr.bf16.mxu0 %v5189_v17  ;;  %v5860_v49 = vld [vmem:[%s7741_s2] ss:$0 sm:$0xff]  ;;  %v5218_v53 = vld [vmem:[#allocation7 + $0x100] sm:$0xff]   ;;  %v884_v0 = vadd.s32 32, %v5853_v42  ;;  %v5889_v11 = vsel %vm1476_vm5, 65537, %v7757_v15  ;;  %v885_v59 = vadd.s32 40, %v5853_v42 }
  0xa7   : > { %v930_v48 = vand.u32 15, %v882_v44  ;;  %vm5862_vm1 = vcmp.ne.s32.totalorder %v916_v47, 0  ;;  %v5878_v60 = vld [vmem:[%s7742_s3] ss:$0 sm:$0xff]  ;;  %v923_v5 = vand.u32 15, %v881_v55  ;;  %v5234_v55 = vld [vmem:[#allocation7 + $0x200] sm:$0xff]  }
  0xa8   : > { %4383 = vmatpush3.bf16.msra.mxu1 %v5182_v6  ;;  %vm1475_vm2 = vmpackc.low %vm5862_vm1, %vm5862_vm1  ;;  %v944_v14 = vand.u32 15, %v884_v0  ;;  %vm7780_vm4 = vsmask.f32 7424 }
  0xa9   : > { %4384 = vmatprep.subr.bf16.mxu1 %v5184_v8  ;;  %4493 = vmatpush3.bf16.msra.mxu0 %v5190_v19  ;;  %vm5871_vm3 = vcmp.ne.s32.totalorder %v930_v48, 0  ;;  %v1507_v8 = vsel %vm1475_vm2, 65537, %v7757_v15  ;;  %vm5896_vm7 = vcmp.ne.s32.totalorder %v923_v5, 15  ;;  %vm5962_vm2 = vmand %vm1472_vm11, %vm7776_vm10 }
  0xaa   : > { %4901 = vmatmul.mubr.msk.bf16.gmra.mxu0 %vm7773_vm0, %v5801_v43  ;;  %4494 = vmatprep.subr.bf16.mxu0 %v5193_v20  ;;  %vm1477_vm6 = vmpackc.low %vm5871_vm3, %vm5871_vm3  ;;  %vm5904_vm8 = vcmp.ne.s32.totalorder %v944_v14, 0 }
  0xab   : > { %4904 = vmatprep.mubr.msk.bf16.mxu0 %vm7773_vm0, %v5803_v45  ;;  %v1509_v20 = vsel %vm1477_vm6, 65537, %v7757_v15  ;;  %vm1719_vm9 = vmpackc.low %vm5896_vm7, %vm5896_vm7 }
  0xac   : > { %4385 = vmatpush3.bf16.msra.mxu1 %v5186_v12  ;;  %vm1479_vm13 = vmpackc.low %vm5904_vm8, %vm5904_vm8 }
  0xad   : > { %4495 = vmatpush3.bf16.msra.mxu0 %v5194_v21  ;;  %4594 = vmatprep.subr.bf16.mxu1 %v5191_v24  ;;  %v883_v24 = vadd.s32 24, %v5853_v42 }
  0xae   : > { %4496 = vmatprep.subr.bf16.mxu0 %v5195_v22  ;;  %v4119_v22 = vcombine.low %v1507_v8, %v5889_v11  ;;  %v5946_v8 = vsel %vm1479_vm13, 65537, %v7757_v15 }
  0xaf   : > { %2471 = vmatmul.mubr.bf16.vlgmr.msra.gmra.mxu1 %v7757_v15  ;;  %v937_v44 = vand.u32 15, %v883_v24  ;;  %v951_v24 = vand.u32 15, %v885_v59 }
  0xb0   : > { %4595 = vmatpush3.bf16.msra.mxu1 %v5192_v25  ;;  %vm5915_vm12 = vcmp.ne.s16.totalorder %v4119_v22, 0 }
  0xb1   : > { %4497 = vmatpush3.bf16.msra.mxu0 %v5196_v23  ;;  %4596 = vmatprep.subr.bf16.mxu1 %v5197_v26  ;;  %vm5948_vm15 = vcmp.ne.s32.totalorder %v937_v44, 15  ;;  %v889_v44 = vadd.s32 72, %v5853_v42  ;;  %vm5993_vm5 = vcmp.ne.s32.totalorder %v951_v24, 15 }
  0xb2   : > { %4905 = vmatmul.mubr.msk.bf16.gmra.mxu0 %vm7773_vm0, %v5813_v50  ;;  %4706 = vmatprep.subr.bf16.mxu0 %v5203_v34  ;;  %v4120_v34 = vcombine.low %v1509_v20, %v5889_v11  ;;  %vm1721_vm3 = vmpackc.low %vm5948_vm15, %vm5948_vm15 }
  0xb3   : > { %4908 = vmatprep.mubr.msk.bf16.mxu0 %vm7773_vm0, %v5815_v51  ;;  %vm1723_vm8 = vmpackc.low %vm5993_vm5, %vm5993_vm5 }
  0xb4   : > { %4597 = vmatpush3.bf16.msra.mxu1 %v5198_v27  ;;  %vm5927_vm14 = vcmp.ne.s16.totalorder %v4120_v34, 0 }
  0xb5   : > { %4598 = vmatprep.subr.bf16.mxu1 %v5199_v28  ;;  %v886_v28 = vadd.s32 48, %v5853_v42 }
  0xb7   : > { %v958_v52 = vand.u32 15, %v886_v28 }
  0xb8   : > { %4599 = vmatpush3.bf16.msra.mxu1 %v5200_v30  ;;  %v5223_v30 = vld [vmem:[#allocation7 + $0x238] sm:$0xff]  }
  0xb9   : > { %4600 = vmatprep.subr.bf16.mxu1 %v5201_v32  ;;  %vm5955_vm1 = vcmp.ne.s32.totalorder %v958_v52, 0 }
  0xba   : > { %4909 = vmatmul.mubr.msk.bf16.gmra.mxu0 %vm7773_vm0, %v5825_v56  ;;  %vm1481_vm6 = vmpackc.low %vm5955_vm1, %vm5955_vm1 }
  0xbb   : > { %4912 = vmatprep.mubr.msk.bf16.mxu0 %vm7773_vm0, %v5827_v57 }
  0xbc   : > { %4601 = vmatpush3.bf16.msra.mxu1 %v5202_v33 }
  0xbd   : > { %4602 = vmatprep.subr.bf16.mxu1 %v5205_v35 }
  0xc0   : > { %4603 = vmatpush3.bf16.msra.mxu1 %v5206_v36 }
  0xc1   : > { %4604 = vmatprep.subr.bf16.mxu1 %v5209_v37 }
  0xc2   : > { %4913 = vmatmul.mubr.msk.bf16.gmra.mxu0 %vm7773_vm0, %v5837_v62 }
  0xc3   : > { %4916 = vmatprep.mubr.msk.bf16.mxu0 %vm7773_vm0, %v5839_v63 }
  0xc4   : > { %4605 = vmatpush3.bf16.msra.mxu1 %v5210_v38 }
  0xc5   : > { %4606 = vmatprep.subr.bf16.mxu1 %v5213_v39 }
  0xc8   : > { %4607 = vmatpush3.bf16.msra.mxu1 %v5214_v40 }
  0xc9   : > { %4608 = vmatprep.subr.bf16.mxu1 %v5217_v46 }
  0xca   : > { %4917 = vmatmul.mubr.msk.bf16.gmra.mxu0 %vm7773_vm0, %v5847_v2 }
  0xcc   : > { %4609 = vmatpush3.bf16.msra.mxu1 %v5218_v53 }
  0xcd   : > { %4920 = vmatprep.subr.bf16.mxu1 %v5223_v30  ;;  %v890_v30 = vadd.s32 80, %v5853_v42 }
 0x152   : > { %v4890_v54 = vpop.f32.mrf.mxu0 }
 0x153   : > { %v762_v58 = vmul.f32 %v4890_v54, %v5860_v49 }
 0x154   : > { %v626_v61 = vpop.f32.mrf.mxu0 }
 0x155   : > { %v760_v1 = vmul.f32 %v5860_v49, %v626_v61  ;;  %v801_v6 = vadd.f32 %v5878_v60, %v762_v58  ;;  %v5932_v58 = vsel %vm1719_vm9, 65537, %v7757_v15 }
 0x156   : > { %v4891_v3 = vpop.f32.mrf.mxu0 }
 0x157   : > { %v763_v7 = vmul.f32 %v4891_v3, %v5860_v49  ;;  %v799_v12 = vadd.f32 %v5878_v60, %v760_v1  ;;  %v833_v25 = vmax.f32 %v801_v6, 0.0  ;;  %v888_v3 = vadd.s32 64, %v5853_v42 }
 0x158   : > { %v629_v13 = vpop.f32.mrf.mxu0 }
 0x159   : > { %v802_v17 = vadd.f32 %v5878_v60, %v763_v7  ;;  %v761_v19 = vmul.f32 %v5860_v49, %v629_v13  ;;  %v831_v32 = vmax.f32 %v799_v12, 0.0  ;;  %v972_v28 = vand.u32 15, %v888_v3 }
 0x15a   : > { %v4894_v21 = vpop.f32.mrf.mxu0 }
 0x15b   : > { %v834_v26 = vmax.f32 %v802_v17, 0.0  ;;  %v800_v27 = vadd.f32 %v5878_v60, %v761_v19  ;;  %v766_v38 = vmul.f32 %v4894_v21, %v5860_v49  ;;  %vm6016_vm7 = vcmp.ne.s32.totalorder %v972_v28, 0 }
 0x15c   : > { %v642_v33 = vpop.f32.mrf.mxu0  ;;  %vm1483_vm9 = vmpackc.low %vm6016_vm7, %vm6016_vm7 }
 0x15d   : > { %v5908_v36 = vpack.c.bf16 %v834_v26, %v833_v25  ;;  %v832_v37 = vmax.f32 %v800_v27, 0.0  ;;  %v764_v39 = vmul.f32 %v5860_v49, %v642_v33  ;;  %v805_v61 = vadd.f32 %v5878_v60, %v766_v38 }
 0x15e   : > { %v4895_v40 = vpop.f32.mrf.mxu0  ;;  %v887_v25 = vadd.s32 56, %v5853_v42 }
 0x15f   : > { %v5919_v46 = vpack.c.bf16 %v832_v37, %v831_v32  ;;  %v803_v47 = vadd.f32 %v5878_v60, %v764_v39  ;;  %v767_v48 = vmul.f32 %v4895_v40, %v5860_v49  ;;  %v1337_v54 = vshrl.u32 %v5908_v36, 16 }
 0x160   : > { %v645_v53 = vpop.f32.mrf.mxu0  ;;  %v1340_v23 = vshll.u32 %v5908_v36, 16  ;;  %v837_v26 = vmax.f32 %v805_v61, 0.0  ;;  %v4135_v39 = vcombine.low %v5889_v11, %v5932_v58  ;;  %v4121_v40 = vcombine.low %v5946_v8, %v5889_v11  ;;  %v5207_v61 = vld [vmem:[#allocation7 + $0x1f0] sm:$0xff]  }
 0x161   : > { %v765_v0 = vmul.f32 %v5860_v49, %v645_v53  ;;  %2478 = vmatprep.mubr.bf16.mxu1 %v5919_v46  ;;  %v1330_v1 = vshrl.u32 %v5919_v46, 16  ;;  %v806_v5 = vadd.f32 %v5878_v60, %v767_v48  ;;  %v5943_v7 = vrot.slane %v1337_v54, 7 }
 0x162   : > { %v4898_v6 = vpop.f32.mrf.mxu0  ;;  %v835_v13 = vmax.f32 %v803_v47, 0.0  ;;  %v1333_v21 = vshll.u32 %v5919_v46, 16  ;;  %v5204_v47 = vld [vmem:[#allocation7 + $0x1b8] sm:$0xff]   ;;  %v5991_v53 = vsel %vm1721_vm3, 65537, %v7757_v15  ;;  %v965_v59 = vand.u32 15, %v887_v25 }
 0x163   : > { %v804_v14 = vadd.f32 %v5878_v60, %v765_v0  ;;  %v1332_v17 = vrot.slane %v1330_v1, 7  ;;  %v838_v32 = vmax.f32 %v806_v5, 0.0  ;;  %v1342_v37 = vor.u32 %v1340_v23, %v5943_v7 }
 0x164   : > { %v658_v20 = vpop.f32.mrf.mxu0  ;;  %v1652_v3 = vrot.slane %v1333_v21, 1  ;;  %v986_v8 = vand.u32 15, %v890_v30  ;;  %v4136_v24 = vcombine.low %v5889_v11, %v5991_v53  ;;  %v979_v25 = vand.u32 15, %v889_v44 }
 0x165   : > { %v836_v27 = vmax.f32 %v804_v14, 0.0  ;;  %v768_v33 = vmul.f32 %v5860_v49, %v658_v20  ;;  %v1335_v35 = vor.u32 %v1333_v21, %v1332_v17  ;;  %v6006_v12 = vpack.c.bf16 %v838_v32, %v837_v26 }
 0x166   : > { %v4899_v34 = vpop.f32.mrf.mxu0  ;;  %v6014_v41 = vsel %vm7776_vm10, %v1332_v17, %v1342_v37  ;;  %v5208_v17 = vld [vmem:[#allocation7 + $0x1b0] sm:$0xff]   ;;  %v770_v26 = vmul.f32 %v4898_v6, %v5860_v49  ;;  %v6039_v32 = vsel %vm1481_vm6, 65537, %v7757_v15  ;;  %v1653_v6 = vor.u32 %v1652_v3, %v1330_v1 }
 0x167   : > { %v5976_v38 = vpack.c.bf16 %v836_v27, %v835_v13  ;;  %v1474_v52 = vsel %vm5962_vm2, 0, %v1335_v35  ;;  %v807_v13 = vadd.f32 %v5878_v60, %v768_v33  ;;  %v771_v27 = vmul.f32 %v4899_v34, %v5860_v49  ;;  %v5211_v33 = vld [vmem:[#allocation7 + $0x1e8] sm:$0xff]   ;;  %v5219_v34 = vld [vmem:[#allocation7 + $0x1d8] sm:$0xff]  }
 0x168   : > { %v661_v48 = vpop.f32.mrf.mxu0  ;;  %4223 = vmatmul.mubr.msk.bf16.gmra.mxu1 %vm5915_vm12, %v1474_v52  ;;  %4238 = vmatprep.mubr.msk.bf16.mxu0 %vm5915_vm12, %v1474_v52  ;;  %vm6049_vm11 = vcmp.ne.s32.totalorder %v965_v59, 15  ;;  %vm6053_vm12 = vcmp.ne.s32.totalorder %v986_v8, 0  ;;  %v892_v35 = vadd.s32 96, %v5853_v42  ;;  %v1654_v52 = vrot.slane %v1340_v23, 1 }
 0x169   : > { %v769_v0 = vmul.f32 %v5860_v49, %v661_v48  ;;  %v7756_v5 = vshrl.u32 %v5976_v38, 16  ;;  %2486 = vmatprep.mubr.bf16.mxu1 %v5908_v36  ;;  %2632 = vmatmul.mubr.bf16.vlgmr.msra.gmra.mxu0 %v7757_v15  ;;  %v1348_v30 = vshll.u32 %v5976_v38, 16  ;;  %v839_v37 = vmax.f32 %v807_v13, 0.0  ;;  %vm1725_vm2 = vmpackc.low %vm6049_vm11, %vm6049_vm11 }
 0x16a   : > { %v6011_v14 = vpop.f32.mrf.mxu0  ;;  %4239 = vmatprep.mubr.msk.bf16.mxu0 %vm5927_vm14, %v6014_v41  ;;  %4707 = vmatpush3.bf16.msra.mxu0 %v5204_v47  ;;  %v7755_v48 = vshrl.u32 %v6006_v12, 16  ;;  %vm6064_vm13 = vcmp.ne.s16.totalorder %v4135_v39, 0  ;;  %vm6068_vm15 = vcmp.ne.s16.totalorder %v4121_v40, 0  ;;  %vm6072_vm1 = vcmp.ne.s32.totalorder %v979_v25, 15  ;;  %v5215_v40 = vld [vmem:[#allocation7 + $0x1e0] sm:$0xff]   ;;  %vm1485_vm3 = vmpackc.low %vm6053_vm12, %vm6053_vm12 }
 0x16b   : > { %v808_v21 = vadd.f32 %v5878_v60, %v769_v0  ;;  %v6026_v22 = vrot.slane %v7756_v5, 7  ;;  %4708 = vmatprep.subr.bf16.mxu0 %v5207_v61  ;;  %v5212_v0 = vld [vmem:[#allocation7 + $0x1a8] sm:$0xff]   ;;  %v809_v3 = vadd.f32 %v5878_v60, %v770_v26  ;;  %v810_v8 = vadd.f32 %v5878_v60, %v771_v27  ;;  %vm1727_vm6 = vmpackc.low %vm6072_vm1, %vm6072_vm1 }
 0x16c   : > { %v674_v28 = vpop.f32.mrf.mxu0  ;;  %v1755_v23 = vsel %vm1723_vm8, 65537, %v7757_v15  ;;  %v1515_v39 = vsel %vm1483_vm9, 65537, %v7757_v15  ;;  %v6097_v58 = vsel %vm7780_vm4, %v1653_v6, %v1654_v52  ;;  %v1000_v20 = vand.u32 15, %v892_v35  ;;  %v5216_v35 = vld [vmem:[#allocation7 + $0x1a0] sm:$0xff]  }
 0x16d   : > { %v840_v44 = vmax.f32 %v808_v21, 0.0  ;;  %v1350_v1 = vor.u32 %v1348_v30, %v6026_v22  ;;  %v4122_v21 = vcombine.low %v6039_v32, %v5889_v11  ;;  %vm6114_vm5 = vcmp.ne.s16.totalorder %v4136_v24, 0 }
 0x16e   : > { %v6058_v47 = vpop.f32.mrf.mxu0  ;;  %4709 = vmatpush3.bf16.msra.mxu0 %v5208_v17  ;;  %v6120_v32 = vrot.slane %v7755_v48, 7  ;;  %v4137_v24 = vcombine.low %v5889_v11, %v1755_v23  ;;  %v6137_v6 = vsel %vm1725_vm2, 65537, %v7757_v15  ;;  %v6148_v23 = vsel %vm1485_vm3, 65537, %v7757_v15 }
 0x16f   : > { %4710 = vmatprep.subr.bf16.mxu0 %v5211_v33  ;;  %v6104_v25 = vpack.c.bf16 %v840_v44, %v839_v37  ;;  %v6112_v17 = vsel %vm7776_vm10, %v5943_v7, %v1350_v1  ;;  %v4123_v33 = vcombine.low %v1515_v39, %v5889_v11  ;;  %v841_v37 = vmax.f32 %v809_v3, 0.0 }
 0x170   : > { %v677_v13 = vpop.f32.mrf.mxu0  ;;  %4224 = vmatmul.mubr.msk.bf16.gmra.mxu1 %vm5927_vm14, %v6014_v41  ;;  %v842_v44 = vmax.f32 %v810_v8, 0.0  ;;  %v7759_v1 = vshll.u32 %v6006_v12, 16  ;;  %v1657_v39 = vrot.slane %v1348_v30, 1  ;;  %v6157_v3 = vsel %vm1727_vm6, 65537, %v7757_v15  ;;  %v5224_v8 = vld [vmem:[#allocation7 + $0x1c8] sm:$0xff]  }
 0x171   : > { %2494 = vmatprep.mubr.bf16.mxu1 %v5976_v38  ;;  %4240 = vmatmul.mubr.msk.bf16.gmra.mxu0 %vm6064_vm13, %v6097_v58  ;;  %vm6159_vm7 = vcmp.ne.s32.totalorder %v1000_v20, 0  ;;  %v772_v19 = vmul.f32 %v5860_v49, %v674_v28  ;;  %v1656_v61 = vor.u32 %v1654_v52, %v1337_v54  ;;  %vm6171_vm8 = vcmp.ne.s16.totalorder %v4122_v21, 0 }
 0x172   : > { %v4906_v27 = vpop.f32.mrf.mxu0  ;;  %4241 = vmatprep.mubr.msk.bf16.mxu0 %vm6068_vm15, %v6112_v17  ;;  %4711 = vmatpush3.bf16.msra.mxu0 %v5212_v0  ;;  %v1358_v30 = vor.u32 %v7759_v1, %v6120_v32  ;;  %vm6176_vm9 = vcmp.ne.s16.totalorder %v4137_v24, 0  ;;  %v6180_v15 = vpack.c.bf16 %v842_v44, %v841_v37  ;;  %vm6184_vm11 = vcmp.ne.s16.totalorder %v4123_v33, 0  ;;  %vm1487_vm12 = vmpackc.low %vm6159_vm7, %vm6159_vm7  ;;  %v5221_v24 = vld [vmem:[#allocation7 + $0x1d0] sm:$0xff]  }
 0x173   : > { %v778_v7 = vmul.f32 %v4906_v27, %v5860_v49  ;;  %4712 = vmatprep.subr.bf16.mxu0 %v5215_v40  ;;  %v773_v40 = vmul.f32 %v5860_v49, %v677_v13  ;;  %v5220_v13 = vld [vmem:[#allocation7 + $0x198] sm:$0xff]   ;;  %v4138_v54 = vcombine.low %v5889_v11, %v6137_v6  ;;  %v4124_v52 = vcombine.low %v6148_v23, %v5889_v11 }
 0x174   : > { %v6140_v48 = vpop.f32.mrf.mxu0  ;;  %v6201_v33 = vsel %vm7780_vm4, %v1656_v61, %v1657_v39  ;;  %v891_v37 = vadd.s32 88, %v5853_v42  ;;  %v811_v44 = vadd.f32 %v5878_v60, %v772_v19  ;;  %v774_v21 = vmul.f32 %v6011_v14, %v5860_v49 }
 0x175   : > { %v817_v0 = vadd.f32 %v5878_v60, %v778_v7  ;;  %v7938_v7 = vmov 0  ;;  %v812_v23 = vadd.f32 %v5878_v60, %v773_v40  ;;  %v7943_v63 = vshrl.u32 %v5976_v38, 16 }
 0x176   : > { %v4907_v27 = vpop.f32.mrf.mxu0  ;;  %4713 = vmatpush3.bf16.msra.mxu0 %v5216_v35  ;;  %v7939_v7 = vsel %vm6184_vm11, 4294967295, %v7938_v7  ;;  %v843_v14 = vmax.f32 %v811_v44, 0.0  ;;  %v993_v50 = vand.u32 15, %v891_v37  ;;  %v7944_v9 = vshll.u32 %v6006_v12, 16 }
 0x177   : > { %v779_v20 = vmul.f32 %v4907_v27, %v5860_v49  ;;  %4714 = vmatprep.subr.bf16.mxu0 %v5219_v34  ;;  %v849_v6 = vmax.f32 %v817_v0, 0.0  ;;  %v6213_v34 = vsel %vm7776_vm10, %v6026_v22, %v1358_v30  ;;  %v7940_v0 = vshrl.u32 %v6104_v25, 16 }
 0x178   : > { %v6182_v1 = vpop.f32.mrf.mxu0  ;;  %4225 = vmatmul.mubr.msk.bf16.gmra.mxu1 %vm6068_vm15, %v6112_v17  ;;  %v6232_v30 = vadd.s32 112, %v5853_v42  ;;  %v1659_v62 = vor.u32 %v1657_v39, %v7943_v63  ;;  %v844_v56 = vmax.f32 %v812_v23, 0.0  ;;  %v1660_v45 = vrot.slane %v7944_v9, 1  ;;  %v5225_v39 = vld [vmem:[#allocation7 + $0x188] sm:$0xff]  }
 0x179   : > { %v818_v35 = vadd.f32 %v5878_v60, %v779_v20  ;;  %2502 = vmatprep.mubr.bf16.mxu1 %v6006_v12  ;;  %4242 = vmatmul.mubr.msk.bf16.gmra.mxu0 %vm6114_vm5, %v6201_v33  ;;  %v6217_v27 = vrot.slane %v7940_v0, 7  ;;  %v7941_v20 = vmov 0   ;;  %v5222_v0 = vld [vmem:[#allocation7 + $0x190] sm:$0xff]   ;;  %vm6249_vm1 = vcmp.ne.s16.totalorder %v4138_v54, 0 }
 0x17a   : > { %v4910_v61 = vpop.f32.mrf.mxu0  ;;  %4243 = vmatprep.mubr.msk.bf16.mxu0 %vm6171_vm8, %v6213_v34  ;;  %v6229_v22 = vsel %vm1487_vm12, 65537, %v7941_v20  ;;  %4715 = vmatpush3.bf16.msra.mxu0 %v5220_v13  ;;  %v813_v44 = vadd.f32 %v5878_v60, %v774_v21  ;;  %v7947_v23 = vshrl.u32 %v6180_v15, 16  ;;  %vm6263_vm2 = vcmp.ne.s16.totalorder %v4124_v52, 0 }
 0x17b   : > { %v850_v19 = vmax.f32 %v818_v35, 0.0  ;;  %v782_v40 = vmul.f32 %v4910_v61, %v5860_v49  ;;  %v775_v35 = vmul.f32 %v6058_v47, %v5860_v49  ;;  %v1364_v61 = vshll.u32 %v6104_v25, 16  ;;  %4716 = vmatprep.subr.bf16.mxu0 %v5221_v24 }
 0x17c   : > { %v706_v4 = vpop.f32.mrf.mxu0  ;;  %v6261_v9 = vrot.slane %v7947_v23, 7  ;;  %v7948_v54 = vmov 0  ;;  %v6272_v21 = vsel %vm7780_vm4, %v1659_v62, %v1660_v45  ;;  %v7775_v62 = vshll.u32 %v6180_v15, 16 }
 0x17d   : > { %v6240_v2 = vpack.c.bf16 %v850_v19, %v849_v6  ;;  %v821_v13 = vadd.f32 %v5878_v60, %v782_v40  ;;  %v780_v57 = vmul.f32 %v5860_v49, %v706_v4  ;;  %v1366_v47 = vor.u32 %v1364_v61, %v6217_v27  ;;  %v5226_v19 = vld [vmem:[#allocation7 + $0x1c0] sm:$0xff]  }
 0x17e   : > { %v4911_v51 = vpop.f32.mrf.mxu0  ;;  %v4125_v4 = vcombine.low %v6229_v22, %v5889_v11  ;;  %4717 = vmatpush3.bf16.msra.mxu0 %v5222_v0  ;;  %v814_v37 = vadd.f32 %v5878_v60, %v775_v35  ;;  %v7949_v54 = vsel %vm6263_vm2, 4294967295, %v7948_v54  ;;  %v6276_v0 = vpack.c.bf16 %v844_v56, %v843_v14 }
 0x17f   : > { %7942 = vst [vmem:[#allocation36_spill] sm:$0xff] %v6240_v2  ;;  %v819_v6 = vadd.f32 %v5878_v60, %v780_v57  ;;  %v783_v63 = vmul.f32 %v4911_v51, %v5860_v49  ;;  %7950 = vst [vmem:[#allocation37_spill] sm:$0xff] %v7949_v54  ;;  %v1014_v51 = vand.u32 15, %v6232_v30  ;;  %4718 = vmatprep.subr.bf16.mxu0 %v5224_v8  ;;  %v853_v40 = vmax.f32 %v821_v13, 0.0 }
 0x180   : > { %v709_v57 = vpop.f32.mrf.mxu0  ;;  %4226 = vmatmul.mubr.msk.bf16.gmra.mxu1 %vm6171_vm8, %v6213_v34  ;;  %v6284_v30 = vsel %vm7776_vm10, %v6120_v32, %v1366_v47  ;;  %vm6287_vm3 = vcmp.ne.s32.totalorder %v993_v50, 15  ;;  %v5227_v32 = vld [vmem:[#allocation7 + $0x180] sm:$0xff]   ;;  %v845_v47 = vmax.f32 %v813_v44, 0.0  ;;  %v846_v23 = vmax.f32 %v814_v37, 0.0 }
 0x181   : > { %v822_v22 = vadd.f32 %v5878_v60, %v783_v63  ;;  %v781_v52 = vmul.f32 %v5860_v49, %v709_v57  ;;  %2510 = vmatprep.mubr.bf16.mxu1 %v6104_v25  ;;  %4244 = vmatmul.mubr.msk.bf16.gmra.mxu0 %vm6176_vm9, %v6272_v21  ;;  %v851_v56 = vmax.f32 %v819_v6, 0.0  ;;  %v1663_v57 = vrot.slane %v1364_v61, 1  ;;  %vm1729_vm0 = vmpackc.low %vm6287_vm3, %vm6287_vm3 }
 0x182   : > { %v4914_v8 = vpop.f32.mrf.mxu0  ;;  %4245 = vmatprep.mubr.msk.bf16.mxu0 %vm6184_vm11, %v6284_v30  ;;  %4719 = vmatpush3.bf16.msra.mxu0 %v5225_v39  ;;  %v1374_v50 = vor.u32 %v7775_v62, %v6261_v9  ;;  %v776_v39 = vmul.f32 %v5860_v49, %v6140_v48  ;;  %v777_v44 = vmul.f32 %v5860_v49, %v6182_v1  ;;  %v7954_v61 = vshrl.u32 %v6006_v12, 16 }
 0x183   : > { %v854_v13 = vmax.f32 %v822_v22, 0.0  ;;  %v820_v14 = vadd.f32 %v5878_v60, %v781_v52  ;;  %v786_v63 = vmul.f32 %v4914_v8, %v5860_v49  ;;  %4720 = vmatprep.subr.bf16.mxu0 %v5226_v19  ;;  %v7774_v52 = vshrl.u32 %v6276_v0, 16 }
 0x184   : > { %v722_v43 = vpop.f32.mrf.mxu0  ;;  %v1662_v37 = vor.u32 %v1660_v45, %v7954_v61  ;;  %vm6319_vm7 = vcmp.ne.s32.totalorder %v1014_v51, 0  ;;  %v6325_v1 = vpack.c.bf16 %v846_v23, %v845_v47  ;;  %vm6330_vm12 = vcmp.ne.s16.totalorder %v4125_v4, 0 }
 0x185   : > { %v6299_v31 = vpack.c.bf16 %v854_v13, %v853_v40  ;;  %v852_v29 = vmax.f32 %v820_v14, 0.0  ;;  %v825_v6 = vadd.f32 %v5878_v60, %v786_v63  ;;  %v784_v22 = vmul.f32 %v5860_v49, %v722_v43 }
 0x186   : > { %v4915_v8 = vpop.f32.mrf.mxu0  ;;  %v7956_v40 = vcombine.low %v5889_v11, %v6157_v3  ;;  %4721 = vmatpush3.bf16.msra.mxu0 %v5227_v32  ;;  %7961 = vst [vmem:[#allocation40_spill] sm:$0xff] %v6325_v1  ;;  %v7962_v3 = vmov 0  ;;  %v893_v51 = vadd.s32 104, %v5853_v42  ;;  %v896_v14 = vadd.s32 128, %v5853_v42 }
 0x187   : > { %7953 = vst [vmem:[#allocation38_spill] sm:$0xff] %v6299_v31  ;;  %v6310_v19 = vpack.c.bf16 %v852_v29, %v851_v56  ;;  %v823_v48 = vadd.f32 %v5878_v60, %v784_v22  ;;  %v787_v45 = vmul.f32 %v4915_v8, %v5860_v49  ;;  %v6328_v29 = vsel %vm7780_vm4, %v1662_v37, %v1663_v57 }
 0x188   : > { %vm6315_vm6 = vcmp.ne.s16.totalorder %v7956_v40, 0  ;;  %v7963_v3 = vsel %vm6330_vm12, 4294967295, %v7962_v3  ;;  %v725_v56 = vpop.f32.mrf.mxu0  ;;  %4227 = vmatmul.mubr.msk.bf16.gmra.mxu1 %vm6184_vm11, %v6284_v30  ;;  %v6341_v63 = vsel %vm7776_vm10, %v6217_v27, %v1374_v50  ;;  %v857_v4 = vmax.f32 %v825_v6, 0.0  ;;  %vm1489_vm10 = vmpackc.low %vm6319_vm7, %vm6319_vm7 }
 0x189   : > { %7955 = vst [vmem:[#allocation39_spill] sm:$0xff] %v6310_v19  ;;  %7964 = vst [vmem:[#allocation41_spill] sm:$0xff] %v7963_v3  ;;  %v826_v32 = vadd.f32 %v5878_v60, %v787_v45  ;;  %v785_v47 = vmul.f32 %v5860_v49, %v725_v56  ;;  %v815_v23 = vadd.f32 %v5878_v60, %v776_v39  ;;  %2518 = vmatprep.mubr.bf16.mxu1 %v6180_v15 }
 0x18a   : > { %v816_v22 = vadd.f32 %v5878_v60, %v777_v44  ;;  %4246 = vmatmul.mubr.msk.bf16.gmra.mxu0 %vm6249_vm1, %v6328_v29  ;;  %v6356_v27 = vrot.slane %v7774_v52, 7  ;;  %v1380_v50 = vshll.u32 %v6276_v0, 16  ;;  %v4918_v6 = vpop.f32.mrf.mxu0  ;;  %v855_v39 = vmax.f32 %v823_v48, 0.0 }
 0x18b   : > { %4247 = vmatprep.mubr.msk.bf16.mxu0 %vm6263_vm2, %v6341_v63  ;;  %v858_v61 = vmax.f32 %v826_v32, 0.0  ;;  %v824_v44 = vadd.f32 %v5878_v60, %v785_v47  ;;  %v790_v37 = vmul.f32 %v4918_v6, %v5860_v49  ;;  %v7965_v8 = vshrl.u32 %v6104_v25, 16 }
 0x18c   : > { %v1761_v45 = vsel %vm1729_vm0, 65537, %v7941_v20  ;;  %v1007_v56 = vand.u32 15, %v893_v51  ;;  %v1028_v52 = vand.u32 15, %v896_v14  ;;  %v738_v62 = vpop.f32.mrf.mxu0  ;;  %v847_v6 = vmax.f32 %v815_v23, 0.0 }
 0x18d   : > { %v1665_v40 = vor.u32 %v1663_v57, %v7965_v8  ;;  %v6375_v48 = vpack.c.bf16 %v858_v61, %v857_v4  ;;  %v856_v32 = vmax.f32 %v824_v44, 0.0  ;;  %v829_v47 = vadd.f32 %v5878_v60, %v790_v37 }
 0x18e   : > { %v788_v57 = vmul.f32 %v5860_v49, %v738_v62  ;;  %v848_v8 = vmax.f32 %v816_v22, 0.0  ;;  %v1382_v35 = vor.u32 %v1380_v50, %v6356_v27  ;;  %v7779_v18 = vshrl.u32 %v6325_v1, 16  ;;  %v4919_v51 = vpop.f32.mrf.mxu0 }
 0x18f   : > { %v7966_v14 = vshll.u32 %v6180_v15, 16  ;;  %v6383_v43 = vpack.c.bf16 %v856_v32, %v855_v39  ;;  %v791_v61 = vmul.f32 %v4919_v51, %v5860_v49  ;;  %v4140_v44 = vcombine.low %v5889_v11, %v1761_v45 }
 0x190   : > { %v827_v4 = vadd.f32 %v5878_v60, %v788_v57  ;;  %v1521_v62 = vsel %vm1489_vm10, 65537, %v7941_v20  ;;  %vm6389_vm0 = vcmp.ne.s32.totalorder %v1007_v56, 15  ;;  %v895_v22 = vadd.s32 120, %v5853_v42  ;;  %v741_v37 = vpop.f32.mrf.mxu0  ;;  %4228 = vmatmul.mubr.msk.bf16.gmra.mxu1 %vm6263_vm2, %v6341_v63 }
 0x191   : > { %v1666_v16 = vrot.slane %v7966_v14, 1  ;;  %v861_v32 = vmax.f32 %v829_v47, 0.0  ;;  %v830_v57 = vadd.f32 %v5878_v60, %v791_v61  ;;  %v789_v45 = vmul.f32 %v5860_v49, %v741_v37  ;;  %2526 = vmatprep.mubr.bf16.mxu1 %v6276_v0  ;;  %vm1731_vm7 = vmpackc.low %vm6389_vm0, %vm6389_vm0 }
 0x192   : > { %v6402_v51 = vpack.c.bf16 %v848_v8, %v847_v6  ;;  %vm7970_vm10 = vsmask.f32 256  ;;  %vm6416_vm3 = vcmp.ne.s32.totalorder %v1028_v52, 0  ;;  %v898_v49 = vadd.s32 144, %v5853_v42 }
 0x193   : > { %v6398_v39 = vsel %vm7780_vm4, %v1665_v40, %v1666_v16  ;;  %v6410_v56 = vsel %vm7970_vm10, %v6261_v9, %v1382_v35  ;;  %v6414_v40 = vrot.slane %v7779_v18, 7  ;;  %v859_v6 = vmax.f32 %v827_v4, 0.0  ;;  %vm1491_vm10 = vmpackc.low %vm6416_vm3, %vm6416_vm3 }
 0x194   : > { %7969 = vst [vmem:[#allocation42_spill] sm:$0xff] %v6402_v51  ;;  %4248 = vmatmul.mubr.msk.bf16.gmra.mxu0 %vm6315_vm6, %v6398_v39  ;;  %7971 = vst [vmem:[#allocation43_spill] sm:$0xff] %v6410_v56  ;;  %v862_v8 = vmax.f32 %v830_v57, 0.0  ;;  %v828_v14 = vadd.f32 %v5878_v60, %v789_v45  ;;  %v1388_v9 = vshll.u32 %v6325_v1, 16  ;;  %v4126_v35 = vcombine.low %v1521_v62, %v5889_v11 }
 0x195   : > { %4249 = vmatprep.mubr.msk.bf16.mxu0 %vm6330_vm12, %v6410_v56  ;;  %v1021_v52 = vand.u32 15, %v895_v22  ;;  %v7974_v61 = vshrl.u32 %v6180_v15, 16  ;;  %v1669_v18 = vrot.slane %v1380_v50, 1  ;;  %v7783_v62 = vshrl.u32 %v6402_v51, 16 }
 0x196   : > { %v6435_v4 = vpack.c.bf16 %v862_v8, %v861_v32  ;;  %v860_v60 = vmax.f32 %v828_v14, 0.0  ;;  %v1390_v57 = vor.u32 %v1388_v9, %v6414_v40  ;;  %vm6439_vm4 = vcmp.ne.s16.totalorder %v4140_v44, 0 }
 0x197   : > { %v1668_v37 = vor.u32 %v1666_v16, %v7974_v61  ;;  %v7975_v23 = vmov 0  ;;  %v1042_v22 = vand.u32 15, %v898_v49  ;;  %vm6446_vm0 = vcmp.ne.s16.totalorder %v4126_v35, 0 }
 0x198   : > { %v7976_v23 = vsel %vm6439_vm4, 4294967295, %v7975_v23  ;;  %v6443_v45 = vpack.c.bf16 %v860_v60, %v859_v6  ;;  %v7782_v16 = vshll.u32 %v6435_v4, 16  ;;  %v7978_v50 = vmov 0  ;;  %4229 = vmatmul.mubr.msk.bf16.gmra.mxu1 %vm6330_vm12, %v6410_v56 }
 0x199   : > { %v7979_v50 = vsel %vm6446_vm0, 4294967295, %v7978_v50  ;;  %v1763_v32 = vsel %vm1731_vm7, 65537, %v7941_v20  ;;  %v1523_v47 = vsel %vm1491_vm10, 65537, %v7941_v20  ;;  %vm7981_vm3 = vsmask.f32 7424  ;;  %2534 = vmatprep.mubr.bf16.mxu1 %v6325_v1 }
 0x19a   : > { %7977 = vst [vmem:[#allocation44_spill] sm:$0xff] %v6443_v45  ;;  %7980 = vst [vmem:[#allocation45_spill] sm:$0xff] %v7979_v50  ;;  %v6456_v44 = vsel %vm7981_vm3, %v1668_v37, %v1669_v18  ;;  %vm6458_vm2 = vcmp.ne.s32.totalorder %v1021_v52, 15  ;;  %v7788_v6 = vshrl.u32 %v6435_v4, 16  ;;  %v6465_v8 = vrot.slane %v7782_v16, 1  ;;  %v4386_v37 = vpop.f32.mrf.mxu1 }
 0x19b   : > { %vm7984_vm7 = vsmask.f32 256  ;;  %v1395_v35 = vrot.slane %v7783_v62, 7  ;;  %v1396_v52 = vshll.u32 %v6402_v51, 16  ;;  %v897_v61 = vadd.s32 136, %v5853_v42  ;;  %vm1733_vm3 = vmpackc.low %vm6458_vm2, %vm6458_vm2 }
 0x19c   : > { %4250 = vmatmul.mubr.msk.bf16.gmra.mxu0 %vm6439_vm4, %v6456_v44  ;;  %v6473_v14 = vsel %vm7984_vm7, %v6356_v27, %v1390_v57  ;;  %v4141_v60 = vcombine.low %v5889_v11, %v1763_v32  ;;  %vm6483_vm10 = vcmp.ne.s32.totalorder %v1042_v22, 0  ;;  %v900_v27 = vadd.s32 160, %v5853_v42  ;;  %v4387_v22 = vpop.f32.mrf.mxu1 }
 0x19d   : > { %7985 = vst [vmem:[#allocation46_spill] sm:$0xff] %v6473_v14  ;;  %4251 = vmatprep.mubr.msk.bf16.mxu0 %vm6446_vm0, %v6473_v14  ;;  %v6491_v57 = vor.u32 %v6465_v8, %v7788_v6  ;;  %v4127_v62 = vcombine.low %v1523_v47, %v5889_v11  ;;  %v7989_v10 = vshrl.u32 %v6276_v0, 16  ;;  %v1398_v32 = vor.u32 %v1396_v52, %v1395_v35  ;;  %vm1493_vm7 = vmpackc.low %vm6483_vm10, %vm6483_vm10 }
 0x19e   : > { %v7791_v56 = vshrl.u32 %v6240_v2, 16  ;;  %v1035_v54 = vand.u32 15, %v897_v61  ;;  %v6503_v6 = vadd.f32 %v4387_v22, %v4386_v37  ;;  %vm6505_vm12 = vcmp.ne.s16.totalorder %v4141_v60, 0 }
 0x19f   : > { %7988 = vst [vmem:[#allocation47_spill] sm:$0xff] %v6491_v57  ;;  %v1671_v3 = vor.u32 %v1669_v18, %v7989_v10  ;;  %v1672_v57 = vrot.slane %v1388_v9, 1  ;;  %v7991_v47 = vmov 0  ;;  %v1056_v10 = vand.u32 15, %v900_v27 }
 0x1a0   : > { %7990 = vst [vmem:[#allocation48_spill] sm:$0xff] %v6503_v6  ;;  %v7992_v47 = vsel %vm6505_vm12, 4294967295, %v7991_v47  ;;  %vm6509_vm11 = vcmp.ne.s16.totalorder %v4127_v62, 0  ;;  %v7993_v18 = vmov 0  ;;  %v1765_v49 = vsel %vm1733_vm3, 65537, %v7941_v20  ;;  %4230 = vmatmul.mubr.msk.bf16.gmra.mxu1 %vm6446_vm0, %v6473_v14 }
 0x1a1   : > { %v7994_v18 = vsel %vm6509_vm11, 4294967295, %v7993_v18  ;;  %vm7996_vm2 = vsmask.f32 7424  ;;  %v1525_v9 = vsel %vm1493_vm7, 65537, %v7941_v20  ;;  %v899_v61 = vadd.s32 152, %v5853_v42  ;;  %2542 = vmatprep.mubr.bf16.mxu1 %v6402_v51 }
 0x1a2   : > { %7995 = vst [vmem:[#allocation49_spill] sm:$0xff] %v7994_v18  ;;  %v6518_v16 = vsel %vm7996_vm2, %v1671_v3, %v1672_v57  ;;  %vm7997_vm10 = vsmask.f32 256  ;;  %v1403_v37 = vrot.slane %v7791_v56, 7  ;;  %vm6532_vm3 = vcmp.ne.s32.totalorder %v1035_v54, 15 }
 0x1a3   : > { %v6528_v62 = vsel %vm7997_vm10, %v6414_v40, %v1398_v32  ;;  %v4142_v60 = vcombine.low %v5889_v11, %v1765_v49  ;;  %vm6540_vm7 = vcmp.ne.s32.totalorder %v1056_v10, 0  ;;  %v902_v40 = vadd.s32 176, %v5853_v42  ;;  %vm1735_vm2 = vmpackc.low %vm6532_vm3, %vm6532_vm3 }
 0x1a4   : > { %4252 = vmatmul.mubr.msk.bf16.gmra.mxu0 %vm6505_vm12, %v6518_v16  ;;  %7998 = vst [vmem:[#allocation50_spill] sm:$0xff] %v6528_v62  ;;  %v1404_v22 = vshll.u32 %v6240_v2, 16  ;;  %v4128_v32 = vcombine.low %v1525_v9, %v5889_v11  ;;  %v8003_v54 = vshrl.u32 %v6325_v1, 16  ;;  %v1675_v6 = vrot.slane %v1396_v52, 1  ;;  %vm1495_vm10 = vmpackc.low %vm6540_vm7, %vm6540_vm7 }
 0x1a5   : > { %4253 = vmatprep.mubr.msk.bf16.mxu0 %vm6509_vm11, %v6528_v62  ;;  %v1049_v50 = vand.u32 15, %v899_v61  ;;  %v7797_v10 = vshrl.u32 %v6310_v19, 16  ;;  %vm6556_vm0 = vcmp.ne.s16.totalorder %v4142_v60, 0  ;;  %v8004_v14 = vmov 0 }
 0x1a6   : > { %v1674_v56 = vor.u32 %v1672_v57, %v8003_v54  ;;  %v1406_v49 = vor.u32 %v1404_v22, %v1403_v37  ;;  %v8005_v14 = vsel %vm6556_vm0, 4294967295, %v8004_v14  ;;  %v1070_v9 = vand.u32 15, %v902_v40 }
 0x1a7   : > { %8006 = vst [vmem:[#allocation51_spill] sm:$0xff] %v8005_v14  ;;  %vm6560_vm12 = vcmp.ne.s16.totalorder %v4128_v32, 0  ;;  %v8007_v57 = vmov 0  ;;  %v1767_v52 = vsel %vm1735_vm2, 65537, %v7941_v20  ;;  %vm8010_vm3 = vsmask.f32 7424 }
 0x1a8   : > { %v8008_v57 = vsel %vm6560_vm12, 4294967295, %v8007_v57  ;;  %4231 = vmatmul.mubr.msk.bf16.gmra.mxu1 %vm6509_vm11, %v6528_v62  ;;  %v6569_v61 = vsel %vm8010_vm3, %v1674_v56, %v1675_v6  ;;  %v1527_v3 = vsel %vm1495_vm10, 65537, %v7941_v20  ;;  %vm6572_vm7 = vcmp.ne.s32.totalorder %v1049_v50, 15 }
 0x1a9   : > { %8009 = vst [vmem:[#allocation52_spill] sm:$0xff] %v8008_v57  ;;  %2550 = vmatprep.mubr.bf16.mxu1 %v6240_v2  ;;  %vm8013_vm2 = vsmask.f32 256  ;;  %v1411_v40 = vrot.slane %v7797_v10, 7  ;;  %v1412_v56 = vshll.u32 %v6310_v19, 16  ;;  %v901_v32 = vadd.s32 168, %v5853_v42  ;;  %vm1737_vm3 = vmpackc.low %vm6572_vm7, %vm6572_vm7 }
 0x1aa   : > { %v6581_v27 = vsel %vm8013_vm2, %v1395_v35, %v1406_v49  ;;  %v4143_v50 = vcombine.low %v5889_v11, %v1767_v52  ;;  %vm6591_vm10 = vcmp.ne.s32.totalorder %v1070_v9, 0  ;;  %v904_v35 = vadd.s32 192, %v5853_v42 }
 0x1ab   : > { %8014 = vst [vmem:[#allocation53_spill] sm:$0xff] %v6581_v27  ;;  %v4129_v49 = vcombine.low %v1527_v3, %v5889_v11  ;;  %v8017_v10 = vshrl.u32 %v6402_v51, 16  ;;  %v1414_v62 = vor.u32 %v1412_v56, %v1411_v40  ;;  %v7807_v1 = vshrl.u32 %v6299_v31, 16  ;;  %vm1497_vm2 = vmpackc.low %vm6591_vm10, %vm6591_vm10 }
 0x1ac   : > { %4254 = vmatmul.mubr.msk.bf16.gmra.mxu0 %vm6556_vm0, %v6569_v61  ;;  %v1063_v9 = vand.u32 15, %v901_v32  ;;  %v1678_v52 = vrot.slane %v1404_v22, 1  ;;  %vm6606_vm11 = vcmp.ne.s16.totalorder %v4143_v50, 0  ;;  %v8018_v14 = vmov 0 }
 0x1ad   : > { %4255 = vmatprep.mubr.msk.bf16.mxu0 %vm6560_vm12, %v6581_v27  ;;  %v1677_v18 = vor.u32 %v1675_v6, %v8017_v10  ;;  %v8019_v14 = vsel %vm6606_vm11, 4294967295, %v8018_v14  ;;  %v1084_v3 = vand.u32 15, %v904_v35  ;;  %vm6610_vm0 = vcmp.ne.s16.totalorder %v4129_v49, 0 }
 0x1ae   : > { %8020 = vst [vmem:[#allocation54_spill] sm:$0xff] %v8019_v14  ;;  %v8021_v6 = vmov 0  ;;  %v1769_v10 = vsel %vm1737_vm3, 65537, %v7941_v20  ;;  %vm8024_vm7 = vsmask.f32 7424  ;;  %v1529_v22 = vsel %vm1497_vm2, 65537, %v7941_v20 }
 0x1af   : > { %v8022_v6 = vsel %vm6610_vm0, 4294967295, %v8021_v6  ;;  %v6619_v60 = vsel %vm8024_vm7, %v1677_v18, %v1678_v52  ;;  %v903_v32 = vadd.s32 184, %v5853_v42  ;;  %vm8025_vm10 = vsmask.f32 256  ;;  %v8092_v5 = vld [vmem:[#allocation51_spill] sm:$0xff] }
 0x1b0   : > { %8023 = vst [vmem:[#allocation55_spill] sm:$0xff] %v8022_v6  ;;  %4232 = vmatmul.mubr.msk.bf16.gmra.mxu1 %vm6560_vm12, %v6581_v27  ;;  %v6628_v50 = vsel %vm8025_vm10, %v1403_v37, %v1414_v62  ;;  %v1419_v54 = vrot.slane %v7807_v1, 7  ;;  %vm6632_vm3 = vcmp.ne.s32.totalorder %v1063_v9, 15  ;;  %v4144_v18 = vcombine.low %v5889_v11, %v1769_v10 }
 0x1b1   : > { %2558 = vmatprep.mubr.bf16.mxu1 %v6310_v19  ;;  %8026 = vst [vmem:[#allocation56_spill] sm:$0xff] %v6628_v50  ;;  %vm6640_vm2 = vcmp.ne.s32.totalorder %v1084_v3, 0  ;;  %v906_v62 = vadd.s32 208, %v5853_v42  ;;  %v1420_v37 = vshll.u32 %v6299_v31, 16  ;;  %v4130_v1 = vcombine.low %v1529_v22, %v5889_v11  ;;  %vm1739_vm7 = vmpackc.low %vm6632_vm3, %vm6632_vm3 }
 0x1b2   : > { %v8031_v9 = vshrl.u32 %v6240_v2, 16  ;;  %v1681_v27 = vrot.slane %v1412_v56, 1  ;;  %v1077_v51 = vand.u32 15, %v903_v32  ;;  %v7817_v3 = vshrl.u32 %v6383_v43, 16  ;;  %vm1499_vm10 = vmpackc.low %vm6640_vm2, %vm6640_vm2 }
 0x1b3   : > { %v1422_v10 = vor.u32 %v1420_v37, %v1419_v54  ;;  %vm6656_vm12 = vcmp.ne.s16.totalorder %v4144_v18, 0  ;;  %v8032_v14 = vmov 0  ;;  %v1098_v22 = vand.u32 15, %v906_v62 }
 0x1b4   : > { %4256 = vmatmul.mubr.msk.bf16.gmra.mxu0 %vm6606_vm11, %v6619_v60  ;;  %v1680_v57 = vor.u32 %v1678_v52, %v8031_v9  ;;  %v8033_v14 = vsel %vm6656_vm12, 4294967295, %v8032_v14  ;;  %vm6660_vm11 = vcmp.ne.s16.totalorder %v4130_v1, 0  ;;  %v8035_v52 = vmov 0 }
 0x1b5   : > { %4257 = vmatprep.mubr.msk.bf16.mxu0 %vm6610_vm0, %v6628_v50  ;;  %8034 = vst [vmem:[#allocation57_spill] sm:$0xff] %v8033_v14  ;;  %v8036_v52 = vsel %vm6660_vm11, 4294967295, %v8035_v52  ;;  %v1771_v56 = vsel %vm1739_vm7, 65537, %v7941_v20  ;;  %vm8038_vm3 = vsmask.f32 7424  ;;  %v1531_v35 = vsel %vm1499_vm10, 65537, %v7941_v20 }
 0x1b6   : > { %8037 = vst [vmem:[#allocation58_spill] sm:$0xff] %v8036_v52  ;;  %v6669_v32 = vsel %vm8038_vm3, %v1680_v57, %v1681_v27  ;;  %vm6672_vm2 = vcmp.ne.s32.totalorder %v1077_v51, 15  ;;  %vm8041_vm7 = vsmask.f32 256  ;;  %v1427_v49 = vrot.slane %v7817_v3, 7  ;;  %v8098_v59 = vld [vmem:[#allocation54_spill] sm:$0xff] }
 0x1b7   : > { %v6681_v1 = vsel %vm8041_vm7, %v1411_v40, %v1422_v10  ;;  %v1428_v57 = vshll.u32 %v6383_v43, 16  ;;  %v905_v62 = vadd.s32 200, %v5853_v42  ;;  %v4145_v51 = vcombine.low %v5889_v11, %v1771_v56  ;;  %vm1741_vm3 = vmpackc.low %vm6672_vm2, %vm6672_vm2 }
 0x1b8   : > { %4233 = vmatmul.mubr.msk.bf16.gmra.mxu1 %vm6610_vm0, %v6628_v50  ;;  %8042 = vst [vmem:[#allocation59_spill] sm:$0xff] %v6681_v1  ;;  %vm6691_vm10 = vcmp.ne.s32.totalorder %v1098_v22, 0  ;;  %v908_v40 = vadd.s32 224, %v5853_v42  ;;  %v4131_v10 = vcombine.low %v1531_v35, %v5889_v11  ;;  %v8045_v3 = vshrl.u32 %v6310_v19, 16 }
 0x1b9   : > { %2566 = vmatprep.mubr.bf16.mxu1 %v6299_v31  ;;  %v1430_v50 = vor.u32 %v1428_v57, %v1427_v49  ;;  %v7827_v2 = vshrl.u32 %v6375_v48, 16  ;;  %vm1501_vm7 = vmpackc.low %vm6691_vm10, %vm6691_vm10  ;;  %v1091_v22 = vand.u32 15, %v905_v62  ;;  %v1684_v56 = vrot.slane %v1420_v37, 1 }
 0x1ba   : > { %v1683_v6 = vor.u32 %v1681_v27, %v8045_v3  ;;  %vm6706_vm0 = vcmp.ne.s16.totalorder %v4145_v51, 0  ;;  %v8046_v14 = vmov 0  ;;  %v1112_v35 = vand.u32 15, %v908_v40 }
 0x1bb   : > { %v8047_v14 = vsel %vm6706_vm0, 4294967295, %v8046_v14  ;;  %v8049_v27 = vmov 0  ;;  %v1773_v3 = vsel %vm1741_vm3, 65537, %v7941_v20  ;;  %vm8052_vm2 = vsmask.f32 7424 }
 0x1bc   : > { %4258 = vmatmul.mubr.msk.bf16.gmra.mxu0 %vm6656_vm12, %v6669_v32  ;;  %8048 = vst [vmem:[#allocation60_spill] sm:$0xff] %v8047_v14  ;;  %vm6710_vm12 = vcmp.ne.s16.totalorder %v4131_v10, 0  ;;  %v6719_v18 = vsel %vm8052_vm2, %v1683_v6, %v1684_v56  ;;  %v1533_v37 = vsel %vm1501_vm7, 65537, %v7941_v20  ;;  %v907_v62 = vadd.s32 216, %v5853_v42 }
 0x1bd   : > { %4259 = vmatprep.mubr.msk.bf16.mxu0 %vm6660_vm11, %v6681_v1  ;;  %v8050_v27 = vsel %vm6710_vm12, 4294967295, %v8049_v27  ;;  %vm8053_vm10 = vsmask.f32 256  ;;  %v1435_v9 = vrot.slane %v7827_v2, 7  ;;  %vm6732_vm3 = vcmp.ne.s32.totalorder %v1091_v22, 15 }
 0x1be   : > { %8051 = vst [vmem:[#allocation61_spill] sm:$0xff] %v8050_v27  ;;  %v6728_v51 = vsel %vm8053_vm10, %v1419_v54, %v1430_v50  ;;  %v4146_v6 = vcombine.low %v5889_v11, %v1773_v3  ;;  %vm6740_vm7 = vcmp.ne.s32.totalorder %v1112_v35, 0  ;;  %v910_v50 = vadd.s32 240, %v5853_v42  ;;  %vm1743_vm2 = vmpackc.low %vm6732_vm3, %vm6732_vm3 }
 0x1bf   : > { %8054 = vst [vmem:[#allocation62_spill] sm:$0xff] %v6728_v51  ;;  %v1436_v54 = vshll.u32 %v6375_v48, 16  ;;  %v4132_v2 = vcombine.low %v1533_v37, %v5889_v11  ;;  %v8059_v22 = vshrl.u32 %v6299_v31, 16  ;;  %v1105_v19 = vand.u32 15, %v907_v62  ;;  %vm1503_vm10 = vmpackc.low %vm6740_vm7, %vm6740_vm7 }
 0x1c0   : > { %4234 = vmatmul.mubr.msk.bf16.gmra.mxu1 %vm6660_vm11, %v6681_v1  ;;  %v1687_v1 = vrot.slane %v1428_v57, 1  ;;  %v1441_v35 = vshrl.u32 %v6443_v45, 16  ;;  %vm6756_vm11 = vcmp.ne.s16.totalorder %v4146_v6, 0  ;;  %v8060_v14 = vmov 0 }
 0x1c1   : > { %2574 = vmatprep.mubr.bf16.mxu1 %v6383_v43  ;;  %v1686_v52 = vor.u32 %v1684_v56, %v8059_v22  ;;  %v1438_v3 = vor.u32 %v1436_v54, %v1435_v9  ;;  %v8061_v14 = vsel %vm6756_vm11, 4294967295, %v8060_v14  ;;  %v1126_v37 = vand.u32 15, %v910_v50 }
 0x1c2   : > { %v8062_v56 = vmov 0  ;;  %v1775_v57 = vsel %vm1743_vm2, 65537, %v7941_v20  ;;  %vm8065_vm3 = vsmask.f32 7424  ;;  %v1535_v40 = vsel %vm1503_vm10, 65537, %v7941_v20 }
 0x1c3   : > { %v6769_v62 = vsel %vm8065_vm3, %v1686_v52, %v1687_v1  ;;  %vm6772_vm7 = vcmp.ne.s32.totalorder %v1105_v19, 15  ;;  %vm8068_vm2 = vsmask.f32 256  ;;  %v1443_v10 = vrot.slane %v1441_v35, 7 }
 0x1c4   : > { %4260 = vmatmul.mubr.msk.bf16.gmra.mxu0 %vm6706_vm0, %v6719_v18  ;;  %vm6760_vm0 = vcmp.ne.s16.totalorder %v4132_v2, 0  ;;  %v6781_v2 = vsel %vm8068_vm2, %v1427_v49, %v1438_v3  ;;  %v1444_v50 = vshll.u32 %v6443_v45, 16  ;;  %v909_v52 = vadd.s32 232, %v5853_v42  ;;  %vm1745_vm3 = vmpackc.low %vm6772_vm7, %vm6772_vm7 }
 0x1c5   : > { %4261 = vmatprep.mubr.msk.bf16.mxu0 %vm6710_vm12, %v6728_v51  ;;  %v8063_v56 = vsel %vm6760_vm0, 4294967295, %v8062_v56  ;;  %v4147_v19 = vcombine.low %v5889_v11, %v1775_v57  ;;  %vm1326_vm10 = vcmp.ne.s32.totalorder %v1126_v37, 0  ;;  %v4133_v22 = vcombine.low %v1535_v40, %v5889_v11 }
 0x1c6   : > { %8064 = vst [vmem:[#allocation63_spill] sm:$0xff] %v8063_v56  ;;  %v8069_v27 = vshrl.u32 %v6383_v43, 16  ;;  %v1446_v49 = vor.u32 %v1444_v50, %v1443_v10  ;;  %vm1505_vm2 = vmpackc.low %vm1326_vm10, %vm1326_vm10  ;;  %v1119_v3 = vand.u32 15, %v909_v52  ;;  %v1690_v42 = vrot.slane %v1436_v54, 1 }
 0x1c7   : > { %v8070_v31 = vmov 0  ;;  %v1777_v37 = vsel %vm1745_vm3, 65537, %v7941_v20  ;;  %vm8074_vm4 = vsmask.f32 7424  ;;  %vm8075_vm7 = vsmask.f32 256 }
 0x1c8   : > { %4235 = vmatmul.mubr.msk.bf16.gmra.mxu1 %vm6710_vm12, %v6728_v51  ;;  %v1689_v51 = vor.u32 %v1687_v1, %v8069_v27  ;;  %vm6795_vm12 = vcmp.ne.s16.totalorder %v4147_v19, 0  ;;  %v1537_v27 = vsel %vm1505_vm2, 65537, %v7941_v20  ;;  %v6816_v54 = vsel %vm8075_vm7, %v1435_v9, %v1446_v49 }
 0x1c9   : > { %2582 = vmatprep.mubr.bf16.mxu1 %v6375_v48  ;;  %v8071_v31 = vsel %vm6795_vm12, 4294967295, %v8070_v31  ;;  %v8076_v40 = vshrl.u32 %v6435_v4, 16  ;;  %vm1648_vm10 = vcmp.ne.s32.totalorder %v1119_v3, 15  ;;  %v4134_v52 = vcombine.low %v1537_v27, %v5889_v11 }
 0x1ca   : > { %v6808_v1 = vsel %vm8074_vm4, %v1689_v51, %v1690_v42  ;;  %v4148_v51 = vcombine.low %v5889_v11, %v1777_v37  ;;  %v8077_v19 = vshrl.u32 %v6375_v48, 16  ;;  %vm1747_vm4 = vmpackc.low %vm1648_vm10, %vm1648_vm10  ;;  %v8078_v9 = vshll.u32 %v6435_v4, 16 }
 0x1cb   : > { %v1451_v6 = vrot.slane %v8076_v40, 7  ;;  %v8079_v56 = vmov 0  ;;  %vm6833_vm2 = vcmp.ne.s16.totalorder %v4134_v52, 0  ;;  %v1779_v37 = vsel %vm1747_vm4, 65537, %v7941_v20 }
 0x1cc   : > { %4262 = vmatmul.mubr.msk.bf16.gmra.mxu0 %vm6756_vm11, %v6769_v62  ;;  %vm6799_vm11 = vcmp.ne.s16.totalorder %v4133_v22, 0  ;;  %v1692_v22 = vor.u32 %v1690_v42, %v8077_v19  ;;  %vm6829_vm3 = vcmp.ne.s16.totalorder %v4148_v51, 0  ;;  %vm8083_vm7 = vsmask.f32 7424  ;;  %v5228_v51 = vld [vmem:[#allocation7 + $0x230] sm:$0xff]  }
 0x1cd   : > { %4263 = vmatprep.mubr.msk.bf16.mxu0 %vm6760_vm0, %v6781_v2  ;;  %v1454_v49 = vor.u32 %v8078_v9, %v1451_v6  ;;  %v8080_v56 = vsel %vm6829_vm3, 4294967295, %v8079_v56  ;;  %vm8084_vm10 = vsmask.f32 256  ;;  %v4149_v27 = vcombine.low %v5889_v11, %v1779_v37  ;;  %v8110_v9 = vld [vmem:[#allocation60_spill] sm:$0xff] }
 0x1ce   : > { %v8085_v6 = vmov 0  ;;  %v8113_v37 = vld [vmem:[#allocation52_spill] sm:$0xff] }
 0x1cf   : > { %vm6857_vm4 = vcmp.ne.s16.totalorder %v4149_v27, 0 }
 0x1d0   : > { %4236 = vmatmul.mubr.msk.bf16.gmra.mxu1 %vm6760_vm0, %v6781_v2  ;;  %v8086_v6 = vsel %vm6857_vm4, 4294967295, %v8085_v6 }
 0x1d1   : > { %2590 = vmatprep.mubr.bf16.mxu1 %v6443_v45  ;;  %v1693_v45 = vrot.slane %v1444_v50, 1  ;;  %v6851_v50 = vsel %vm8084_vm10, %v1443_v10, %v1454_v49  ;;  %vm8093_vm10 = vnez %v8092_v5  ;;  %v8109_v10 = vld [vmem:[#allocation36_spill] sm:$0xff]  ;;  %v8112_v49 = vld [vmem:[#allocation53_spill] sm:$0xff] }
 0x1d3   : > { %v6842_v42 = vsel %vm8083_vm7, %v1692_v22, %v1693_v45  ;;  %v1695_v40 = vor.u32 %v1693_v45, %v1441_v35  ;;  %v5229_v45 = vld [vmem:[#allocation7 + $0x228] sm:$0xff]   ;;  %v5232_v35 = vld [vmem:[#allocation7 + $0x210] sm:$0xff]  }
 0x1d4   : > { %4264 = vmatmul.mubr.msk.bf16.gmra.mxu0 %vm6795_vm12, %v6808_v1 }
 0x1d5   : > { %4265 = vmatprep.mubr.msk.bf16.mxu0 %vm6799_vm11, %v6816_v54  ;;  %v6864_v53 = vsel %vm8083_vm7, %v1695_v40, %v6465_v8  ;;  %v5231_v8 = vld [vmem:[#allocation7 + $0x218] sm:$0xff]  }
 0x1d6   : > { %v8115_v40 = vld [vmem:[#allocation39_spill] sm:$0xff] }
 0x1d8   : > { %4237 = vmatmul.mubr.msk.bf16.gmra.mxu1 %vm6799_vm11, %v6816_v54 }
 0x1d9   : > { %4269 = vmatprep.mubr.msk.bf16.mxu1 %vm6064_vm13, %v6097_v58  ;;  %v5245_v58 = vld [vmem:[#allocation7 + $0x238] sm:$0xff]   ;;  %vm8088_vm13 = vnez %v7939_v7  ;;  %v8103_v7 = vld [vmem:[#allocation42_spill] sm:$0xff] }
 0x1dc   : > { %4266 = vmatmul.mubr.msk.bf16.gmra.mxu0 %vm6829_vm3, %v6842_v42 }
 0x1dd   : > { %4267 = vmatprep.mubr.msk.bf16.mxu0 %vm6833_vm2, %v6851_v50 }
 0x1e0   : > { %2793 = vmatmul.mubr.bf16.vlgmr.msra.gmra.mxu1 %v5919_v46  ;;  %v5230_v46 = vld [vmem:[#allocation7 + $0x220] sm:$0xff]  }
 0x1e1   : > { %4921 = vmatpush3.bf16.msra.mxu1 %v5245_v58  ;;  %4270 = vmatprep.mubr.msk.bf16.mxu1 %vm6114_vm5, %v6201_v33 }
 0x1e2   : > { %4922 = vmatprep.subr.bf16.mxu1 %v5228_v51 }
 0x1e4   : > { %4268 = vmatmul.mubr.msk.bf16.gmra.mxu0 %vm6857_vm4, %v6864_v53 }
 0x1e5   : > { %2953 = vmatprep.mubr.bf16.mxu0 %v5908_v36  ;;  %4923 = vmatpush3.bf16.msra.mxu1 %v5228_v51 }
 0x1e6   : > { %4924 = vmatprep.subr.bf16.mxu1 %v5229_v45 }
 0x1e8   : > { %2801 = vmatmul.mubr.bf16.gmra.mxu1 %v5908_v36  ;;  %v5233_v36 = vld [vmem:[#allocation7 + $0x208] sm:$0xff]  }
 0x1e9   : > { %4271 = vmatprep.mubr.msk.bf16.mxu1 %vm6176_vm9, %v6272_v21  ;;  %4925 = vmatpush3.bf16.msra.mxu1 %v5229_v45 }
 0x1ea   : > { %4926 = vmatprep.subr.bf16.mxu1 %v5230_v46 }
 0x1ec   : > { %4285 = vmatmul.mubr.msk.bf16.vlgmr.msra.gmra.mxu0 %vm5927_vm14, %v6014_v41  ;;  %vm8087_vm14 = vnez %v7976_v23  ;;  %v8095_v41 = vld [vmem:[#allocation41_spill] sm:$0xff] }
 0x1ed   : > { %2961 = vmatprep.mubr.bf16.mxu0 %v5976_v38  ;;  %4927 = vmatpush3.bf16.msra.mxu1 %v5230_v46  ;;  %vm8096_vm7 = vnez %v8095_v41 }
 0x1ee   : > { %4928 = vmatprep.subr.bf16.mxu1 %v5231_v8 }
 0x1f0   : > { %2809 = vmatmul.mubr.bf16.gmra.mxu1 %v5976_v38  ;;  %v8090_v38 = vld [vmem:[#allocation37_spill] sm:$0xff] }
 0x1f1   : > { %4272 = vmatprep.mubr.msk.bf16.mxu1 %vm6249_vm1, %v6328_v29  ;;  %4929 = vmatpush3.bf16.msra.mxu1 %v5231_v8 }
 0x1f2   : > { %4930 = vmatprep.subr.bf16.mxu1 %v5232_v35 }
 0x1f4   : > { %4286 = vmatmul.mubr.msk.bf16.gmra.mxu0 %vm6068_vm15, %v6112_v17  ;;  %vm8089_vm15 = vnez %v7992_v47  ;;  %v8101_v17 = vld [vmem:[#allocation45_spill] sm:$0xff] }
 0x1f5   : > { %2969 = vmatprep.mubr.bf16.mxu0 %v6006_v12  ;;  %4931 = vmatpush3.bf16.msra.mxu1 %v5232_v35  ;;  %v8116_v35 = vld [vmem:[#allocation48_spill] sm:$0xff] }
 0x1f6   : > { %4932 = vmatprep.subr.bf16.mxu1 %v5233_v36 }
 0x1f8   : > { %2817 = vmatmul.mubr.bf16.gmra.mxu1 %v6006_v12  ;;  %v8094_v12 = vld [vmem:[#allocation43_spill] sm:$0xff] }
 0x1f9   : > { %4273 = vmatprep.mubr.msk.bf16.mxu1 %vm6315_vm6, %v6398_v39  ;;  %4933 = vmatpush3.bf16.msra.mxu1 %v5233_v36 }
 0x1fa   : > { %4934 = vmatprep.subr.bf16.mxu1 %v5234_v55 }
 0x1fc   : > { %4287 = vmatmul.mubr.msk.bf16.gmra.mxu0 %vm6171_vm8, %v6213_v34  ;;  %vm8091_vm8 = vnez %v8090_v38  ;;  %v8104_v34 = vld [vmem:[#allocation57_spill] sm:$0xff] }
 0x1fd   : > { %2977 = vmatprep.mubr.bf16.mxu0 %v6104_v25  ;;  %4935 = vmatpush3.bf16.msra.mxu1 %v5234_v55 }
 0x200   : > { %2825 = vmatmul.mubr.bf16.gmra.mxu1 %v6104_v25  ;;  %v8100_v25 = vld [vmem:[#allocation46_spill] sm:$0xff] }
 0x201   : > { %4274 = vmatprep.mubr.msk.bf16.mxu1 %vm8087_vm14, %v6456_v44 }
 0x204   : > { %4288 = vmatmul.mubr.msk.bf16.gmra.mxu0 %vm8088_vm13, %v6284_v30  ;;  %vm8099_vm13 = vnez %v8098_v59  ;;  %v8107_v30 = vld [vmem:[#allocation49_spill] sm:$0xff] }
 0x205   : > { %2985 = vmatprep.mubr.bf16.mxu0 %v6180_v15 }
 0x208   : > { %2833 = vmatmul.mubr.bf16.gmra.mxu1 %v6180_v15  ;;  %v8097_v15 = vld [vmem:[#allocation40_spill] sm:$0xff] }
 0x209   : > { %4275 = vmatprep.mubr.msk.bf16.mxu1 %vm8089_vm15, %v6518_v16 }
 0x20c   : > { %4289 = vmatmul.mubr.msk.bf16.gmra.mxu0 %vm8091_vm8, %v6341_v63  ;;  %vm8102_vm8 = vnez %v8101_v17  ;;  %v4389_v63 = vpop.f32.mrf.mxu1 }
 0x20d   : > { %2993 = vmatprep.mubr.bf16.mxu0 %v6276_v0 }
 0x20e   : > { %v4390_v52 = vpop.f32.mrf.mxu1 }
 0x20f   : > { %v4391_v41 = vadd.f32 %v4390_v52, %v4389_v63 }
 0x210   : > { %2841 = vmatmul.mubr.bf16.gmra.mxu1 %v6276_v0  ;;  %v8106_v0 = vld [vmem:[#allocation50_spill] sm:$0xff] }
 0x211   : > { %4276 = vmatprep.mubr.msk.bf16.mxu1 %vm8093_vm10, %v6569_v61  ;;  %vm8105_vm10 = vnez %v8104_v34  ;;  %v5240_v34 = vld [vmem:[#allocation8 + $0x10] sm:$0xff]  }
 0x214   : > { %4290 = vmatmul.mubr.msk.bf16.gmra.mxu0 %vm8096_vm7, %v8094_v12  ;;  %vm8108_vm7 = vnez %v8107_v30  ;;  %v5235_v30 = vld [vmem:[#allocation8 + $0x38] sm:$0xff]  }
 0x215   : > { %3001 = vmatprep.mubr.bf16.mxu0 %v8097_v15  ;;  %4968 = vmatprep.subr.bf16.mxu0 %v5235_v30 }
 0x216   : > { %4969 = vmatpush3.bf16.msra.mxu0 %v5235_v30 }
 0x218   : > { %2849 = vmatmul.mubr.bf16.gmra.mxu1 %v8097_v15 }
 0x219   : > { %4277 = vmatprep.mubr.msk.bf16.mxu1 %vm8099_vm13, %v6619_v60  ;;  %vm8114_vm13 = vnez %v8113_v37 }
 0x21c   : > { %4291 = vmatmul.mubr.msk.bf16.gmra.mxu0 %vm8102_vm8, %v8100_v25  ;;  %vm8111_vm8 = vnez %v8110_v9 }
 0x21d   : > { %3009 = vmatprep.mubr.bf16.mxu0 %v8103_v7 }
 0x220   : > { %2857 = vmatmul.mubr.bf16.gmra.mxu1 %v8103_v7  ;;  %v8118_v7 = vld [vmem:[#allocation56_spill] sm:$0xff] }
 0x221   : > { %4278 = vmatprep.mubr.msk.bf16.mxu1 %vm8105_vm10, %v6669_v32 }
 0x224   : > { %4292 = vmatmul.mubr.msk.bf16.gmra.mxu0 %vm8108_vm7, %v8106_v0  ;;  %v8119_v0 = vld [vmem:[#allocation55_spill] sm:$0xff] }
 0x225   : > { %3017 = vmatprep.mubr.bf16.mxu0 %v8109_v10  ;;  %vm8120_vm7 = vnez %v8119_v0 }
 0x228   : > { %v4392_v19 = vpop.f32.mrf.mxu1  ;;  %2865 = vmatmul.mubr.bf16.gmra.mxu1 %v8109_v10 }
 0x229   : > { %v4498_v22 = vpop.f32.mrf.mxu0  ;;  %4279 = vmatprep.mubr.msk.bf16.mxu1 %vm8111_vm8, %v6719_v18 }
 0x22a   : > { %v4393_v27 = vpop.f32.mrf.mxu1 }
 0x22b   : > { %v4394_v51 = vadd.f32 %v4393_v27, %v4392_v19  ;;  %v4499_v58 = vpop.f32.mrf.mxu0 }
 0x22c   : > { %4293 = vmatmul.mubr.msk.bf16.gmra.mxu0 %vm8114_vm13, %v8112_v49  ;;  %v4500_v45 = vadd.f32 %v4499_v58, %v4498_v22  ;;  %v4395_v46 = vpop.f32.mrf.mxu1  ;;  %vm8117_vm13 = vnez %v8061_v14  ;;  %v8121_v22 = vld [vmem:[#allocation38_spill] sm:$0xff] }
 0x22d   : > { %3025 = vmatprep.mubr.bf16.mxu0 %v8115_v40  ;;  %v4501_v8 = vpop.f32.mrf.mxu0 }
 0x22e   : > { %v6946_v36 = vadd.f32 %v4500_v45, %v8116_v35  ;;  %v4396_v55 = vpop.f32.mrf.mxu1 }
 0x22f   : > { %v4397_v38 = vadd.f32 %v4396_v55, %v4395_v46  ;;  %v4502_v12 = vpop.f32.mrf.mxu0 }
 0x230   : > { %v4503_v15 = vadd.f32 %v4502_v12, %v4501_v8  ;;  %v4398_v25 = vpop.f32.mrf.mxu1  ;;  %2873 = vmatmul.mubr.bf16.gmra.mxu1 %v8115_v40  ;;  %v8122_v12 = vld [vmem:[#allocation59_spill] sm:$0xff] }
 0x231   : > { %v4504_v17 = vpop.f32.mrf.mxu0  ;;  %4280 = vmatprep.mubr.msk.bf16.mxu1 %vm8117_vm13, %v6769_v62 }
 0x232   : > { %v6955_v10 = vadd.f32 %v4503_v15, %v4391_v41  ;;  %v4399_v19 = vpop.f32.mrf.mxu1  ;;  %v8123_v41 = vld [vmem:[#allocation58_spill] sm:$0xff]  ;;  %v8125_v15 = vld [vmem:[#allocation35_spill] sm:$0xff] }
 0x233   : > { %v4400_v63 = vadd.f32 %v4399_v19, %v4398_v25  ;;  %v4505_v52 = vpop.f32.mrf.mxu0  ;;  %v911_v25 = vadd.s32 248, %v8125_v15 }
 0x234   : > { %4294 = vmatmul.mubr.msk.bf16.gmra.mxu0 %vm8120_vm7, %v8118_v7  ;;  %v4506_v49 = vadd.f32 %v4505_v52, %v4504_v17  ;;  %v4401_v37 = vpop.f32.mrf.mxu1  ;;  %vm8124_vm7 = vnez %v8123_v41 }
 0x235   : > { %3033 = vmatprep.mubr.bf16.mxu0 %v8121_v22  ;;  %v4507_v27 = vpop.f32.mrf.mxu0  ;;  %v1133_v52 = vand.u32 15, %v911_v25 }
 0x236   : > { %v6958_v40 = vadd.f32 %v4506_v49, %v4394_v51  ;;  %v4402_v58 = vpop.f32.mrf.mxu1 }
 0x237   : > { %v4403_v45 = vadd.f32 %v4402_v58, %v4401_v37  ;;  %v4508_v46 = vpop.f32.mrf.mxu0 }
 0x238   : > { %v4509_v8 = vadd.f32 %v4508_v46, %v4507_v27  ;;  %v4404_v35 = vpop.f32.mrf.mxu1  ;;  %2881 = vmatmul.mubr.bf16.gmra.mxu1 %v8121_v22 }
 0x239   : > { %v4510_v55 = vpop.f32.mrf.mxu0  ;;  %4281 = vmatprep.mubr.msk.bf16.mxu1 %vm6795_vm12, %v6808_v1  ;;  %vm6980_vm12 = vcmp.ne.s32.totalorder %v1133_v52, 15 }
 0x23a   : > { %v6968_v51 = vadd.f32 %v4509_v8, %v4397_v38  ;;  %v4405_v17 = vpop.f32.mrf.mxu1  ;;  %v8126_v8 = vld [vmem:[#allocation62_spill] sm:$0xff] }
 0x23b   : > { %v4406_v7 = vadd.f32 %v4405_v17, %v4404_v35  ;;  %v4511_v0 = vpop.f32.mrf.mxu0  ;;  %v8127_v35 = vld [vmem:[#allocation61_spill] sm:$0xff] }
 0x23c   : > { %4295 = vmatmul.mubr.msk.bf16.gmra.mxu0 %vm8124_vm7, %v8122_v12  ;;  %v4512_v30 = vadd.f32 %v4511_v0, %v4510_v55  ;;  %v4407_v19 = vpop.f32.mrf.mxu1  ;;  %vm8128_vm7 = vnez %v8127_v35  ;;  %v8132_v35 = vld [vmem:[#allocation44_spill] sm:$0xff] }
 0x23d   : > { %3041 = vmatprep.mubr.bf16.mxu0 %v6383_v43  ;;  %v4513_v22 = vpop.f32.mrf.mxu0 }
 0x23e   : > { %v6971_v49 = vadd.f32 %v4512_v30, %v4400_v63  ;;  %v4408_v37 = vpop.f32.mrf.mxu1  ;;  %v5236_v63 = vld [vmem:[#allocation8 + $0x30] sm:$0xff]  }
 0x23f   : > { %v4409_v27 = vadd.f32 %v4408_v37, %v4407_v19  ;;  %v4514_v58 = vpop.f32.mrf.mxu0  ;;  %4970 = vmatprep.subr.bf16.mxu0 %v5236_v63 }
 0x240   : > { %v4515_v46 = vadd.f32 %v4514_v58, %v4513_v22  ;;  %v4410_v12 = vpop.f32.mrf.mxu1  ;;  %2889 = vmatmul.mubr.bf16.gmra.mxu1 %v6383_v43  ;;  %4971 = vmatpush3.bf16.msra.mxu0 %v5236_v63 }
 0x241   : > { %v4516_v38 = vpop.f32.mrf.mxu0  ;;  %4282 = vmatprep.mubr.msk.bf16.mxu1 %vm6829_vm3, %v6842_v42  ;;  %vm1749_vm3 = vmpackc.low %vm6980_vm12, %vm6980_vm12  ;;  %vm1715_vm12 = vcmask 1047552  }
 0x242   : > { %v6984_v41 = vadd.f32 %v4515_v46, %v4403_v45  ;;  %v4411_v15 = vpop.f32.mrf.mxu1  ;;  %v1781_v37 = vsel %vm1749_vm3, 65537, %v7941_v20  ;;  %vm8133_vm3 = vsmask.f32 7424 }
 0x243   : > { %v4412_v43 = vadd.f32 %v4411_v15, %v4410_v12  ;;  %v4517_v25 = vpop.f32.mrf.mxu0  ;;  %v4150_v55 = vcombine.low %v5889_v11, %v1781_v37  ;;  %v8136_v11 = vld [vmem:[#allocation47_spill] sm:$0xff] }
 0x244   : > { %4296 = vmatmul.mubr.msk.bf16.gmra.mxu0 %vm8128_vm7, %v8126_v8  ;;  %v4518_v17 = vadd.f32 %v4517_v25, %v4516_v38  ;;  %v4413_v0 = vpop.f32.mrf.mxu1  ;;  %vm1716_vm7 = vmand %vm1715_vm12, %vm8133_vm3 }
 0x245   : > { %3049 = vmatprep.mubr.bf16.mxu0 %v6375_v48  ;;  %v4519_v30 = vpop.f32.mrf.mxu0  ;;  %v7013_v37 = vsel %vm1716_vm7, %v8136_v11, 0 }
 0x246   : > { %v6990_v19 = vadd.f32 %v4518_v17, %v4406_v7  ;;  %v4414_v22 = vpop.f32.mrf.mxu1 }
 0x247   : > { %v4415_v52 = vadd.f32 %v4414_v22, %v4413_v0  ;;  %v4520_v45 = vpop.f32.mrf.mxu0 }
 0x248   : > { %v4521_v58 = vadd.f32 %v4520_v45, %v4519_v30  ;;  %v4416_v46 = vpop.f32.mrf.mxu1  ;;  %2897 = vmatmul.mubr.bf16.gmra.mxu1 %v6375_v48 }
 0x249   : > { %4283 = vmatprep.mubr.msk.bf16.mxu1 %vm6857_vm4, %v6864_v53  ;;  %vm7007_vm4 = vcmp.ne.s16.totalorder %v4150_v55, 0 }
 0x24a   : > { %v4522_v12 = vpop.f32.mrf.mxu0  ;;  %v7000_v7 = vadd.f32 %v4521_v58, %v4409_v27  ;;  %v4417_v8 = vpop.f32.mrf.mxu1 }
 0x24b   : > { %v4418_v63 = vadd.f32 %v4417_v8, %v4416_v46 }
 0x24c   : > { %4297 = vmatmul.mubr.msk.bf16.gmra.mxu0 %vm6760_vm0, %v6781_v2  ;;  %v4523_v15 = vpop.f32.mrf.mxu0  ;;  %v4419_v25 = vpop.f32.mrf.mxu1  ;;  %vm8143_vm0 = vcmask 261120  }
 0x24d   : > { %3057 = vmatprep.mubr.bf16.mxu0 %v8132_v35  ;;  %v4524_v48 = vadd.f32 %v4523_v15, %v4522_v12  ;;  %vm8161_vm12 = vmmov %vm8143_vm0 }
 0x24e   : > { %v4525_v17 = vpop.f32.mrf.mxu0  ;;  %v4420_v30 = vpop.f32.mrf.mxu1  ;;  %vm8164_vm3 = vmmov %vm8143_vm0 }
 0x24f   : > { %v7005_v0 = vadd.f32 %v4524_v48, %v4412_v43  ;;  %v4421_v27 = vadd.f32 %v4420_v30, %v4419_v25  ;;  %v5237_v43 = vld [vmem:[#allocation8 + $0x28] sm:$0xff]   ;;  %vm8166_vm7 = vmmov %vm8143_vm0 }
 0x250   : > { %v4526_v22 = vpop.f32.mrf.mxu0  ;;  %v4422_v58 = vpop.f32.mrf.mxu1  ;;  %2905 = vmatmul.mubr.bf16.gmra.mxu1 %v8132_v35  ;;  %4972 = vmatprep.subr.bf16.mxu0 %v5237_v43 }
 0x251   : > { %v4527_v45 = vadd.f32 %v4526_v22, %v4525_v17  ;;  %4284 = vmatprep.mubr.msk.bf16.mxu1 %vm7007_vm4, %v7013_v37  ;;  %4973 = vmatpush3.bf16.msra.mxu0 %v5237_v43 }
 0x252   : > { %v4423_v38 = vpop.f32.mrf.mxu1 }
 0x253   : > { %v7021_v12 = vadd.f32 %v4527_v45, %v4415_v52  ;;  %v4424_v8 = vadd.f32 %v4423_v38, %v4422_v58 }
 0x254   : > { %v4528_v46 = vpop.f32.mrf.mxu0  ;;  %4298 = vmatmul.mubr.msk.bf16.gmra.mxu0 %vm6799_vm11, %v6816_v54  ;;  %v4425_v15 = vpop.f32.mrf.mxu1  ;;  %vm8139_vm11 = vnez %v8071_v31 }
 0x255   : > { %3065 = vmatprep.mubr.bf16.mxu0 %v6435_v4 }
 0x256   : > { %v4529_v35 = vpop.f32.mrf.mxu0  ;;  %v4426_v17 = vpop.f32.mrf.mxu1 }
 0x257   : > { %v4530_v55 = vadd.f32 %v4529_v35, %v4528_v46  ;;  %v4427_v30 = vadd.f32 %v4426_v17, %v4425_v15 }
 0x258   : > { %v4531_v48 = vpop.f32.mrf.mxu0  ;;  %v4428_v54 = vpop.f32.mrf.mxu1  ;;  %2913 = vmatmul.mubr.bf16.gmra.mxu1 %v6435_v4 }
 0x259   : > { %v7024_v25 = vadd.f32 %v4530_v55, %v4418_v63  ;;  %4936 = vmatprep.mubr.msk.bf16.mxu1 %vm6114_vm5, %v6201_v33  ;;  %v5238_v33 = vld [vmem:[#allocation8 + $0x20] sm:$0xff]   ;;  %vm8137_vm5 = vnez %v8092_v5 }
 0x25a   : > { %v4532_v22 = vpop.f32.mrf.mxu0  ;;  %v4429_v63 = vpop.f32.mrf.mxu1  ;;  %4974 = vmatprep.subr.bf16.mxu0 %v5238_v33 }
 0x25b   : > { %v4533_v57 = vadd.f32 %v4532_v22, %v4531_v48  ;;  %v4430_v58 = vadd.f32 %v4429_v63, %v4428_v54  ;;  %4975 = vmatpush3.bf16.msra.mxu0 %v5238_v33 }
 0x25c   : > { %v4534_v52 = vpop.f32.mrf.mxu0  ;;  %4299 = vmatmul.mubr.msk.bf16.gmra.mxu0 %vm6833_vm2, %v6851_v50  ;;  %v4431_v43 = vpop.f32.mrf.mxu1  ;;  %vm8147_vm2 = vmmov %vm8143_vm0 }
 0x25d   : > { %v7033_v45 = vadd.f32 %v4533_v57, %v4421_v27  ;;  %3073 = vmatprep.mubr.bf16.mxu0 %v7941_v20 }
 0x25e   : > { %v4535_v11 = vpop.f32.mrf.mxu0  ;;  %v4432_v35 = vpop.f32.mrf.mxu1 }
 0x25f   : > { %v4536_v46 = vadd.f32 %v4535_v11, %v4534_v52  ;;  %v4433_v55 = vadd.f32 %v4432_v35, %v4431_v43 }
 0x260   : > { %v4537_v38 = vpop.f32.mrf.mxu0  ;;  %v4434_v15 = vpop.f32.mrf.mxu1  ;;  %4937 = vmatmul.mubr.msk.bf16.vlgmr.msra.gmra.mxu1 %vm6176_vm9, %v6272_v21  ;;  %vm8138_vm9 = vnez %v8098_v59 }
 0x261   : > { %v7036_v4 = vadd.f32 %v4536_v46, %v4424_v8  ;;  %4940 = vmatprep.mubr.msk.bf16.mxu1 %vm6249_vm1, %v6328_v29  ;;  %vm8140_vm1 = vnez %v8080_v56 }
 0x262   : > { %v4538_v3 = vpop.f32.mrf.mxu0  ;;  %v4435_v8 = vpop.f32.mrf.mxu1 }
 0x263   : > { %v4539_v50 = vadd.f32 %v4538_v3, %v4537_v38  ;;  %v4436_v48 = vadd.f32 %v4435_v8, %v4434_v15 }
 0x264   : > { %v4540_v26 = vpop.f32.mrf.mxu0  ;;  %3074 = vmatmul.mubr.bf16.gmra.mxu0 %v7941_v20  ;;  %v4437_v57 = vpop.f32.mrf.mxu1 }
 0x265   : > { %v7045_v27 = vadd.f32 %v4539_v50, %v4427_v30 }
 0x266   : > { %v4541_v17 = vpop.f32.mrf.mxu0  ;;  %v4438_v21 = vpop.f32.mrf.mxu1 }
 0x267   : > { %v4542_v22 = vadd.f32 %v4541_v17, %v4540_v26  ;;  %v4439_v52 = vadd.f32 %v4438_v21, %v4437_v57 }
 0x268   : > { %v4543_v54 = vpop.f32.mrf.mxu0  ;;  %v4440_v46 = vpop.f32.mrf.mxu1  ;;  %4941 = vmatmul.mubr.msk.bf16.gmra.mxu1 %vm6315_vm6, %v6398_v39  ;;  %vm8141_vm6 = vnez %v8086_v6 }
 0x269   : > { %v7047_v28 = vadd.f32 %v4542_v22, %v4430_v58  ;;  %4944 = vmatprep.mubr.msk.bf16.mxu1 %vm8087_vm14, %v6456_v44  ;;  %v5239_v44 = vld [vmem:[#allocation8 + $0x18] sm:$0xff]   ;;  %vm8151_vm14 = vmmov %vm8143_vm0 }
 0x26a   : > { %v4544_v63 = vpop.f32.mrf.mxu0  ;;  %v4441_v30 = vpop.f32.mrf.mxu1  ;;  %4976 = vmatprep.subr.bf16.mxu0 %v5239_v44 }
 0x26b   : > { %v4545_v11 = vadd.f32 %v4544_v63, %v4543_v54  ;;  %v4442_v43 = vadd.f32 %v4441_v30, %v4440_v46  ;;  %4977 = vmatpush3.bf16.msra.mxu0 %v5239_v44 }
 0x26c   : > { %v4546_v24 = vpop.f32.mrf.mxu0  ;;  %v4443_v35 = vpop.f32.mrf.mxu1  ;;  %4978 = vmatprep.subr.bf16.mxu0 %v5240_v34 }
 0x26d   : > { %v7055_v29 = vadd.f32 %v4545_v11, %v4433_v55 }
 0x26e   : > { %v4547_v58 = vpop.f32.mrf.mxu0  ;;  %v4444_v15 = vpop.f32.mrf.mxu1 }
 0x26f   : > { %v4548_v38 = vadd.f32 %v4547_v58, %v4546_v24  ;;  %v4445_v26 = vadd.f32 %v4444_v15, %v4443_v35  ;;  %4979 = vmatpush3.bf16.msra.mxu0 %v5240_v34 }
 0x270   : > { %v4549_v3 = vpop.f32.mrf.mxu0  ;;  %v4446_v39 = vpop.f32.mrf.mxu1  ;;  %4945 = vmatmul.mubr.msk.bf16.gmra.mxu1 %vm8089_vm15, %v6518_v16  ;;  %vm8153_vm15 = vmmov %vm8143_vm0 }
 0x271   : > { %v7057_v50 = vadd.f32 %v4548_v38, %v4436_v48  ;;  %4948 = vmatprep.mubr.msk.bf16.mxu1 %vm8137_vm5, %v6569_v61  ;;  %vm8169_vm5 = vmmov %vm8143_vm0 }
 0x272   : > { %v4550_v33 = vpop.f32.mrf.mxu0  ;;  %v4447_v8 = vpop.f32.mrf.mxu1 }
 0x273   : > { %v4551_v13 = vadd.f32 %v4550_v33, %v4549_v3  ;;  %v4448_v48 = vadd.f32 %v4447_v8, %v4446_v39 }
 0x274   : > { %v4552_v23 = vpop.f32.mrf.mxu0  ;;  %v4449_v57 = vpop.f32.mrf.mxu1 }
 0x275   : > { %v7065_v55 = vadd.f32 %v4551_v13, %v4439_v52 }
 0x276   : > { %v4553_v17 = vpop.f32.mrf.mxu0  ;;  %v4450_v47 = vpop.f32.mrf.mxu1 }
 0x277   : > { %v4554_v22 = vadd.f32 %v4553_v17, %v4552_v23  ;;  %v4451_v16 = vadd.f32 %v4450_v47, %v4449_v57 }
 0x278   : > { %v4555_v54 = vpop.f32.mrf.mxu0  ;;  %v4452_v46 = vpop.f32.mrf.mxu1  ;;  %4949 = vmatmul.mubr.msk.bf16.gmra.mxu1 %vm8138_vm9, %v6619_v60  ;;  %vm8171_vm9 = vmmov %vm8143_vm0 }
 0x279   : > { %v7067_v21 = vadd.f32 %v4554_v22, %v4442_v43  ;;  %4952 = vmatprep.mubr.msk.bf16.mxu1 %vm8105_vm10, %v6669_v32  ;;  %vm8155_vm10 = vmmov %vm8143_vm0 }
 0x27a   : > { %v4556_v63 = vpop.f32.mrf.mxu0  ;;  %v4453_v52 = vpop.f32.mrf.mxu1 }
 0x27b   : > { %v4557_v11 = vadd.f32 %v4556_v63, %v4555_v54  ;;  %v4454_v24 = vadd.f32 %v4453_v52, %v4452_v46 }
 0x27c   : > { %v4558_v61 = vpop.f32.mrf.mxu0  ;;  %v4455_v58 = vpop.f32.mrf.mxu1 }
 0x27d   : > { %v7075_v5 = vadd.f32 %v4557_v11, %v4445_v26  ;;  %v7085_v26 = vld [vmem:[#allocation11 + $0x8] sm:$0xff]  }
 0x27e   : > { %v4559_v30 = vpop.f32.mrf.mxu0  ;;  %v4456_v3 = vpop.f32.mrf.mxu1  ;;  %5052 = vmatprep.subr.bf16.mxu1 %v7085_v26 }
 0x27f   : > { %v4560_v43 = vadd.f32 %v4559_v30, %v4558_v61  ;;  %v4457_v15 = vadd.f32 %v4456_v3, %v4455_v58  ;;  %5054 = vmatpush3.bf16.msra.mxu1 %v7085_v26 }
 0x280   : > { %v4561_v38 = vpop.f32.mrf.mxu0  ;;  %v4458_v60 = vpop.f32.mrf.mxu1  ;;  %4953 = vmatmul.mubr.msk.bf16.gmra.mxu1 %vm8111_vm8, %v6719_v18  ;;  %vm8157_vm8 = vmmov %vm8143_vm0 }
 0x281   : > { %v7077_v35 = vadd.f32 %v4560_v43, %v4448_v48  ;;  %4956 = vmatprep.mubr.msk.bf16.mxu1 %vm8117_vm13, %v6769_v62  ;;  %vm8159_vm13 = vmmov %vm8143_vm0 }
 0x282   : > { %v4562_v33 = vpop.f32.mrf.mxu0  ;;  %v4459_v39 = vpop.f32.mrf.mxu1 }
 0x283   : > { %v4563_v59 = vadd.f32 %v4562_v33, %v4561_v38  ;;  %v4460_v23 = vadd.f32 %v4459_v39, %v4458_v60 }
 0x284   : > { %v4564_v32 = vpop.f32.mrf.mxu0  ;;  %v4461_v48 = vpop.f32.mrf.mxu1 }
 0x285   : > { %v7087_v13 = vadd.f32 %v4563_v59, %v4451_v16 }
 0x286   : > { %v4565_v44 = vpop.f32.mrf.mxu0  ;;  %v4462_v14 = vpop.f32.mrf.mxu1 }
 0x287   : > { %v4566_v8 = vadd.f32 %v4565_v44, %v4564_v32  ;;  %v4463_v62 = vadd.f32 %v4462_v14, %v4461_v48 }
 0x288   : > { %v4567_v18 = vpop.f32.mrf.mxu0  ;;  %v4464_v57 = vpop.f32.mrf.mxu1  ;;  %4957 = vmatmul.mubr.msk.bf16.gmra.mxu1 %vm8139_vm11, %v6808_v1  ;;  %vm8177_vm11 = vmmov %vm8143_vm0 }
 0x289   : > { %v7091_v9 = vadd.f32 %v4566_v8, %v4454_v24  ;;  %4960 = vmatprep.mubr.msk.bf16.mxu1 %vm8140_vm1, %v6842_v42  ;;  %v5242_v42 = vld [vmem:[#allocation8 + $0x8] sm:$0xff]   ;;  %vm8227_vm1 = vmmov %vm8143_vm0 }
 0x28a   : > { %v4568_v17 = vpop.f32.mrf.mxu0  ;;  %v4465_v16 = vpop.f32.mrf.mxu1  ;;  %4980 = vmatprep.subr.bf16.mxu0 %v5242_v42 }
 0x28b   : > { %v4569_v22 = vadd.f32 %v4568_v17, %v4567_v18  ;;  %v4466_v63 = vadd.f32 %v4465_v16, %v4464_v57  ;;  %4981 = vmatpush3.bf16.msra.mxu0 %v5242_v42 }
 0x28c   : > { %v4570_v54 = vpop.f32.mrf.mxu0  ;;  %v4467_v61 = vpop.f32.mrf.mxu1 }
 0x28d   : > { %v7099_v47 = vadd.f32 %v4569_v22, %v4457_v15 }
 0x28e   : > { %v4571_v11 = vpop.f32.mrf.mxu0  ;;  %v4468_v30 = vpop.f32.mrf.mxu1 }
 0x28f   : > { %v4572_v46 = vadd.f32 %v4571_v11, %v4570_v54  ;;  %v4469_v43 = vadd.f32 %v4468_v30, %v4467_v61 }
 0x290   : > { %v4573_v52 = vpop.f32.mrf.mxu0  ;;  %v4470_v1 = vpop.f32.mrf.mxu1  ;;  %4961 = vmatmul.mubr.msk.bf16.gmra.mxu1 %vm8141_vm6, %v6864_v53  ;;  %vm8229_vm6 = vmmov %vm8143_vm0 }
 0x291   : > { %v7101_v24 = vadd.f32 %v4572_v46, %v4460_v23  ;;  %4964 = vmatprep.mubr.msk.bf16.mxu1 %vm7007_vm4, %v7013_v37  ;;  %v8142_v37 = vld [vmem:[#allocation21_spill] sm:$0xff]  ;;  %vm8149_vm4 = vmmov %vm8143_vm0 }
 0x292   : > { %v4574_v58 = vpop.f32.mrf.mxu0  ;;  %v4471_v3 = vpop.f32.mrf.mxu1 }
 0x293   : > { %v4575_v31 = vadd.f32 %v4574_v58, %v4573_v52  ;;  %v4472_v15 = vadd.f32 %v4471_v3, %v4470_v1 }
 0x294   : > { %v4576_v56 = vpop.f32.mrf.mxu0  ;;  %v4473_v60 = vpop.f32.mrf.mxu1 }
 0x295   : > { %v7109_v38 = vadd.f32 %v4575_v31, %v4463_v62 }
 0x296   : > { %v4577_v33 = vpop.f32.mrf.mxu0  ;;  %v4474_v6 = vpop.f32.mrf.mxu1 }
 0x297   : > { %v4578_v59 = vadd.f32 %v4577_v33, %v4576_v56  ;;  %v4475_v53 = vadd.f32 %v4474_v6, %v4473_v60  ;;  %v7125_v60 = vld [vmem:[#allocation11] sm:$0xff]  }
 0x298   : > { %v4579_v32 = vpop.f32.mrf.mxu0  ;;  %v4476_v44 = vpop.f32.mrf.mxu1  ;;  %4965 = vmatmul.mubr.bf16.gmra.mxu1 %v7941_v20  ;;  %8144 = vst [vmem:[#allocation37_spill] sm:$0xff] %v7125_v60  ;;  %5053 = vmatprep.subr.bf16.mxu1 %v7125_v60 }
 0x299   : > { %v7111_v34 = vadd.f32 %v4578_v59, %v4466_v63  ;;  %5024 = vmatprep.mubr.msk.bf16.mxu1 %vm8143_vm0, %v8142_v37  ;;  %v5243_v59 = vld [vmem:[#allocation8] sm:$0xff]   ;;  %5055 = vmatpush3.bf16.msra.mxu1 %v7125_v60 }
 0x29a   : > { %v4580_v39 = vpop.f32.mrf.mxu0  ;;  %v4477_v48 = vpop.f32.mrf.mxu1  ;;  %4982 = vmatprep.subr.bf16.mxu0 %v5243_v59 }
 0x29b   : > { %v4581_v23 = vadd.f32 %v4580_v39, %v4579_v32  ;;  %v4478_v18 = vadd.f32 %v4477_v48, %v4476_v44  ;;  %4983 = vmatpush3.bf16.msra.mxu0 %v5243_v59 }
 0x29c   : > { %v4582_v2 = vpop.f32.mrf.mxu0  ;;  %v4479_v17 = vpop.f32.mrf.mxu1  ;;  %5016 = vmatprep.subr.bf16.mxu0 %v7085_v26 }
 0x29d   : > { %v7116_v8 = vadd.f32 %v4581_v23, %v4469_v43 }
 0x29e   : > { %v4583_v14 = vpop.f32.mrf.mxu0  ;;  %v4480_v54 = vpop.f32.mrf.mxu1 }
 0x29f   : > { %v4584_v62 = vadd.f32 %v4583_v14, %v4582_v2  ;;  %v4481_v16 = vadd.f32 %v4480_v54, %v4479_v17  ;;  %v8146_v14 = vld [vmem:[#allocation22_spill] sm:$0xff] }
 0x2a0   : > { %v4585_v22 = vpop.f32.mrf.mxu0  ;;  %v4610_v46 = vpop.f32.mrf.mxu1  ;;  %5025 = vmatmul.mubr.msk.bf16.vlgmr.msra.gmra.mxu1 %vm8147_vm2, %v8146_v14 }
 0x2a1   : > { %v7118_v57 = vadd.f32 %v4584_v62, %v4472_v15 }
 0x2a2   : > { %v4586_v63 = vpop.f32.mrf.mxu0  ;;  %v4611_v52 = vpop.f32.mrf.mxu1 }
 0x2a3   : > { %v4587_v11 = vadd.f32 %v4586_v63, %v4585_v22  ;;  %v4612_v30 = vadd.f32 %v4611_v52, %v4610_v46  ;;  %v8148_v22 = vld [vmem:[#allocation23_spill] sm:$0xff] }
 0x2a4   : > { %v4588_v20 = vpop.f32.mrf.mxu0  ;;  %v4613_v31 = vpop.f32.mrf.mxu1  ;;  %5028 = vmatprep.mubr.msk.bf16.mxu1 %vm8149_vm4, %v8148_v22 }
 0x2a5   : > { %v7120_v61 = vadd.f32 %v4587_v11, %v4475_v53  ;;  %v2795_v1 = vadd.f32 %v4612_v30, %v6946_v36 }
 0x2a6   : > { %v4589_v43 = vpop.f32.mrf.mxu0  ;;  %v4614_v3 = vpop.f32.mrf.mxu1 }
 0x2a7   : > { %v4590_v58 = vadd.f32 %v4589_v43, %v4588_v20  ;;  %v4615_v15 = vadd.f32 %v4614_v3, %v4613_v31 }
 0x2a8   : > { %v4591_v56 = vpop.f32.mrf.mxu0  ;;  %v4616_v6 = vpop.f32.mrf.mxu1 }
 0x2a9   : > { %v7123_v42 = vadd.f32 %v4590_v58, %v4478_v18  ;;  %v2798_v53 = vadd.f32 %v4615_v15, %v6955_v10 }
 0x2aa   : > { %v4592_v33 = vpop.f32.mrf.mxu0  ;;  %v4617_v36 = vpop.f32.mrf.mxu1 }
 0x2ab   : > { %v4593_v32 = vadd.f32 %v4592_v33, %v4591_v56  ;;  %v4618_v44 = vadd.f32 %v4617_v36, %v4616_v6  ;;  %v8150_v56 = vld [vmem:[#allocation24_spill] sm:$0xff] }
 0x2ac   : > { %v4722_v39 = vpop.f32.mrf.mxu0  ;;  %v4619_v48 = vpop.f32.mrf.mxu1  ;;  %5029 = vmatmul.mubr.msk.bf16.gmra.mxu1 %vm8151_vm14, %v8150_v56 }
 0x2ad   : > { %v7129_v23 = vadd.f32 %v4593_v32, %v4481_v16  ;;  %v7134_v18 = vadd.f32 %v4618_v44, %v6958_v40 }
 0x2ae   : > { %v4723_v2 = vpop.f32.mrf.mxu0  ;;  %v4620_v62 = vpop.f32.mrf.mxu1 }
 0x2af   : > { %8145 = vst [vmem:[#allocation51_spill] sm:$0xff] %v7129_v23  ;;  %v4724_v37 = vadd.f32 %v4723_v2, %v4722_v39  ;;  %v4621_v54 = vadd.f32 %v4620_v62, %v4619_v48 }
 0x2b0   : > { %v4725_v10 = vpop.f32.mrf.mxu0  ;;  %v4622_v11 = vpop.f32.mrf.mxu1 }
 0x2b1   : > { %v7138_v17 = vadd.f32 %v4724_v37, %v2795_v1  ;;  %v7143_v46 = vadd.f32 %v4621_v54, %v6968_v51  ;;  %v8152_v51 = vld [vmem:[#allocation25_spill] sm:$0xff]  ;;  %v8154_v37 = vld [vmem:[#allocation26_spill] sm:$0xff] }
 0x2b2   : > { %v4726_v16 = vpop.f32.mrf.mxu0  ;;  %v4623_v40 = vpop.f32.mrf.mxu1  ;;  %5032 = vmatprep.mubr.msk.bf16.mxu1 %vm8153_vm15, %v8152_v51 }
 0x2b3   : > { %v4727_v63 = vadd.f32 %v4726_v16, %v4725_v10  ;;  %v4624_v30 = vadd.f32 %v4623_v40, %v4622_v11  ;;  %v8156_v10 = vld [vmem:[#allocation27_spill] sm:$0xff] }
 0x2b4   : > { %v7145_v20 = vpop.f32.mrf.mxu0  ;;  %v4625_v58 = vpop.f32.mrf.mxu1  ;;  %5033 = vmatmul.mubr.msk.bf16.gmra.mxu1 %vm8155_vm10, %v8154_v37 }
 0x2b5   : > { %v7147_v52 = vadd.f32 %v4727_v63, %v2798_v53  ;;  %v7152_v31 = vadd.f32 %v4624_v30, %v6971_v49  ;;  %5036 = vmatprep.mubr.msk.bf16.mxu1 %vm8157_vm8, %v8156_v10 }
 0x2b6   : > { %v7149_v43 = vpop.f32.mrf.mxu0  ;;  %v4626_v3 = vpop.f32.mrf.mxu1 }
 0x2b7   : > { %v4627_v15 = vadd.f32 %v4626_v3, %v4625_v58  ;;  %v8158_v58 = vld [vmem:[#allocation28_spill] sm:$0xff]  ;;  %v8160_v3 = vld [vmem:[#allocation29_spill] sm:$0xff] }
 0x2b8   : > { %v7154_v1 = vpop.f32.mrf.mxu0  ;;  %v4628_v59 = vpop.f32.mrf.mxu1 }
 0x2b9   : > { %v7163_v32 = vadd.f32 %v4627_v15, %v6984_v41 }
 0x2ba   : > { %v7160_v33 = vpop.f32.mrf.mxu0  ;;  %v4629_v49 = vpop.f32.mrf.mxu1 }
 0x2bb   : > { %v4630_v53 = vadd.f32 %v4629_v49, %v4628_v59 }
 0x2bc   : > { %v7165_v6 = vpop.f32.mrf.mxu0  ;;  %v4631_v36 = vpop.f32.mrf.mxu1  ;;  %5037 = vmatmul.mubr.msk.bf16.gmra.mxu1 %vm8159_vm13, %v8158_v58 }
 0x2bd   : > { %v7170_v44 = vadd.f32 %v4630_v53, %v6990_v19  ;;  %5040 = vmatprep.mubr.msk.bf16.mxu1 %vm8161_vm12, %v8160_v3 }
 0x2be   : > { %v7167_v39 = vpop.f32.mrf.mxu0  ;;  %v4632_v48 = vpop.f32.mrf.mxu1 }
 0x2bf   : > { %v4633_v41 = vadd.f32 %v4632_v48, %v4631_v36 }
 0x2c0   : > { %v7172_v2 = vpop.f32.mrf.mxu0  ;;  %v4634_v62 = vpop.f32.mrf.mxu1 }
 0x2c1   : > { %v7181_v22 = vadd.f32 %v4633_v41, %v7000_v7  ;;  %v8163_v41 = vld [vmem:[#allocation30_spill] sm:$0xff] }
 0x2c2   : > { %v7178_v14 = vpop.f32.mrf.mxu0  ;;  %v4635_v19 = vpop.f32.mrf.mxu1 }
 0x2c3   : > { %v4636_v16 = vadd.f32 %v4635_v19, %v4634_v62  ;;  %v8165_v19 = vld [vmem:[#allocation31_spill] sm:$0xff] }
 0x2c4   : > { %v7183_v54 = vpop.f32.mrf.mxu0  ;;  %v4637_v11 = vpop.f32.mrf.mxu1  ;;  %5041 = vmatmul.mubr.msk.bf16.gmra.mxu1 %vm8164_vm3, %v8163_v41  ;;  %v8168_v41 = vld [vmem:[#allocation32_spill] sm:$0xff] }
 0x2c5   : > { %v7188_v40 = vadd.f32 %v4636_v16, %v7005_v0  ;;  %5044 = vmatprep.mubr.msk.bf16.mxu1 %vm8166_vm7, %v8165_v19 }
 0x2c6   : > { %v7185_v63 = vpop.f32.mrf.mxu0  ;;  %v4638_v56 = vpop.f32.mrf.mxu1 }
 0x2c7   : > { %v4639_v7 = vadd.f32 %v4638_v56, %v4637_v11 }
 0x2c8   : > { %v7190_v30 = vpop.f32.mrf.mxu0  ;;  %v4640_v15 = vpop.f32.mrf.mxu1 }
 0x2c9   : > { %v7199_v59 = vadd.f32 %v4639_v7, %v7021_v12 }
 0x2ca   : > { %v7196_v51 = vpop.f32.mrf.mxu0  ;;  %v4641_v0 = vpop.f32.mrf.mxu1 }
 0x2cb   : > { %8162 = vst [vmem:[#allocation43_spill] sm:$0xff] %v7199_v59  ;;  %v4642_v53 = vadd.f32 %v4641_v0, %v4640_v15 }
 0x2cc   : > { %v7201_v49 = vpop.f32.mrf.mxu0  ;;  %v4643_v37 = vpop.f32.mrf.mxu1  ;;  %5045 = vmatmul.mubr.msk.bf16.gmra.mxu1 %vm8169_vm5, %v8168_v41 }
 0x2cd   : > { %v7206_v48 = vadd.f32 %v4642_v53, %v7024_v25 }
 0x2ce   : > { %v7203_v36 = vpop.f32.mrf.mxu0  ;;  %v4644_v62 = vpop.f32.mrf.mxu1 }
 0x2cf   : > { %v4645_v12 = vadd.f32 %v4644_v62, %v4643_v37  ;;  %v8170_v62 = vld [vmem:[#allocation33_spill] sm:$0xff] }
 0x2d0   : > { %v7208_v10 = vpop.f32.mrf.mxu0  ;;  %v4646_v11 = vpop.f32.mrf.mxu1  ;;  %5048 = vmatprep.mubr.msk.bf16.mxu1 %vm8171_vm9, %v8170_v62  ;;  %v8176_v62 = vld [vmem:[#allocation34_spill] sm:$0xff] }
 0x2d1   : > { %v7217_v58 = vadd.f32 %v4645_v12, %v7033_v45 }
 0x2d2   : > { %v7214_v16 = vpop.f32.mrf.mxu0  ;;  %v4647_v25 = vpop.f32.mrf.mxu1 }
 0x2d3   : > { %v4648_v3 = vadd.f32 %v4647_v25, %v4646_v11 }
 0x2d4   : > { %v7219_v56 = vpop.f32.mrf.mxu0  ;;  %v4649_v15 = vpop.f32.mrf.mxu1  ;;  %5049 = vmatmul.mubr.msk.bf16.gmra.mxu1 %vm8177_vm11, %v8176_v62 }
 0x2d5   : > { %v7224_v0 = vadd.f32 %v4648_v3, %v7036_v4 }
 0x2d6   : > { %v7221_v7 = vpop.f32.mrf.mxu0  ;;  %v4650_v37 = vpop.f32.mrf.mxu1 }
 0x2d7   : > { %8167 = vst [vmem:[#allocation41_spill] sm:$0xff] %v7224_v0  ;;  %v4651_v45 = vadd.f32 %v4650_v37, %v4649_v15 }
 0x2d8   : > { %v7226_v53 = vpop.f32.mrf.mxu0  ;;  %v4652_v12 = vpop.f32.mrf.mxu1 }
 0x2d9   : > { %v7235_v11 = vadd.f32 %v4651_v45, %v7045_v27 }
 0x2da   : > { %v7232_v19 = vpop.f32.mrf.mxu0  ;;  %v4653_v4 = vpop.f32.mrf.mxu1 }
 0x2db   : > { %8172 = vst [vmem:[#allocation40_spill] sm:$0xff] %v7235_v11  ;;  %v4654_v3 = vadd.f32 %v4653_v4, %v4652_v12 }
 0x2dc   : > { %v7237_v25 = vpop.f32.mrf.mxu0  ;;  %v4655_v0 = vpop.f32.mrf.mxu1 }
 0x2dd   : > { %v7242_v41 = vadd.f32 %v4654_v3, %v7047_v28 }
 0x2de   : > { %v7239_v23 = vpop.f32.mrf.mxu0  ;;  %v4656_v15 = vpop.f32.mrf.mxu1 }
 0x2df   : > { %8173 = vst [vmem:[#allocation54_spill] sm:$0xff] %v7239_v23  ;;  %8174 = vst [vmem:[#allocation46_spill] sm:$0xff] %v7242_v41  ;;  %v4657_v37 = vadd.f32 %v4656_v15, %v4655_v0 }
 0x2e0   : > { %v7244_v59 = vpop.f32.mrf.mxu0  ;;  %v4658_v27 = vpop.f32.mrf.mxu1 }
 0x2e1   : > { %8175 = vst [vmem:[#allocation45_spill] sm:$0xff] %v7244_v59  ;;  %v7251_v45 = vadd.f32 %v4657_v37, %v7055_v29 }
 0x2e2   : > { %v7248_v60 = vpop.f32.mrf.mxu0  ;;  %v4659_v4 = vpop.f32.mrf.mxu1 }
 0x2e3   : > { %8178 = vst [vmem:[#allocation42_spill] sm:$0xff] %v7248_v60  ;;  %8179 = vst [vmem:[#allocation57_spill] sm:$0xff] %v7251_v45  ;;  %v4660_v11 = vadd.f32 %v4659_v4, %v4658_v27 }
 0x2e4   : > { %v7253_v12 = vpop.f32.mrf.mxu0  ;;  %v4661_v28 = vpop.f32.mrf.mxu1 }
 0x2e5   : > { %v7258_v3 = vadd.f32 %v4660_v11, %v7057_v50 }
 0x2e6   : > { %v7255_v23 = vpop.f32.mrf.mxu0  ;;  %v4662_v62 = vpop.f32.mrf.mxu1 }
 0x2e7   : > { %8180 = vst [vmem:[#allocation50_spill] sm:$0xff] %v7258_v3  ;;  %v4663_v0 = vadd.f32 %v4662_v62, %v4661_v28 }
 0x2e8   : > { %v7260_v59 = vpop.f32.mrf.mxu0  ;;  %v4664_v60 = vpop.f32.mrf.mxu1 }
 0x2e9   : > { %v7265_v29 = vadd.f32 %v4663_v0, %v7065_v55 }
 0x2ea   : > { %v7262_v15 = vpop.f32.mrf.mxu0  ;;  %v4665_v45 = vpop.f32.mrf.mxu1 }
 0x2eb   : > { %8181 = vst [vmem:[#allocation49_spill] sm:$0xff] %v7262_v15  ;;  %8182 = vst [vmem:[#allocation36_spill] sm:$0xff] %v7265_v29  ;;  %v4666_v27 = vadd.f32 %v4665_v45, %v4664_v60 }
 0x2ec   : > { %v7267_v37 = vpop.f32.mrf.mxu0  ;;  %v4667_v41 = vpop.f32.mrf.mxu1 }
 0x2ed   : > { %v7272_v50 = vadd.f32 %v4666_v27, %v7067_v21 }
 0x2ee   : > { %v7269_v4 = vpop.f32.mrf.mxu0  ;;  %v4668_v3 = vpop.f32.mrf.mxu1 }
 0x2ef   : > { %8183 = vst [vmem:[#allocation60_spill] sm:$0xff] %v7269_v4  ;;  %8184 = vst [vmem:[#allocation53_spill] sm:$0xff] %v7272_v50  ;;  %v4669_v28 = vadd.f32 %v4668_v3, %v4667_v41 }
 0x2f0   : > { %v7274_v11 = vpop.f32.mrf.mxu0  ;;  %v4670_v15 = vpop.f32.mrf.mxu1 }
 0x2f1   : > { %8185 = vst [vmem:[#allocation52_spill] sm:$0xff] %v7274_v11  ;;  %v7279_v55 = vadd.f32 %v4669_v28, %v7075_v5 }
 0x2f2   : > { %v7276_v62 = vpop.f32.mrf.mxu0  ;;  %v4671_v29 = vpop.f32.mrf.mxu1 }
 0x2f3   : > { %8186 = vst [vmem:[#allocation39_spill] sm:$0xff] %v7276_v62  ;;  %8187 = vst [vmem:[#allocation48_spill] sm:$0xff] %v7279_v55  ;;  %v4672_v60 = vadd.f32 %v4671_v29, %v4670_v15 }
 0x2f4   : > { %v7281_v0 = vpop.f32.mrf.mxu0  ;;  %v4673_v4 = vpop.f32.mrf.mxu1 }
 0x2f5   : > { %v7286_v21 = vadd.f32 %v4672_v60, %v7077_v35 }
 0x2f6   : > { %v7283_v45 = vpop.f32.mrf.mxu0  ;;  %v4674_v11 = vpop.f32.mrf.mxu1 }
 0x2f7   : > { %8188 = vst [vmem:[#allocation56_spill] sm:$0xff] %v7286_v21  ;;  %v4675_v41 = vadd.f32 %v4674_v11, %v4673_v4 }
 0x2f8   : > { %v7288_v27 = vpop.f32.mrf.mxu0  ;;  %v4676_v62 = vpop.f32.mrf.mxu1 }
 0x2f9   : > { %8189 = vst [vmem:[#allocation55_spill] sm:$0xff] %v7288_v27  ;;  %v7293_v5 = vadd.f32 %v4675_v41, %v7087_v13 }
 0x2fa   : > { %v7290_v3 = vpop.f32.mrf.mxu0  ;;  %v4677_v55 = vpop.f32.mrf.mxu1 }
 0x2fb   : > { %8190 = vst [vmem:[#allocation38_spill] sm:$0xff] %v7293_v5  ;;  %v4678_v15 = vadd.f32 %v4677_v55, %v4676_v62 }
 0x2fc   : > { %v7295_v28 = vpop.f32.mrf.mxu0  ;;  %v4679_v29 = vpop.f32.mrf.mxu1 }
 0x2fd   : > { %8191 = vst [vmem:[#allocation59_spill] sm:$0xff] %v7295_v28  ;;  %v7298_v50 = vadd.f32 %v4678_v15, %v7091_v9 }
 0x2fe   : > { %v7300_v35 = vpop.f32.mrf.mxu0  ;;  %v4680_v60 = vpop.f32.mrf.mxu1 }
 0x2ff   : > { %8192 = vst [vmem:[#allocation58_spill] sm:$0xff] %v7298_v50  ;;  %v4681_v21 = vadd.f32 %v4680_v60, %v4679_v29 }
 0x300   : > { %v4682_v27 = vpop.f32.mrf.mxu1  ;;  %v7302_v4 = vpop.f32.mrf.mxu0 }
 0x301   : > { %8193 = vst [vmem:[#allocation35_spill] sm:$0xff] %v7302_v4  ;;  %v7305_v11 = vadd.f32 %v4681_v21, %v7099_v47 }
 0x302   : > { %v4683_v13 = vpop.f32.mrf.mxu1  ;;  %v7307_v28 = vpop.f32.mrf.mxu0 }
 0x303   : > { %8194 = vst [vmem:[#allocation62_spill] sm:$0xff] %v7305_v11  ;;  %v4684_v41 = vadd.f32 %v4683_v13, %v4682_v27 }
 0x304   : > { %v4685_v5 = vpop.f32.mrf.mxu1  ;;  %v7312_v50 = vpop.f32.mrf.mxu0 }
 0x305   : > { %v7310_v62 = vadd.f32 %v4684_v41, %v7101_v24 }
 0x306   : > { %v4686_v9 = vpop.f32.mrf.mxu1  ;;  %v7317_v21 = vpop.f32.mrf.mxu0 }
 0x307   : > { %8195 = vst [vmem:[#allocation61_spill] sm:$0xff] %v7310_v62  ;;  %v4687_v55 = vadd.f32 %v4686_v9, %v4685_v5 }
 0x308   : > { %v4688_v15 = vpop.f32.mrf.mxu1  ;;  %v7322_v41 = vpop.f32.mrf.mxu0 }
 0x309   : > { %v7315_v29 = vadd.f32 %v4687_v55, %v7109_v38 }
 0x30a   : > { %v4689_v60 = vpop.f32.mrf.mxu1  ;;  %v7327_v55 = vpop.f32.mrf.mxu0 }
 0x30b   : > { %8196 = vst [vmem:[#allocation63_spill] sm:$0xff] %v7315_v29  ;;  %v4690_v4 = vadd.f32 %v4689_v60, %v4688_v15 }
 0x30c   : > { %v4691_v47 = vpop.f32.mrf.mxu1 }
 0x30d   : > { %v7320_v27 = vadd.f32 %v4690_v4, %v7111_v34  ;;  %v7332_v4 = vpop.f32.mrf.mxu0 }
 0x30e   : > { %v4692_v13 = vpop.f32.mrf.mxu1 }
 0x30f   : > { %v4693_v11 = vadd.f32 %v4692_v13, %v4691_v47 }
 0x310   : > { %v4694_v24 = vpop.f32.mrf.mxu1 }
 0x311   : > { %v7325_v5 = vadd.f32 %v4693_v11, %v7116_v8  ;;  %v4730_v8 = vadd.f32 %v7149_v43, %v7145_v20  ;;  %v7354_v20 = vld [vmem:[%s7744_s5] ss:$0 sm:$0xff] }
 0x312   : > { %v4695_v9 = vpop.f32.mrf.mxu1 }
 0x313   : > { %v4696_v62 = vadd.f32 %v4695_v9, %v4694_v24  ;;  %v7341_v9 = vpop.f32.mrf.mxu0 }
 0x314   : > { %v4697_v38 = vpop.f32.mrf.mxu1 }
 0x315   : > { %v7330_v15 = vadd.f32 %v4696_v62, %v7118_v57  ;;  %v7356_v43 = vpop.f32.mrf.mxu0 }
 0x316   : > { %v4698_v60 = vpop.f32.mrf.mxu1 }
 0x317   : > { %v4699_v29 = vadd.f32 %v4698_v60, %v4697_v38  ;;  %v4733_v38 = vadd.f32 %v7160_v33, %v7154_v1  ;;  %v7368_v33 = vld [vmem:[%s7745_s6] ss:$0 sm:$0xff] }
 0x318   : > { %v4700_v34 = vpop.f32.mrf.mxu1 }
 0x319   : > { %v7335_v47 = vadd.f32 %v4699_v29, %v7120_v61  ;;  %v2964_v61 = vadd.f32 %v4730_v8, %v7134_v18  ;;  %v2967_v1 = vadd.f32 %v4733_v38, %v7143_v46  ;;  %v4736_v18 = vadd.f32 %v7167_v39, %v7165_v6 }
 0x31a   : > { %v4701_v13 = vpop.f32.mrf.mxu1  ;;  %v4739_v39 = vadd.f32 %v7178_v14, %v7172_v2  ;;  %v4745_v38 = vadd.f32 %v7196_v51, %v7190_v30 }
 0x31b   : > { %8197 = vst [vmem:[#allocation44_spill] sm:$0xff] %v7335_v47  ;;  %v4702_v11 = vadd.f32 %v4701_v13, %v4700_v34  ;;  %v2972_v47 = vadd.f32 %v4736_v18, %v7152_v31 }
 0x31c   : > { %v7339_v24 = vpop.f32.mrf.mxu1  ;;  %v2983_v18 = vadd.f32 %v4745_v38, %v7181_v22 }
 0x31d   : > { %v7344_v57 = vadd.f32 %v4702_v11, %v7123_v42  ;;  %v4742_v42 = vadd.f32 %v7185_v63, %v7183_v54 }
 0x31e   : > { %v7346_v62 = vpop.f32.mrf.mxu1 }
 0x31f   : > { %v2980_v6 = vadd.f32 %v4742_v42, %v7170_v44  ;;  %v4754_v44 = vadd.f32 %v7221_v7, %v7219_v56 }
 0x320   : > { %v4938_v29 = vpop.f32.mrf.mxu1 }
 0x321   : > { %v3125_v60 = vadd.f32 %v4938_v29, %v2964_v61  ;;  %v7370_v61 = vpop.f32.mrf.mxu0  ;;  %v2996_v22 = vadd.f32 %v4754_v44, %v7206_v48 }
 0x322   : > { %v3116_v34 = vpop.f32.mrf.mxu1 }
 0x323   : > { %v3252_v13 = vmul.f32 %v7354_v20, %v3125_v60  ;;  %v3117_v11 = vadd.f32 %v3116_v34, %v7138_v17 }
 0x324   : > { %v4939_v8 = vpop.f32.mrf.mxu1 }
 0x325   : > { %v3250_v29 = vmul.f32 %v7354_v20, %v3117_v11  ;;  %v3128_v54 = vadd.f32 %v4939_v8, %v2967_v1  ;;  %v3291_v60 = vadd.f32 %v7368_v33, %v3252_v13  ;;  %v7382_v11 = vpop.f32.mrf.mxu0 }
 0x326   : > { %v3119_v63 = vpop.f32.mrf.mxu1 }
 0x327   : > { %v3253_v17 = vmul.f32 %v7354_v20, %v3128_v54  ;;  %v3120_v46 = vadd.f32 %v3119_v63, %v7147_v52  ;;  %v3289_v1 = vadd.f32 %v7368_v33, %v3250_v29  ;;  %v3323_v2 = vmax.f32 %v3291_v60, 0.0 }
 0x328   : > { %v4942_v34 = vpop.f32.mrf.mxu1  ;;  %v2975_v29 = vadd.f32 %v4739_v39, %v7163_v32  ;;  %v4748_v63 = vadd.f32 %v7203_v36, %v7201_v49  ;;  %v4757_v60 = vadd.f32 %v7232_v19, %v7226_v53  ;;  %v4751_v39 = vadd.f32 %v7214_v16, %v7208_v10 }
 0x329   : > { %v3292_v13 = vadd.f32 %v7368_v33, %v3253_v17  ;;  %v3251_v8 = vmul.f32 %v7354_v20, %v3120_v46  ;;  %v3141_v52 = vadd.f32 %v4942_v34, %v2980_v6  ;;  %v7395_v17 = vpop.f32.mrf.mxu0  ;;  %v3321_v46 = vmax.f32 %v3289_v1, 0.0 }
 0x32a   : > { %v3132_v42 = vpop.f32.mrf.mxu1 }
 0x32b   : > { %v3324_v14 = vmax.f32 %v3292_v13, 0.0  ;;  %v3290_v30 = vadd.f32 %v7368_v33, %v3251_v8  ;;  %v3133_v51 = vadd.f32 %v3132_v42, %v2972_v47  ;;  %v3256_v31 = vmul.f32 %v7354_v20, %v3141_v52  ;;  %v7405_v1 = vpop.f32.mrf.mxu0 }
 0x32c   : > { %v4943_v54 = vpop.f32.mrf.mxu1  ;;  %v2988_v8 = vadd.f32 %v4748_v63, %v7188_v40  ;;  %v2999_v42 = vadd.f32 %v4757_v60, %v7217_v58  ;;  %v8198_v40 = vld [vmem:[#allocation54_spill] sm:$0xff]  ;;  %v8200_v63 = vld [vmem:[#allocation43_spill] sm:$0xff] }
 0x32d   : > { %v3354_v56 = vpack.c.bf16 %v3324_v14, %v3323_v2  ;;  %v3322_v7 = vmax.f32 %v3290_v30, 0.0  ;;  %v3254_v47 = vmul.f32 %v7354_v20, %v3133_v51  ;;  %v3144_v6 = vadd.f32 %v4943_v54, %v2983_v18  ;;  %v8199_v54 = vld [vmem:[#allocation37_spill] sm:$0xff] }
 0x32e   : > { %v3135_v34 = vpop.f32.mrf.mxu1  ;;  %v3295_v32 = vadd.f32 %v7368_v33, %v3256_v31  ;;  %v4766_v2 = vadd.f32 %v7255_v23, %v7253_v12  ;;  %v4760_v30 = vadd.f32 %v8198_v40, %v7237_v25 }
 0x32f   : > { %v3136_v13 = vadd.f32 %v3135_v34, %v2975_v29  ;;  %v3353_v38 = vpack.c.bf16 %v3322_v7, %v3321_v46  ;;  %v3257_v49 = vmul.f32 %v7354_v20, %v3144_v6  ;;  %v3293_v52 = vadd.f32 %v7368_v33, %v3254_v47  ;;  %v7420_v29 = vpop.f32.mrf.mxu0  ;;  %v8201_v6 = vld [vmem:[#allocation46_spill] sm:$0xff] }
 0x330   : > { %v4946_v36 = vpop.f32.mrf.mxu1  ;;  %v3327_v51 = vmax.f32 %v3295_v32, 0.0  ;;  %v2991_v46 = vadd.f32 %v4751_v39, %v8200_v63  ;;  %v3012_v34 = vadd.f32 %v4766_v2, %v8201_v6  ;;  %v8204_v32 = vld [vmem:[#allocation49_spill] sm:$0xff]  ;;  %v4778_v2 = vadd.f32 %v7283_v45, %v7281_v0 }
 0x331   : > { %v3255_v53 = vmul.f32 %v7354_v20, %v3136_v13  ;;  %v3157_v19 = vadd.f32 %v4946_v36, %v2996_v22  ;;  %4984 = vmatprep.mubr.bf16.mxu0 %v3353_v38  ;;  %v3296_v48 = vadd.f32 %v7368_v33, %v3257_v49  ;;  %v8202_v13 = vld [vmem:[#allocation45_spill] sm:$0xff]  ;;  %v8203_v22 = vld [vmem:[#allocation42_spill] sm:$0xff]  ;;  %v4769_v49 = vadd.f32 %v8204_v32, %v7260_v59  ;;  %v8211_v32 = vld [vmem:[#allocation52_spill] sm:$0xff] }
 0x332   : > { %v3148_v44 = vpop.f32.mrf.mxu1  ;;  %4985 = vmatmul.mubr.bf16.vlgmr.msra.gmra.mxu0 %v3354_v56  ;;  %v3325_v56 = vmax.f32 %v3293_v52, 0.0  ;;  %v4763_v38 = vadd.f32 %v8203_v22, %v8202_v13  ;;  %v8210_v6 = vld [vmem:[#allocation53_spill] sm:$0xff] }
 0x333   : > { %v3294_v10 = vadd.f32 %v7368_v33, %v3255_v53  ;;  %v3260_v16 = vmul.f32 %v7354_v20, %v3157_v19  ;;  %v3149_v14 = vadd.f32 %v3148_v44, %v2988_v8  ;;  %5017 = vmatpush3.bf16.msra.mxu0 %v7085_v26  ;;  %v3328_v31 = vmax.f32 %v3296_v48, 0.0  ;;  %v8205_v53 = vld [vmem:[#allocation41_spill] sm:$0xff]  ;;  %v7433_v8 = vpop.f32.mrf.mxu0 }
 0x334   : > { %v4947_v18 = vpop.f32.mrf.mxu1  ;;  %5018 = vmatprep.subr.bf16.mxu0 %v8199_v54  ;;  %v3004_v19 = vadd.f32 %v4760_v30, %v8205_v53 }
 0x335   : > { %v3326_v58 = vmax.f32 %v3294_v10, 0.0  ;;  %v3258_v23 = vmul.f32 %v7354_v20, %v3149_v14  ;;  %v3160_v12 = vadd.f32 %v4947_v18, %v2999_v42  ;;  %v3356_v7 = vpack.c.bf16 %v3328_v31, %v3327_v51  ;;  %v8206_v51 = vld [vmem:[#allocation57_spill] sm:$0xff]  ;;  %v7446_v63 = vpop.f32.mrf.mxu0 }
 0x336   : > { %v3151_v60 = vpop.f32.mrf.mxu1  ;;  %v3299_v26 = vadd.f32 %v7368_v33, %v3260_v16  ;;  %v3015_v31 = vadd.f32 %v4769_v49, %v8206_v51  ;;  %v8212_v49 = vld [vmem:[#allocation39_spill] sm:$0xff] }
 0x337   : > { %v3261_v25 = vmul.f32 %v7354_v20, %v3160_v12  ;;  %v3152_v47 = vadd.f32 %v3151_v60, %v2991_v46  ;;  %5019 = vmatpush3.bf16.msra.mxu0 %v8199_v54  ;;  %v3355_v39 = vpack.c.bf16 %v3326_v58, %v3325_v56  ;;  %v3297_v52 = vadd.f32 %v7368_v33, %v3258_v23  ;;  %v8207_v54 = vld [vmem:[#allocation40_spill] sm:$0xff]  ;;  %v8209_v56 = vld [vmem:[#allocation55_spill] sm:$0xff] }
 0x338   : > { %v4950_v36 = vpop.f32.mrf.mxu1  ;;  %v3331_v16 = vmax.f32 %v3299_v26, 0.0  ;;  %v3007_v58 = vadd.f32 %v4763_v38, %v8207_v54  ;;  %v8208_v23 = vld [vmem:[#allocation60_spill] sm:$0xff]  ;;  %v4781_v60 = vadd.f32 %v7290_v3, %v8209_v56 }
 0x339   : > { %v3300_v48 = vadd.f32 %v7368_v33, %v3261_v25  ;;  %v3259_v44 = vmul.f32 %v7354_v20, %v3152_v47  ;;  %v3173_v42 = vadd.f32 %v4950_v36, %v3012_v34  ;;  %4988 = vmatprep.mubr.bf16.mxu0 %v3355_v39  ;;  %v4772_v12 = vadd.f32 %v8208_v23, %v7267_v37  ;;  %v7456_v39 = vpop.f32.mrf.mxu0 }
 0x33a   : > { %v3164_v10 = vpop.f32.mrf.mxu1  ;;  %4989 = vmatmul.mubr.bf16.gmra.mxu0 %v3356_v7  ;;  %v3329_v0 = vmax.f32 %v3297_v52, 0.0  ;;  %v3028_v34 = vadd.f32 %v4778_v2, %v8210_v6  ;;  %v4775_v36 = vadd.f32 %v8212_v49, %v8211_v32  ;;  %v8214_v2 = vld [vmem:[#allocation48_spill] sm:$0xff] }
 0x33b   : > { %v3332_v59 = vmax.f32 %v3300_v48, 0.0  ;;  %v3298_v14 = vadd.f32 %v7368_v33, %v3259_v44  ;;  %v3165_v40 = vadd.f32 %v3164_v10, %v3004_v19  ;;  %v3264_v30 = vmul.f32 %v7354_v20, %v3173_v42  ;;  %v8213_v19 = vld [vmem:[#allocation50_spill] sm:$0xff] }
 0x33c   : > { %v4951_v18 = vpop.f32.mrf.mxu1  ;;  %v3020_v52 = vadd.f32 %v4772_v12, %v8213_v19  ;;  %v3031_v10 = vadd.f32 %v4781_v60, %v8214_v2  ;;  %v4802_v19 = vadd.f32 %v7395_v17, %v7382_v11 }
 0x33d   : > { %v3358_v45 = vpack.c.bf16 %v3332_v59, %v3331_v16  ;;  %v3330_v46 = vmax.f32 %v3298_v14, 0.0  ;;  %v3262_v7 = vmul.f32 %v7354_v20, %v3165_v40  ;;  %v3176_v26 = vadd.f32 %v4951_v18, %v3015_v31 }
 0x33e   : > { %v3167_v25 = vpop.f32.mrf.mxu1  ;;  %v3303_v22 = vadd.f32 %v7368_v33, %v3264_v30  ;;  %v4790_v16 = vadd.f32 %v7317_v21, %v7312_v50  ;;  %v8215_v30 = vld [vmem:[#allocation59_spill] sm:$0xff] }
 0x33f   : > { %v3168_v47 = vadd.f32 %v3167_v25, %v3007_v58  ;;  %v3357_v13 = vpack.c.bf16 %v3330_v46, %v3329_v0  ;;  %v3265_v37 = vmul.f32 %v7354_v20, %v3176_v26  ;;  %v3301_v48 = vadd.f32 %v7368_v33, %v3262_v7  ;;  %v7469_v58 = vpop.f32.mrf.mxu0  ;;  %v8216_v46 = vld [vmem:[#allocation36_spill] sm:$0xff] }
 0x340   : > { %v4954_v38 = vpop.f32.mrf.mxu1  ;;  %v4784_v51 = vadd.f32 %v7300_v35, %v8215_v30  ;;  %v3335_v31 = vmax.f32 %v3303_v22, 0.0  ;;  %v3023_v50 = vadd.f32 %v4775_v36, %v8216_v46  ;;  %v8217_v35 = vld [vmem:[#allocation58_spill] sm:$0xff] }
 0x341   : > { %v3263_v3 = vmul.f32 %v7354_v20, %v3168_v47  ;;  %v3189_v53 = vadd.f32 %v4954_v38, %v3028_v34  ;;  %4992 = vmatprep.mubr.bf16.mxu0 %v3357_v13  ;;  %v3304_v44 = vadd.f32 %v7368_v33, %v3265_v37  ;;  %v3333_v21 = vmax.f32 %v3301_v48, 0.0  ;;  %v8218_v47 = vld [vmem:[#allocation35_spill] sm:$0xff]  ;;  %v8219_v37 = vld [vmem:[#allocation56_spill] sm:$0xff]  ;;  %v4812_v32 = vpop.f32.mrf.mxu0 }
 0x342   : > { %v3180_v42 = vpop.f32.mrf.mxu1  ;;  %4993 = vmatmul.mubr.bf16.gmra.mxu0 %v3358_v45  ;;  %v3044_v25 = vadd.f32 %v4790_v16, %v8217_v35  ;;  %v4787_v6 = vadd.f32 %v7307_v28, %v8218_v47  ;;  %v4793_v34 = vadd.f32 %v7327_v55, %v7322_v41  ;;  %v3036_v38 = vadd.f32 %v4784_v51, %v8219_v37  ;;  %v8221_v16 = vld [vmem:[#allocation38_spill] sm:$0xff] }
 0x343   : > { %v3302_v59 = vadd.f32 %v7368_v33, %v3263_v3  ;;  %v3268_v14 = vmul.f32 %v7354_v20, %v3189_v53  ;;  %v3181_v40 = vadd.f32 %v3180_v42, %v3020_v52  ;;  %v3336_v18 = vmax.f32 %v3304_v44, 0.0  ;;  %v8220_v42 = vld [vmem:[#allocation62_spill] sm:$0xff] }
 0x344   : > { %v4955_v54 = vpop.f32.mrf.mxu1  ;;  %v3047_v2 = vadd.f32 %v4793_v34, %v8220_v42  ;;  %v4805_v51 = vadd.f32 %v7420_v29, %v7405_v1  ;;  %v8222_v29 = vld [vmem:[#allocation61_spill] sm:$0xff] }
 0x345   : > { %v3334_v23 = vmax.f32 %v3302_v59, 0.0  ;;  %v3266_v12 = vmul.f32 %v7354_v20, %v3181_v40  ;;  %v3192_v0 = vadd.f32 %v4955_v54, %v3031_v10  ;;  %v3360_v56 = vpack.c.bf16 %v3336_v18, %v3335_v31  ;;  %v4813_v40 = vpop.f32.mrf.mxu0 }
 0x346   : > { %v3183_v60 = vpop.f32.mrf.mxu1  ;;  %v3307_v7 = vadd.f32 %v7368_v33, %v3268_v14  ;;  %v3039_v59 = vadd.f32 %v4787_v6, %v8221_v16  ;;  %v4796_v14 = vadd.f32 %v7341_v9, %v7332_v4  ;;  %v4799_v9 = vadd.f32 %v7370_v61, %v7356_v43  ;;  %v8224_v16 = vld [vmem:[#allocation51_spill] sm:$0xff] }
 0x347   : > { %v3269_v45 = vmul.f32 %v7354_v20, %v3192_v0  ;;  %v3184_v26 = vadd.f32 %v3183_v60, %v3023_v50  ;;  %v3359_v22 = vpack.c.bf16 %v3334_v23, %v3333_v21  ;;  %v3305_v49 = vadd.f32 %v7368_v33, %v3266_v12  ;;  %v4815_v21 = vpop.f32.mrf.mxu0 }
 0x348   : > { %v4958_v13 = vpop.f32.mrf.mxu1  ;;  %v3339_v52 = vmax.f32 %v3307_v7, 0.0  ;;  %v3060_v12 = vadd.f32 %v4802_v19, %v7320_v27  ;;  %v3052_v60 = vadd.f32 %v4796_v14, %v8222_v29  ;;  %v4814_v35 = vadd.f32 %v4813_v40, %v4812_v32 }
 0x349   : > { %v3308_v36 = vadd.f32 %v7368_v33, %v3269_v45  ;;  %v3267_v3 = vmul.f32 %v7354_v20, %v3184_v26  ;;  %v3205_v53 = vadd.f32 %v4958_v13, %v3044_v25  ;;  %4996 = vmatprep.mubr.bf16.mxu0 %v3359_v22  ;;  %v3337_v11 = vmax.f32 %v3305_v49, 0.0  ;;  %v4816_v22 = vpop.f32.mrf.mxu0 }
 0x34a   : > { %v3196_v28 = vpop.f32.mrf.mxu1  ;;  %4997 = vmatmul.mubr.bf16.gmra.mxu0 %v3360_v56  ;;  %v3063_v26 = vadd.f32 %v4805_v51, %v7325_v5  ;;  %v4808_v61 = vadd.f32 %v7446_v63, %v7433_v8  ;;  %v4705_v32 = vadd.f32 %v7346_v62, %v7339_v24 }
 0x34b   : > { %v3340_v48 = vmax.f32 %v3308_v36, 0.0  ;;  %v3306_v41 = vadd.f32 %v7368_v33, %v3267_v3  ;;  %v3197_v55 = vadd.f32 %v3196_v28, %v3036_v38  ;;  %v3272_v44 = vmul.f32 %v7354_v20, %v3205_v53  ;;  %v8223_v36 = vld [vmem:[#allocation63_spill] sm:$0xff] }
 0x34c   : > { %v4959_v10 = vpop.f32.mrf.mxu1  ;;  %v3055_v5 = vadd.f32 %v4799_v9, %v8223_v36  ;;  %v3068_v42 = vadd.f32 %v4808_v61, %v7330_v15 }
 0x34d   : > { %v3362_v17 = vpack.c.bf16 %v3340_v48, %v3339_v52  ;;  %v3338_v30 = vmax.f32 %v3306_v41, 0.0  ;;  %v3270_v31 = vmul.f32 %v7354_v20, %v3197_v55  ;;  %v3208_v18 = vadd.f32 %v4959_v10, %v3047_v2 }
 0x34e   : > { %v3199_v54 = vpop.f32.mrf.mxu1  ;;  %v3311_v46 = vadd.f32 %v7368_v33, %v3272_v44  ;;  %v3076_v52 = vadd.f32 %v4814_v35, %v7344_v57  ;;  %v4811_v48 = vadd.f32 %v7469_v58, %v7456_v39  ;;  %v4817_v41 = vadd.f32 %v4816_v22, %v4815_v21 }
 0x34f   : > { %v3200_v23 = vadd.f32 %v3199_v54, %v3039_v59  ;;  %v3361_v0 = vpack.c.bf16 %v3338_v30, %v3337_v11  ;;  %v3273_v50 = vmul.f32 %v7354_v20, %v3208_v18  ;;  %v3309_v7 = vadd.f32 %v7368_v33, %v3270_v31  ;;  %v8225_v30 = vld [vmem:[#allocation44_spill] sm:$0xff] }
 0x350   : > { %v4962_v4 = vpop.f32.mrf.mxu1  ;;  %v3343_v6 = vmax.f32 %v3311_v46, 0.0  ;;  %v2918_v59 = vadd.f32 %v4705_v32, %v8224_v16  ;;  %v3071_v51 = vadd.f32 %v4811_v48, %v8225_v30  ;;  %v7563_v48 = vld [vmem:[#allocation10] ss:$0 sm:$0xff] }
 0x351   : > { %v3271_v56 = vmul.f32 %v7354_v20, %v3200_v23  ;;  %v3221_v1 = vadd.f32 %v4962_v4, %v3060_v12  ;;  %5000 = vmatprep.mubr.bf16.mxu0 %v3361_v0  ;;  %v3312_v27 = vadd.f32 %v7368_v33, %v3273_v50  ;;  %v3341_v3 = vmax.f32 %v3309_v7, 0.0 }
 0x352   : > { %v3212_v45 = vpop.f32.mrf.mxu1  ;;  %5001 = vmatmul.mubr.bf16.gmra.mxu0 %v3362_v17  ;;  %v3079_v15 = vadd.f32 %v4817_v41, %v2918_v59 }
 0x353   : > { %v3310_v25 = vadd.f32 %v7368_v33, %v3271_v56  ;;  %v3276_v47 = vmul.f32 %v7354_v20, %v3221_v1  ;;  %v3213_v43 = vadd.f32 %v3212_v45, %v3052_v60  ;;  %v3344_v34 = vmax.f32 %v3312_v27, 0.0 }
 0x354   : > { %v4963_v13 = vpop.f32.mrf.mxu1 }
 0x355   : > { %v3342_v37 = vmax.f32 %v3310_v25, 0.0  ;;  %v3274_v38 = vmul.f32 %v7354_v20, %v3213_v43  ;;  %v3224_v49 = vadd.f32 %v4963_v13, %v3063_v26  ;;  %v3364_v53 = vpack.c.bf16 %v3344_v34, %v3343_v6  ;;  %v8226_v25 = vld [vmem:[#allocation19_spill] sm:$0xff] }
 0x356   : > { %v3215_v19 = vpop.f32.mrf.mxu1  ;;  %v3315_v28 = vadd.f32 %v7368_v33, %v3276_v47  ;;  %v8228_v47 = vld [vmem:[#allocation20_spill] sm:$0xff] }
 0x357   : > { %v3277_v8 = vmul.f32 %v7354_v20, %v3224_v49  ;;  %v3216_v63 = vadd.f32 %v3215_v19, %v3055_v5  ;;  %v3363_v44 = vpack.c.bf16 %v3342_v37, %v3341_v3  ;;  %v3313_v24 = vadd.f32 %v7368_v33, %v3274_v38 }
 0x358   : > { %v4966_v55 = vpop.f32.mrf.mxu1  ;;  %v3347_v57 = vmax.f32 %v3315_v28, 0.0  ;;  %v7560_v28 = vld [vmem:[%s7747_s8] ss:$0 sm:$0xff] }
 0x359   : > { %v3316_v62 = vadd.f32 %v7368_v33, %v3277_v8  ;;  %v3275_v2 = vmul.f32 %v7354_v20, %v3216_v63  ;;  %v3237_v10 = vadd.f32 %v4966_v55, %v3076_v52  ;;  %5004 = vmatprep.mubr.bf16.mxu0 %v3363_v44  ;;  %v3345_v31 = vmax.f32 %v3313_v24, 0.0 }
 0x35a   : > { %v3228_v14 = vpop.f32.mrf.mxu1  ;;  %5005 = vmatmul.mubr.bf16.gmra.mxu0 %v3364_v53 }
 0x35b   : > { %v3348_v40 = vmax.f32 %v3316_v62, 0.0  ;;  %v3314_v39 = vadd.f32 %v7368_v33, %v3275_v2  ;;  %v3229_v58 = vadd.f32 %v3228_v14, %v3068_v42  ;;  %v3280_v11 = vmul.f32 %v7354_v20, %v3237_v10 }
 0x35c   : > { %v4967_v17 = vpop.f32.mrf.mxu1 }
 0x35d   : > { %v3366_v18 = vpack.c.bf16 %v3348_v40, %v3347_v57  ;;  %v3346_v54 = vmax.f32 %v3314_v39, 0.0  ;;  %v3278_v23 = vmul.f32 %v7354_v20, %v3229_v58  ;;  %v3240_v12 = vadd.f32 %v4967_v17, %v3079_v15 }
 0x35e   : > { %v3231_v0 = vpop.f32.mrf.mxu1  ;;  %v3319_v4 = vadd.f32 %v7368_v33, %v3280_v11 }
 0x35f   : > { %v3232_v46 = vadd.f32 %v3231_v0, %v3071_v51  ;;  %v3365_v50 = vpack.c.bf16 %v3346_v54, %v3345_v31  ;;  %v3281_v9 = vmul.f32 %v7354_v20, %v3240_v12  ;;  %v3317_v21 = vadd.f32 %v7368_v33, %v3278_v23 }
 0x360   : > { %v3351_v60 = vmax.f32 %v3319_v4, 0.0 }
 0x361   : > { %v3279_v56 = vmul.f32 %v7354_v20, %v3232_v46  ;;  %5008 = vmatprep.mubr.bf16.mxu0 %v3365_v50  ;;  %v3320_v1 = vadd.f32 %v7368_v33, %v3281_v9  ;;  %v3349_v27 = vmax.f32 %v3317_v21, 0.0  ;;  %v5026_v20 = vpop.f32.mrf.mxu1 }
 0x362   : > { %5009 = vmatmul.mubr.bf16.gmra.mxu0 %v3366_v18 }
 0x363   : > { %v3318_v29 = vadd.f32 %v7368_v33, %v3279_v56  ;;  %v3352_v7 = vmax.f32 %v3320_v1, 0.0  ;;  %v3738_v43 = vpop.f32.mrf.mxu1 }
 0x365   : > { %v3350_v45 = vmax.f32 %v3318_v29, 0.0  ;;  %v3368_v26 = vpack.c.bf16 %v3352_v7, %v3351_v60  ;;  %v5027_v61 = vpop.f32.mrf.mxu1 }
 0x367   : > { %v3367_v35 = vpack.c.bf16 %v3350_v45, %v3349_v27  ;;  %v3741_v6 = vpop.f32.mrf.mxu1 }
 0x369   : > { %5012 = vmatprep.mubr.bf16.mxu0 %v3367_v35 }
 0x36a   : > { %5013 = vmatmul.mubr.bf16.gmra.mxu0 %v3368_v26 }
 0x36b   : > { %5020 = vmatprep.mubr.msk.bf16.mxu0 %vm8227_vm1, %v8226_v25 }
 0x36c   : > { %v5030_v33 = vpop.f32.mrf.mxu1 }
 0x36e   : > { %v3754_v34 = vpop.f32.mrf.mxu1 }
 0x370   : > { %v5031_v13 = vpop.f32.mrf.mxu1 }
 0x372   : > { %5021 = vmatmul.mubr.msk.bf16.vlgmr.msra.gmra.mxu0 %vm8229_vm6, %v8228_v47  ;;  %v7537_v22 = vpop.f32.mrf.mxu1 }
 0x374   : > { %v7539_v37 = vpop.f32.mrf.mxu1 }
 0x376   : > { %v7541_v38 = vpop.f32.mrf.mxu1 }
 0x378   : > { %v7543_v49 = vpop.f32.mrf.mxu1 }
 0x37a   : > { %v7549_v32 = vpop.f32.mrf.mxu1 }
 0x37c   : > { %v7555_v19 = vpop.f32.mrf.mxu1 }
 0x37e   : > { %v7565_v41 = vpop.f32.mrf.mxu1 }
 0x380   : > { %v7571_v16 = vpop.f32.mrf.mxu1 }
 0x382   : > { %v7582_v51 = vpop.f32.mrf.mxu1 }
 0x384   : > { %v7590_v21 = vpop.f32.mrf.mxu1 }
 0x386   : > { %v7598_v47 = vpop.f32.mrf.mxu1 }
 0x3f2   : > { %v7545_v36 = vpop.f32.mrf.mxu0 }
 0x3f4   : > { %v7547_v5 = vpop.f32.mrf.mxu0 }
 0x3f6   : > { %v7551_v3 = vpop.f32.mrf.mxu0 }
 0x3f8   : > { %v7553_v53 = vpop.f32.mrf.mxu0 }
 0x3fa   : > { %v4990_v8 = vpop.f32.mrf.mxu0 }
 0x3fb   : > { %v3607_v63 = vmul.f32 %v4990_v8, %v7560_v28 }
 0x3fc   : > { %v3483_v52 = vpop.f32.mrf.mxu0 }
 0x3fd   : > { %v3605_v55 = vmul.f32 %v7560_v28, %v3483_v52  ;;  %v3646_v44 = vadd.f32 %v7563_v48, %v3607_v63 }
 0x3fe   : > { %v4991_v42 = vpop.f32.mrf.mxu0 }
 0x3ff   : > { %v3855_v24 = vadd.f32 %v5026_v20, %v3646_v44  ;;  %v3608_v62 = vmul.f32 %v4991_v42, %v7560_v28  ;;  %v3644_v2 = vadd.f32 %v7563_v48, %v3605_v55  ;;  %v5043_v55 = vpop.f32.mrf.mxu1 }
 0x400   : > { %v3486_v10 = vpop.f32.mrf.mxu0 }
 0x401   : > { %v3887_v59 = vmax.f32 %v3855_v24, 0.0  ;;  %v3853_v14 = vadd.f32 %v3738_v43, %v3644_v2  ;;  %v3606_v57 = vmul.f32 %v7560_v28, %v3486_v10  ;;  %v3647_v40 = vadd.f32 %v7563_v48, %v3608_v62 }
 0x402   : > { %v4994_v39 = vpop.f32.mrf.mxu0 }
 0x403   : > { %3919 = vst [vmem:[%s7577_s26 + $0x30] sm:$0xff] %v3887_v59  ;;  %v3885_v58 = vmax.f32 %v3853_v14, 0.0  ;;  %v3856_v11 = vadd.f32 %v5027_v61, %v3647_v40  ;;  %v3611_v15 = vmul.f32 %v4994_v39, %v7560_v28  ;;  %v3645_v17 = vadd.f32 %v7563_v48, %v3606_v57  ;;  %v3805_v57 = vpop.f32.mrf.mxu1 }
 0x404   : > { %v3499_v30 = vpop.f32.mrf.mxu0 }
 0x405   : > { %3917 = vst [vmem:[%s7577_s26 + $0x20] sm:$0xff] %v3885_v58  ;;  %v3888_v31 = vmax.f32 %v3856_v11, 0.0  ;;  %v3854_v18 = vadd.f32 %v3741_v6, %v3645_v17  ;;  %v3609_v54 = vmul.f32 %v7560_v28, %v3499_v30  ;;  %v3650_v23 = vadd.f32 %v7563_v48, %v3611_v15 }
 0x406   : > { %v4995_v12 = vpop.f32.mrf.mxu0 }
 0x407   : > { %3920 = vst [vmem:[%s7577_s26 + $0x38] sm:$0xff] %v3888_v31  ;;  %v3886_v0 = vmax.f32 %v3854_v18, 0.0  ;;  %v3859_v46 = vadd.f32 %v5030_v33, %v3650_v23  ;;  %v3612_v50 = vmul.f32 %v4995_v12, %v7560_v28  ;;  %v3648_v4 = vadd.f32 %v7563_v48, %v3609_v54  ;;  %v5046_v18 = vpop.f32.mrf.mxu1 }
 0x408   : > { %v3502_v9 = vpop.f32.mrf.mxu0 }
 0x409   : > { %3918 = vst [vmem:[%s7577_s26 + $0x28] sm:$0xff] %v3886_v0  ;;  %v3891_v56 = vmax.f32 %v3859_v46, 0.0  ;;  %v3857_v1 = vadd.f32 %v3754_v34, %v3648_v4  ;;  %v3610_v29 = vmul.f32 %v7560_v28, %v3502_v9  ;;  %v3651_v60 = vadd.f32 %v7563_v48, %v3612_v50 }
 0x40a   : > { %v4998_v7 = vpop.f32.mrf.mxu0 }
 0x40b   : > { %3923 = vst [vmem:[%s7577_s26 + $0x50] sm:$0xff] %v3891_v56  ;;  %v3889_v27 = vmax.f32 %v3857_v1, 0.0  ;;  %v3860_v45 = vadd.f32 %v5031_v13, %v3651_v60  ;;  %v3615_v26 = vmul.f32 %v4998_v7, %v7560_v28  ;;  %v3649_v35 = vadd.f32 %v7563_v48, %v3610_v29  ;;  %v3818_v56 = vpop.f32.mrf.mxu1 }
 0x40c   : > { %v3515_v25 = vpop.f32.mrf.mxu0 }
 0x40d   : > { %3921 = vst [vmem:[%s7577_s26 + $0x40] sm:$0xff] %v3889_v27  ;;  %v3892_v20 = vmax.f32 %v3860_v45, 0.0  ;;  %v3858_v43 = vadd.f32 %v7537_v22, %v3649_v35  ;;  %v3613_v61 = vmul.f32 %v7560_v28, %v3515_v25  ;;  %v3654_v6 = vadd.f32 %v7563_v48, %v3615_v26  ;;  %v5047_v25 = vpop.f32.mrf.mxu1 }
 0x40e   : > { %v4999_v33 = vpop.f32.mrf.mxu0 }
 0x40f   : > { %3924 = vst [vmem:[%s7577_s26 + $0x58] sm:$0xff] %v3892_v20  ;;  %v3890_v34 = vmax.f32 %v3858_v43, 0.0  ;;  %v3863_v13 = vadd.f32 %v7539_v37, %v3654_v6  ;;  %v3616_v8 = vmul.f32 %v4999_v33, %v7560_v28  ;;  %v3652_v63 = vadd.f32 %v7563_v48, %v3613_v61 }
 0x410   : > { %v3518_v52 = vpop.f32.mrf.mxu0 }
 0x411   : > { %3922 = vst [vmem:[%s7577_s26 + $0x48] sm:$0xff] %v3890_v34  ;;  %v3895_v44 = vmax.f32 %v3863_v13, 0.0  ;;  %v3861_v22 = vadd.f32 %v7541_v38, %v3652_v63  ;;  %v3614_v42 = vmul.f32 %v7560_v28, %v3518_v52  ;;  %v3655_v24 = vadd.f32 %v7563_v48, %v3616_v8  ;;  %v3821_v63 = vpop.f32.mrf.mxu1 }
 0x412   : > { %v5002_v62 = vpop.f32.mrf.mxu0 }
 0x413   : > { %3927 = vst [vmem:[%s7577_s26 + $0x70] sm:$0xff] %v3895_v44  ;;  %v3893_v2 = vmax.f32 %v3861_v22, 0.0  ;;  %v3864_v37 = vadd.f32 %v7543_v49, %v3655_v24  ;;  %v3619_v10 = vmul.f32 %v5002_v62, %v7560_v28  ;;  %v3653_v59 = vadd.f32 %v7563_v48, %v3614_v42 }
 0x414   : > { %v3531_v14 = vpop.f32.mrf.mxu0 }
 0x415   : > { %3925 = vst [vmem:[%s7577_s26 + $0x60] sm:$0xff] %v3893_v2  ;;  %v3896_v40 = vmax.f32 %v3864_v37, 0.0  ;;  %v3862_v38 = vadd.f32 %v7549_v32, %v3653_v59  ;;  %v3617_v39 = vmul.f32 %v7560_v28, %v3531_v14  ;;  %v3658_v58 = vadd.f32 %v7563_v48, %v3619_v10  ;;  %v5050_v10 = vpop.f32.mrf.mxu1 }
 0x416   : > { %v5003_v11 = vpop.f32.mrf.mxu0 }
 0x417   : > { %3928 = vst [vmem:[%s7577_s26 + $0x78] sm:$0xff] %v3896_v40  ;;  %v3894_v15 = vmax.f32 %v3862_v38, 0.0  ;;  %v3867_v49 = vadd.f32 %v7555_v19, %v3658_v58  ;;  %v3620_v17 = vmul.f32 %v5003_v11, %v7560_v28  ;;  %v3656_v30 = vadd.f32 %v7563_v48, %v3617_v39 }
 0x418   : > { %v3534_v31 = vpop.f32.mrf.mxu0 }
 0x419   : > { %3926 = vst [vmem:[%s7577_s26 + $0x68] sm:$0xff] %v3894_v15  ;;  %v3899_v54 = vmax.f32 %v3867_v49, 0.0  ;;  %v3865_v32 = vadd.f32 %v7565_v41, %v3656_v30  ;;  %v3618_v23 = vmul.f32 %v7560_v28, %v3534_v31  ;;  %v3659_v12 = vadd.f32 %v7563_v48, %v3620_v17  ;;  %v3834_v30 = vpop.f32.mrf.mxu1 }
 0x41a   : > { %v5006_v0 = vpop.f32.mrf.mxu0  ;;  %v3603_v49 = vmul.f32 %v7545_v36, %v7560_v28 }
 0x41b   : > { %3931 = vst [vmem:[%s7577_s26 + $0x90] sm:$0xff] %v3899_v54  ;;  %v3897_v46 = vmax.f32 %v3865_v32, 0.0  ;;  %v3868_v19 = vadd.f32 %v7571_v16, %v3659_v12  ;;  %v3623_v50 = vmul.f32 %v5006_v0, %v7560_v28  ;;  %v3657_v4 = vadd.f32 %v7563_v48, %v3618_v23 }
 0x41c   : > { %v3547_v9 = vpop.f32.mrf.mxu0  ;;  %v3601_v23 = vmul.f32 %v7560_v28, %v7547_v5 }
 0x41d   : > { %3929 = vst [vmem:[%s7577_s26 + $0x80] sm:$0xff] %v3897_v46  ;;  %v3900_v1 = vmax.f32 %v3868_v19, 0.0  ;;  %v3866_v41 = vadd.f32 %v7582_v51, %v3657_v4  ;;  %v3621_v29 = vmul.f32 %v7560_v28, %v3547_v9  ;;  %v3662_v60 = vadd.f32 %v7563_v48, %v3623_v50  ;;  %v5051_v9 = vpop.f32.mrf.mxu1 }
 0x41e   : > { %v5007_v7 = vpop.f32.mrf.mxu0  ;;  %v3604_v50 = vmul.f32 %v7551_v3, %v7560_v28 }
 0x41f   : > { %3932 = vst [vmem:[%s7577_s26 + $0x98] sm:$0xff] %v3900_v1  ;;  %v3898_v27 = vmax.f32 %v3866_v41, 0.0  ;;  %v3871_v16 = vadd.f32 %v7590_v21, %v3662_v60  ;;  %v3624_v45 = vmul.f32 %v5007_v7, %v7560_v28  ;;  %v3660_v26 = vadd.f32 %v7563_v48, %v3621_v29 }
 0x420   : > { %v3550_v35 = vpop.f32.mrf.mxu0  ;;  %v3602_v60 = vmul.f32 %v7560_v28, %v7553_v53 }
 0x421   : > { %3930 = vst [vmem:[%s7577_s26 + $0x88] sm:$0xff] %v3898_v27  ;;  %v3903_v20 = vmax.f32 %v3871_v16, 0.0  ;;  %v3869_v51 = vadd.f32 %v7598_v47, %v3660_v26  ;;  %v3622_v43 = vmul.f32 %v7560_v28, %v3550_v35  ;;  %v3663_v61 = vadd.f32 %v7563_v48, %v3624_v45  ;;  %v3837_v35 = vpop.f32.mrf.mxu1 }
 0x422   : > { %v5010_v6 = vpop.f32.mrf.mxu0  ;;  %v3640_v27 = vadd.f32 %v7563_v48, %v3601_v23 }
 0x423   : > { %3935 = vst [vmem:[%s7577_s26 + $0xb0] sm:$0xff] %v3903_v20  ;;  %v3901_v33 = vmax.f32 %v3869_v51, 0.0  ;;  %v3872_v21 = vadd.f32 %v5043_v55, %v3663_v61  ;;  %v3627_v34 = vmul.f32 %v5010_v6, %v7560_v28  ;;  %v3661_v13 = vadd.f32 %v7563_v48, %v3622_v43 }
 0x424   : > { %v3563_v8 = vpop.f32.mrf.mxu0  ;;  %v3643_v20 = vadd.f32 %v7563_v48, %v3604_v50 }
 0x425   : > { %3933 = vst [vmem:[%s7577_s26 + $0xa0] sm:$0xff] %v3901_v33  ;;  %v3904_v52 = vmax.f32 %v3872_v21, 0.0  ;;  %v3870_v44 = vadd.f32 %v3805_v57, %v3661_v13  ;;  %v3625_v47 = vmul.f32 %v7560_v28, %v3563_v8  ;;  %v3666_v22 = vadd.f32 %v7563_v48, %v3627_v34 }
 0x426   : > { %v5011_v42 = vpop.f32.mrf.mxu0  ;;  %v3641_v34 = vadd.f32 %v7563_v48, %v3602_v60 }
 0x427   : > { %3936 = vst [vmem:[%s7577_s26 + $0xb8] sm:$0xff] %v3904_v52  ;;  %v3902_v24 = vmax.f32 %v3870_v44, 0.0  ;;  %v3875_v62 = vadd.f32 %v5046_v18, %v3666_v22  ;;  %v3628_v55 = vmul.f32 %v5011_v42, %v7560_v28  ;;  %v3664_v2 = vadd.f32 %v7563_v48, %v3625_v47 }
 0x428   : > { %v3566_v37 = vpop.f32.mrf.mxu0 }
 0x429   : > { %3934 = vst [vmem:[%s7577_s26 + $0xa8] sm:$0xff] %v3902_v24  ;;  %v3907_v59 = vmax.f32 %v3875_v62, 0.0  ;;  %v3873_v14 = vadd.f32 %v3818_v56, %v3664_v2  ;;  %v3626_v57 = vmul.f32 %v7560_v28, %v3566_v37  ;;  %v3667_v40 = vadd.f32 %v7563_v48, %v3628_v55 }
 0x42a   : > { %v5014_v38 = vpop.f32.mrf.mxu0  ;;  %v3642_v56 = vadd.f32 %v7563_v48, %v3603_v49 }
 0x42b   : > { %3939 = vst [vmem:[%s7577_s26 + $0xd0] sm:$0xff] %v3907_v59  ;;  %v3905_v39 = vmax.f32 %v3873_v14, 0.0  ;;  %v3876_v58 = vadd.f32 %v5047_v25, %v3667_v40  ;;  %v3631_v11 = vmul.f32 %v5014_v38, %v7560_v28  ;;  %v3665_v15 = vadd.f32 %v7563_v48, %v3626_v57 }
 0x42c   : > { %v3579_v17 = vpop.f32.mrf.mxu0 }
 0x42d   : > { %3937 = vst [vmem:[%s7577_s26 + $0xc0] sm:$0xff] %v3905_v39  ;;  %v3908_v31 = vmax.f32 %v3876_v58, 0.0  ;;  %v3874_v18 = vadd.f32 %v3821_v63, %v3665_v15  ;;  %v3629_v54 = vmul.f32 %v7560_v28, %v3579_v17  ;;  %v3670_v32 = vadd.f32 %v7563_v48, %v3631_v11 }
 0x42e   : > { %v5015_v12 = vpop.f32.mrf.mxu0 }
 0x42f   : > { %3940 = vst [vmem:[%s7577_s26 + $0xd8] sm:$0xff] %v3908_v31  ;;  %v3906_v0 = vmax.f32 %v3874_v18, 0.0  ;;  %v3879_v46 = vadd.f32 %v5050_v10, %v3670_v32  ;;  %v3632_v36 = vmul.f32 %v5015_v12, %v7560_v28  ;;  %v3668_v19 = vadd.f32 %v7563_v48, %v3629_v54 }
 0x430   : > { %v3582_v4 = vpop.f32.mrf.mxu0 }
 0x431   : > { %3938 = vst [vmem:[%s7577_s26 + $0xc8] sm:$0xff] %v3906_v0  ;;  %v3911_v1 = vmax.f32 %v3879_v46, 0.0  ;;  %v3877_v5 = vadd.f32 %v3834_v30, %v3668_v19  ;;  %v3630_v41 = vmul.f32 %v7560_v28, %v3582_v4  ;;  %v3671_v29 = vadd.f32 %v7563_v48, %v3632_v36 }
 0x432   : > { %v5022_v7 = vpop.f32.mrf.mxu0 }
 0x433   : > { %3943 = vst [vmem:[%s7577_s26 + $0xf0] sm:$0xff] %v3911_v1  ;;  %v3909_v3 = vmax.f32 %v3877_v5, 0.0  ;;  %v3880_v16 = vadd.f32 %v5051_v9, %v3671_v29  ;;  %v3851_v45 = vadd.f32 %v5022_v7, %v3642_v56  ;;  %v3669_v26 = vadd.f32 %v7563_v48, %v3630_v41 }
 0x434   : > { %v3722_v25 = vpop.f32.mrf.mxu0 }
 0x435   : > { %3941 = vst [vmem:[%s7577_s26 + $0xe0] sm:$0xff] %v3909_v3  ;;  %v3912_v53 = vmax.f32 %v3880_v16, 0.0  ;;  %v3883_v28 = vmax.f32 %v3851_v45, 0.0  ;;  %v3878_v51 = vadd.f32 %v3837_v35, %v3669_v26  ;;  %v3849_v43 = vadd.f32 %v3722_v25, %v3640_v27 }
 0x436   : > { %v5023_v61 = vpop.f32.mrf.mxu0 }
 0x437   : > { %3944 = vst [vmem:[%s7577_s26 + $0xf8] sm:$0xff] %v3912_v53  ;;  %3915 = vst [vmem:[%s7577_s26 + $0x10] sm:$0xff] %v3883_v28  ;;  %v3910_v6 = vmax.f32 %v3878_v51, 0.0  ;;  %v3881_v33 = vmax.f32 %v3849_v43, 0.0  ;;  %v3852_v21 = vadd.f32 %v5023_v61, %v3643_v20 }
 0x438   : > { %v3725_v13 = vpop.f32.mrf.mxu0 }
 0x439   : > { %3942 = vst [vmem:[%s7577_s26 + $0xe8] sm:$0xff] %v3910_v6  ;;  %3913 = vst [vmem:[%s7577_s26] sm:$0xff] %v3881_v33  ;;  %v3884_v8 = vmax.f32 %v3852_v21, 0.0  ;;  %v3850_v63 = vadd.f32 %v3725_v13, %v3641_v34 }
 0x43b   : > { %3916 = vst [vmem:[%s7577_s26 + $0x18] sm:$0xff] %v3884_v8  ;;  %v3882_v48 = vmax.f32 %v3850_v63, 0.0 }
 0x43d   : > { %3914 = vst [vmem:[%s7577_s26 + $0x8] sm:$0xff] %v3882_v48 }
 0x43e   : > { %5417 = shalt.err (!%p5414_p5)
}
 0x43f   : > { %s5418_s28 = scalar_lea.hbm %s7692_s4, 4096  ;;  %s5422_s7 = scalar_lea.hbm %s7750_s11, 8192 }
 0x440   : > { %p5419_p6 = scmp.ne.s32.totalorder %s7692_s4, %s5418_s28  ;;  %p5423_p4 = scmp.lt.s32.totalorder %s7692_s4, %s7750_s11 }
 0x441   : > { %p5424_p7 = scmp.lt.s32.totalorder %s5422_s7, %s5418_s28 }
 0x442   : > { %p5420_p10 = pnand %p5419_p6, %p8230_p2 }
 0x443   : > { %p5425_p13 = por %p5424_p7, %p5423_p4 }
 0x444   : > { %p5421_p11 = pneg %p5420_p10 }
 0x446   : > { %p5426_p0 = pnand %p5425_p13, %p5421_p11 }
 0x448   : > { %5429 = shalt.err (!%p5426_p0)
}
 0x449   : > { %s5495_s21 = smov 128   ;;  %s5496_s1 = smov 8  }
 0x44a   : > { %5078 = dma.vmem_to_hbm [thread:$0]  (%p8230_p2), %s7694_s29, 4096, %s7692_s4, %s3946_s23, %s5495_s21, %s5495_s21, %s5496_s1  }
 0x44b PF: > { %s3974_s24 = sand.u32 1, %s5468_s17   ;;  %p8231_p8 = scmp.ne.s32.totalorder %s7871_s25, 0 }
 0x44c   : > { %p8232_p9 = scmp.ge.s32.totalorder %s5480_s20, 2  ;;  %s3975_s12 = scalar_lea.sflag [#allocation4], %s3974_s24 }
 0x44e   : > { %p5101_p12 = pnand %p8232_p9, %p8231_p8 }
 0x450   : > { %p5102_p3 = pneg %p5101_p12 }
 0x452   : > { %5463 = dma.done.wait (%p5102_p3), %s3975_s12, 4096  }
 0x453   : > { %5465 = vsyncadd (%p5102_p3), %s3975_s12, 4294963200  ;;  %p27_p1 = scmp.ge.s32.totalorder %s5665_s30, 4   ;;  %s8233_s17 = smov %s5472_s18 }
 0x454   : > { %s8234_s18 = smov %s5476_s19  ;;  %s8235_s19 = smov %s5677_s22 }
 0x455   : > { %s8236_s20 = smov %s5665_s30  ;;  %29 = sbr.rel (!%p27_p1) target bundleno = 14 (0xe), region = 129 }
 0x45a   :  { %3980 = vsyncpa [#allocation3], 1 }
 0x45b   :  { %3982 = vsyncpa [#allocation3 + $0x1], 1 }
 0x45c   :  { %3983 = vsyncpa [#allocation6], 1 }
 0x45d   :  { %3984 = vsyncpa [#allocation9], 1 }
 0x45e   :  { %3985 = vsyncpa [#allocation12], 1 }
 0x45f   :  { %3986 = vsyncpa [#allocation4], 1 }
 0x460   :  { %3988 = vsyncpa [#allocation4 + $0x1], 1 }

</bundles_post_ra>
